<compile_context>
chip_gen: v7x
topology: tpu7x:2x2x1
jax: 0.10.0
libtpu: 0.0.40
codegen_flags: <defaults>
</compile_context>

<pallas_src>
import functools
import math

import jax
import jax.numpy as jnp
from jax.experimental import pallas as pl
from jax.experimental.pallas import tpu as pltpu


# ----------------------------------------------------------------------------
# Kernel
# ----------------------------------------------------------------------------
def _fused_mha_kernel(*refs, num_sources, num_heads, head_dim, mm_dtype):
    """Fused concat + multi-head self-attention for one block of batch rows.

    refs layout:
      refs[:num_sources]        source blocks, each (nb, L_s, E)   batch-major
      refs[num_sources + 0]     w_qkv (E, 3E)   head-major cols, 1/sqrt(D) in Q
      refs[num_sources + 1]     b_qkv (1, 3E)   f32
      refs[num_sources + 2]     wo    (E, E)    = out_proj.weight^T
      refs[num_sources + 3]     bo    (1, E)    f32
      refs[num_sources + 4]     out   (nb, L, E)
    """
    src_refs = refs[:num_sources]
    w_qkv_ref, b_qkv_ref, wo_ref, bo_ref, o_ref = refs[num_sources:]
    H, D = num_heads, head_dim

    # ---- fused source concatenation (torch.cat(embeddings, dim=0)) --------
    if num_sources == 1:
        x = src_refs[0][...]
    else:
        x = jnp.concatenate([r[...] for r in src_refs], axis=1)      # (nb, L, E)
    nb, L, E = x.shape
    R = nb * L
    x2 = x.reshape(R, E).astype(mm_dtype)

    # ---- single full-width QKV projection: (R,E) @ (E,3E), f32 accum ------
    qkv = jnp.dot(x2, w_qkv_ref[...],
                  preferred_element_type=jnp.float32) + b_qkv_ref[...]   # (R, 3E)
    q2 = qkv[:, :E]
    k2 = qkv[:, E:2 * E]
    v2 = qkv[:, 2 * E:]

    # ---- per-head scaled-dot-product attention (batched over nb rows) -----
    # TODO(synk): for very long L, switch this to a kv-tiled online-softmax
    # (flash) inner loop instead of materializing the full (nb, L, L) scores.
    head_outs = []
    for h in range(H):
        lo, hi = h * D, (h + 1) * D
        qh = q2[:, lo:hi].astype(mm_dtype).reshape(nb, L, D)
        kh = k2[:, lo:hi].astype(mm_dtype).reshape(nb, L, D)
        vh = v2[:, lo:hi].astype(mm_dtype).reshape(nb, L, D)
        s = jnp.einsum('nld,nmd->nlm', qh, kh,
                       preferred_element_type=jnp.float32)           # (nb, L, L)
        m = jnp.max(s, axis=-1, keepdims=True)
        p = jnp.exp(s - m)
        p = p * pl.reciprocal(jnp.sum(p, axis=-1, keepdims=True), approx=True)
        oh = jnp.einsum('nlm,nmd->nld', p.astype(mm_dtype), vh,
                        preferred_element_type=jnp.float32)           # (nb, L, D)
        head_outs.append(oh.reshape(R, D))

    # ---- re-assemble heads (lane concat) + single full-depth out-proj -----
    o2 = head_outs[0] if H == 1 else jnp.concatenate(head_outs, axis=-1)  # (R, E)
    out = jnp.dot(o2.astype(mm_dtype), wo_ref[...],
                  preferred_element_type=jnp.float32) + bo_ref[...]       # (R, E)
    o_ref[...] = out.reshape(nb, L, E).astype(o_ref.dtype)


# ----------------------------------------------------------------------------
# Tile sizing (generation-aware)
# ----------------------------------------------------------------------------
def _vmem_budgets():
    """Returns (working-set budget, vmem_limit_bytes) for the current chip."""
    try:
        kind = jax.devices()[0].device_kind.lower()
    except Exception:  # pragma: no cover
        kind = ""
    if "v7" in kind:                               # 64 MiB physical, 2 TCs
        return 36 * 1024 * 1024, 48 * 1024 * 1024
    return 72 * 1024 * 1024, 96 * 1024 * 1024      # v5e / v6e: 128 MiB physical


def _pick_batch_block(N, L, E, mm_bytes, vmem_budget_bytes,
                      target_rows=1024, min_grid_steps=2):
    """Largest batch block nb whose estimated VMEM working set fits budget."""
    w_bytes = 4 * E * E * mm_bytes + 4 * E * 4          # packed weights + biases

    def cost(nb):
        R = nb * L
        io = 2 * R * E * mm_bytes + 2 * R * E * 4       # dbl-buffered src + out blocks
        proj = 3 * R * E * (4 + mm_bytes)               # qkv f32 + per-head casts
        attn = 2 * nb * L * L * 4                       # one head's scores + probs
        tail = 2 * R * E * 4                            # o2 + projected out
        return w_bytes + io + proj + attn + tail

    nb_cap = max(1, min(N, max(1, target_rows // max(L, 1))))
    if N >= min_grid_steps:                             # keep >=2 grid steps (megacore)
        nb_cap = min(nb_cap, max(1, N // min_grid_steps))
    nb = 1
    for cand in range(1, nb_cap + 1):
        if cost(cand) <= vmem_budget_bytes:
            nb = cand
    return nb


def _const_spec(shape, single_buffer):
    """BlockSpec for a grid-invariant (weight) input; single-buffer if possible."""
    index_map = lambda i: (0,) * len(shape)
    if single_buffer:
        try:
            return pl.BlockSpec(shape, index_map, pipeline_mode=pl.Buffered(1))
        except Exception:
            pass
    return pl.BlockSpec(shape, index_map)


# ----------------------------------------------------------------------------
# Wrapper
# ----------------------------------------------------------------------------
def cross_source_fusion(embeddings, params, *, embed_dim, num_heads,
                        use_bf16=True):
    """embeddings: list of arrays, each (L_i, N, E)  (PyTorch seq-first)."""
    E, H = embed_dim, num_heads
    assert E % H == 0
    D = E // H

    seq_lens = tuple(int(e.shape[0]) for e in embeddings)
    N = int(embeddings[0].shape[1])
    L = sum(seq_lens)
    out_dtype = embeddings[0].dtype
    mm_dtype = jnp.bfloat16 if use_bf16 else jnp.float32
    mm_bytes = 2 if use_bf16 else 4

    # -------- weight prep (free, done once in the wrapper) ------------------
    scale = 1.0 / math.sqrt(D)
    w_in = params["in_proj_weight"].astype(jnp.float32)   # (3E, E), (out, in)
    b_in = params["in_proj_bias"].astype(jnp.float32)     # (3E,)
    col_scale = jnp.concatenate([jnp.full((E,), scale, jnp.float32),
                                 jnp.ones((2 * E,), jnp.float32)])
    w_qkv = (jnp.transpose(w_in) * col_scale[None, :]).astype(mm_dtype)  # (E, 3E)
    b_qkv = (b_in * col_scale).reshape(1, 3 * E).astype(jnp.float32)
    wo = jnp.transpose(params["out_proj_weight"]).astype(mm_dtype)       # (E, E)
    bo = params["out_proj_bias"].reshape(1, E).astype(jnp.float32)

    # -------- activations: batch-major, matmul dtype -------------------------
    srcs = [jnp.transpose(e, (1, 0, 2)).astype(mm_dtype) for e in embeddings]

    # -------- generation-aware tile sizing / batch padding -------------------
    vmem_budget, vmem_limit = _vmem_budgets()
    nb = _pick_batch_block(N, L, E, mm_bytes, vmem_budget)
    n_steps = -(-N // nb)                  # ceil
    N_pad = n_steps * nb
    if N_pad != N:                         # pad batch instead of degrading to nb=1
        srcs = [jnp.pad(s, ((0, N_pad - N), (0, 0), (0, 0))) for s in srcs]
    # TODO(synk): pad L_s to a multiple of 8 (with score masking) and E to a
    # multiple of 128 for fully lane-dense stores when model dims are unaligned.

    kernel = functools.partial(_fused_mha_kernel, num_sources=len(embeddings),
                               num_heads=H, head_dim=D, mm_dtype=mm_dtype)

    def run(single_buffer_weights):
        in_specs = [pl.BlockSpec((nb, Ls, E), lambda i: (i, 0, 0))
                    for Ls in seq_lens]
        in_specs += [_const_spec((E, 3 * E), single_buffer_weights),   # w_qkv
                     _const_spec((1, 3 * E), single_buffer_weights),   # b_qkv
                     _const_spec((E, E), single_buffer_weights),       # wo
                     _const_spec((1, E), single_buffer_weights)]       # bo
        return pl.pallas_call(
            kernel,
            out_shape=jax.ShapeDtypeStruct((N_pad, L, E), out_dtype),
            grid_spec=pltpu.PrefetchScalarGridSpec(
                num_scalar_prefetch=0,
                grid=(n_steps,),
                in_specs=in_specs,
                out_specs=pl.BlockSpec((nb, L, E), lambda i: (i, 0, 0)),
            ),
            compiler_params=pltpu.CompilerParams(
                dimension_semantics=("parallel",),
                vmem_limit_bytes=vmem_limit,
            ),
        )(*srcs, w_qkv, b_qkv, wo, bo)

    try:
        out_bm = run(single_buffer_weights=True)
    except Exception:
        # pipeline_mode=pl.Buffered(1) not supported by this jax build:
        # fall back to default (double-buffered) weight blocks.
        out_bm = run(single_buffer_weights=False)

    if N_pad != N:
        out_bm = out_bm[:N]
    return jnp.transpose(out_bm, (1, 0, 2))   # back to PyTorch (L, N, E)


# ----------------------------------------------------------------------------
# Pure-JAX reference (numerical self-check only; runs outside Pallas)
# ----------------------------------------------------------------------------
def mha_reference(embeddings, params, *, embed_dim, num_heads):
    x = jnp.concatenate(embeddings, axis=0)            # (L, N, E)
    L, N, E = x.shape
    H = num_heads
    D = E // H
    w_in = params["in_proj_weight"]
    b_in = params["in_proj_bias"]
    qkv = jnp.einsum('lne,fe->lnf', x, w_in) + b_in    # (L, N, 3E)
    q, k, v = qkv[..., :E], qkv[..., E:2 * E], qkv[..., 2 * E:]
    q = q * (1.0 / math.sqrt(D))

    def split(t):                                      # (L,N,E) -> (N,H,L,D)
        return jnp.transpose(t.reshape(L, N, H, D), (1, 2, 0, 3))

    qh, kh, vh = split(q), split(k), split(v)
    s = jnp.einsum('nhld,nhmd->nhlm', qh, kh)
    p = jax.nn.softmax(s, axis=-1)
    o = jnp.einsum('nhlm,nhmd->nhld', p, vh)           # (N, H, L, D)
    o = jnp.transpose(o, (2, 0, 1, 3)).reshape(L, N, E)
    return (jnp.einsum('lne,fe->lnf', o, params["out_proj_weight"])
            + params["out_proj_bias"])


def init_params(key, embed_dim):
    """Deterministic init matching nn.MultiheadAttention parameter shapes."""
    k1, k2, k3, k4 = jax.random.split(key, 4)
    E = embed_dim
    bound_in = math.sqrt(6.0 / (3 * E + E))
    bound_out = math.sqrt(6.0 / (E + E))
    return {
        "in_proj_weight": jax.random.uniform(k1, (3 * E, E), jnp.float32,
                                             -bound_in, bound_in),
        "in_proj_bias": 0.1 * jax.random.normal(k3, (3 * E,), jnp.float32),
        "out_proj_weight": jax.random.uniform(k2, (E, E), jnp.float32,
                                              -bound_out, bound_out),
        "out_proj_bias": 0.1 * jax.random.normal(k4, (E,), jnp.float32),
    }


if __name__ == "__main__":
    embed_dim = 32
    num_heads = 4
    seq = 16      # per source; two sources -> total L = 32
    batch = 2

    key = jax.random.PRNGKey(0)
    kp, ka, kb = jax.random.split(key, 3)

    params = init_params(kp, embed_dim)
    emb_a = jax.random.normal(ka, (seq, batch, embed_dim), jnp.float32)
    emb_b = jax.random.normal(kb, (seq, batch, embed_dim), jnp.float32)

    ref = jax.block_until_ready(
        mha_reference([emb_a, emb_b], params,
                      embed_dim=embed_dim, num_heads=num_heads))

    # f32-matmul path (tight tolerance).
    out_f32 = jax.block_until_ready(
        cross_source_fusion([emb_a, emb_b], params, embed_dim=embed_dim,
                            num_heads=num_heads, use_bf16=False))
    assert out_f32.shape == (2 * seq, batch, embed_dim)
    err_f32 = float(jnp.max(jnp.abs(out_f32 - ref)))
    assert err_f32 < 2e-2, f"f32 kernel/reference mismatch, max abs err={err_f32}"

    # bf16 MXU-input path (default; looser tolerance, softmax stays f32).
    out_bf16 = jax.block_until_ready(
        cross_source_fusion([emb_a, emb_b], params, embed_dim=embed_dim,
                            num_heads=num_heads, use_bf16=True))
    assert out_bf16.shape == (2 * seq, batch, embed_dim)
    err_bf16 = float(jnp.max(jnp.abs(out_bf16 - ref)))
    assert err_bf16 < 1e-1, f"bf16 kernel/reference mismatch, max abs err={err_bf16}"

    print("KERNEL_OK")
</pallas_src>

<mosaic_0001>
module attributes {stable_mosaic.version = 11 : i64} {
  func.func @_fused_mha_kernel(%arg0: i32, %arg1: memref<1x16x32xf32, #tpu.memory_space<vmem>>, %arg2: memref<1x16x32xf32, #tpu.memory_space<vmem>>, %arg3: memref<32x96xf32, #tpu.memory_space<vmem>>, %arg4: memref<1x96xf32, #tpu.memory_space<vmem>>, %arg5: memref<32x32xf32, #tpu.memory_space<vmem>>, %arg6: memref<1x32xf32, #tpu.memory_space<vmem>>, %arg7: memref<1x32x32xf32, #tpu.memory_space<vmem>>) attributes {dimension_semantics = [#tpu.dimension_semantics<parallel>], iteration_bounds = array<i64: 2>, scalar_prefetch = 0 : i64, scratch_operands = 0 : i64, tpu.core_type = #tpu.core_type<tc>, window_params = [{transform_indices = @transform_0, window_bounds = array<i64: 1, 16, 32>}, {transform_indices = @transform_1, window_bounds = array<i64: 1, 16, 32>}, {pipeline_mode = #tpu.pipeline_mode<synchronous>, transform_indices = @transform_2, window_bounds = array<i64: 32, 96>}, {pipeline_mode = #tpu.pipeline_mode<synchronous>, transform_indices = @transform_3, window_bounds = array<i64: 1, 96>}, {pipeline_mode = #tpu.pipeline_mode<synchronous>, transform_indices = @transform_4, window_bounds = array<i64: 32, 32>}, {pipeline_mode = #tpu.pipeline_mode<synchronous>, transform_indices = @transform_5, window_bounds = array<i64: 1, 32>}, {transform_indices = @transform_6, window_bounds = array<i64: 1, 32, 32>}]} {
    %c0 = arith.constant 0 : index
    %c0_0 = arith.constant 0 : index
    %c0_1 = arith.constant 0 : index
    %0 = vector.load %arg1[%c0, %c0_0, %c0_1] : memref<1x16x32xf32, #tpu.memory_space<vmem>>, vector<1x16x32xf32>
    %c0_2 = arith.constant 0 : index
    %c0_3 = arith.constant 0 : index
    %c0_4 = arith.constant 0 : index
    %1 = vector.load %arg2[%c0_2, %c0_3, %c0_4] : memref<1x16x32xf32, #tpu.memory_space<vmem>>, vector<1x16x32xf32>
    %2 = tpu.concatenate %0, %1 in 1 : vector<1x16x32xf32>, vector<1x16x32xf32> -> vector<1x32x32xf32>
    %3 = vector.shape_cast %2 : vector<1x32x32xf32> to vector<32x32xf32>
    %c0_5 = arith.constant 0 : index
    %c0_6 = arith.constant 0 : index
    %4 = vector.load %arg3[%c0_5, %c0_6] : memref<32x96xf32, #tpu.memory_space<vmem>>, vector<32x96xf32>
    %cst = arith.constant dense<0.000000e+00> : vector<32x96xf32>
    %5 = tpu.matmul %3, %4, %cst {dimension_numbers = #tpu.dot_dimension_numbers<[1], [0], [0], [1], [0, 0, 1, 1], [], []>} : vector<32x32xf32>, vector<32x96xf32>, vector<32x96xf32> -> vector<32x96xf32>
    %c0_7 = arith.constant 0 : index
    %c0_8 = arith.constant 0 : index
    %6 = vector.load %arg4[%c0_7, %c0_8] : memref<1x96xf32, #tpu.memory_space<vmem>>, vector<1x96xf32>
    %7 = vector.broadcast %6 : vector<1x96xf32> to vector<32x96xf32>
    %8 = arith.addf %5, %7 : vector<32x96xf32>
    %9 = vector.extract_strided_slice %8 {offsets = [0, 0], sizes = [32, 32], strides = [1, 1]} : vector<32x96xf32> to vector<32x32xf32>
    %10 = vector.extract_strided_slice %8 {offsets = [0, 32], sizes = [32, 32], strides = [1, 1]} : vector<32x96xf32> to vector<32x32xf32>
    %11 = vector.extract_strided_slice %8 {offsets = [0, 64], sizes = [32, 32], strides = [1, 1]} : vector<32x96xf32> to vector<32x32xf32>
    %12 = vector.extract_strided_slice %9 {offsets = [0, 0], sizes = [32, 8], strides = [1, 1]} : vector<32x32xf32> to vector<32x8xf32>
    %13 = vector.shape_cast %12 : vector<32x8xf32> to vector<1x32x8xf32>
    %14 = vector.extract_strided_slice %10 {offsets = [0, 0], sizes = [32, 8], strides = [1, 1]} : vector<32x32xf32> to vector<32x8xf32>
    %15 = vector.shape_cast %14 : vector<32x8xf32> to vector<1x32x8xf32>
    %16 = vector.extract_strided_slice %11 {offsets = [0, 0], sizes = [32, 8], strides = [1, 1]} : vector<32x32xf32> to vector<32x8xf32>
    %17 = vector.shape_cast %16 : vector<32x8xf32> to vector<1x32x8xf32>
    "tpu.trace_start"() <{level = 10 : i32, message = "nld,nmd->nlm"}> : () -> ()
    %cst_9 = arith.constant dense<0.000000e+00> : vector<1x32x32xf32>
    %18 = tpu.matmul %13, %15, %cst_9 {dimension_numbers = #tpu.dot_dimension_numbers<[2], [2], [1], [1], [0, 0, 0, 1, 1, 1], [0], [0]>} : vector<1x32x8xf32>, vector<1x32x8xf32>, vector<1x32x32xf32> -> vector<1x32x32xf32>
    "tpu.trace_stop"() : () -> ()
    %cst_10 = arith.constant dense<0xFF800000> : vector<1x32xf32>
    %19 = vector.multi_reduction <maximumf>, %18, %cst_10 [2] : vector<1x32x32xf32> to vector<1x32xf32>
    %20 = vector.shape_cast %19 : vector<1x32xf32> to vector<1x32x1xf32>
    %21 = vector.broadcast %20 : vector<1x32x1xf32> to vector<1x32x32xf32>
    %22 = arith.subf %18, %21 : vector<1x32x32xf32>
    %23 = math.exp %22 : vector<1x32x32xf32>
    %cst_11 = arith.constant dense<0.000000e+00> : vector<1x32xf32>
    %24 = vector.multi_reduction <add>, %23, %cst_11 [2] : vector<1x32x32xf32> to vector<1x32xf32>
    %25 = vector.shape_cast %24 : vector<1x32xf32> to vector<1x32x1xf32>
    %26 = tpu.reciprocal %25 {approx = true} : vector<1x32x1xf32> -> vector<1x32x1xf32>
    %27 = vector.broadcast %26 : vector<1x32x1xf32> to vector<1x32x32xf32>
    %28 = arith.mulf %23, %27 : vector<1x32x32xf32>
    "tpu.trace_start"() <{level = 10 : i32, message = "nlm,nmd->nld"}> : () -> ()
    %cst_12 = arith.constant dense<0.000000e+00> : vector<1x32x8xf32>
    %29 = tpu.matmul %28, %17, %cst_12 {dimension_numbers = #tpu.dot_dimension_numbers<[2], [1], [1], [2], [0, 0, 0, 1, 1, 2], [0], [0]>} : vector<1x32x32xf32>, vector<1x32x8xf32>, vector<1x32x8xf32> -> vector<1x32x8xf32>
    "tpu.trace_stop"() : () -> ()
    %30 = vector.shape_cast %29 : vector<1x32x8xf32> to vector<32x8xf32>
    %31 = vector.extract_strided_slice %9 {offsets = [0, 8], sizes = [32, 8], strides = [1, 1]} : vector<32x32xf32> to vector<32x8xf32>
    %32 = vector.shape_cast %31 : vector<32x8xf32> to vector<1x32x8xf32>
    %33 = vector.extract_strided_slice %10 {offsets = [0, 8], sizes = [32, 8], strides = [1, 1]} : vector<32x32xf32> to vector<32x8xf32>
    %34 = vector.shape_cast %33 : vector<32x8xf32> to vector<1x32x8xf32>
    %35 = vector.extract_strided_slice %11 {offsets = [0, 8], sizes = [32, 8], strides = [1, 1]} : vector<32x32xf32> to vector<32x8xf32>
    %36 = vector.shape_cast %35 : vector<32x8xf32> to vector<1x32x8xf32>
    "tpu.trace_start"() <{level = 10 : i32, message = "nld,nmd->nlm"}> : () -> ()
    %cst_13 = arith.constant dense<0.000000e+00> : vector<1x32x32xf32>
    %37 = tpu.matmul %32, %34, %cst_13 {dimension_numbers = #tpu.dot_dimension_numbers<[2], [2], [1], [1], [0, 0, 0, 1, 1, 1], [0], [0]>} : vector<1x32x8xf32>, vector<1x32x8xf32>, vector<1x32x32xf32> -> vector<1x32x32xf32>
    "tpu.trace_stop"() : () -> ()
    %cst_14 = arith.constant dense<0xFF800000> : vector<1x32xf32>
    %38 = vector.multi_reduction <maximumf>, %37, %cst_14 [2] : vector<1x32x32xf32> to vector<1x32xf32>
    %39 = vector.shape_cast %38 : vector<1x32xf32> to vector<1x32x1xf32>
    %40 = vector.broadcast %39 : vector<1x32x1xf32> to vector<1x32x32xf32>
    %41 = arith.subf %37, %40 : vector<1x32x32xf32>
    %42 = math.exp %41 : vector<1x32x32xf32>
    %cst_15 = arith.constant dense<0.000000e+00> : vector<1x32xf32>
    %43 = vector.multi_reduction <add>, %42, %cst_15 [2] : vector<1x32x32xf32> to vector<1x32xf32>
    %44 = vector.shape_cast %43 : vector<1x32xf32> to vector<1x32x1xf32>
    %45 = tpu.reciprocal %44 {approx = true} : vector<1x32x1xf32> -> vector<1x32x1xf32>
    %46 = vector.broadcast %45 : vector<1x32x1xf32> to vector<1x32x32xf32>
    %47 = arith.mulf %42, %46 : vector<1x32x32xf32>
    "tpu.trace_start"() <{level = 10 : i32, message = "nlm,nmd->nld"}> : () -> ()
    %cst_16 = arith.constant dense<0.000000e+00> : vector<1x32x8xf32>
    %48 = tpu.matmul %47, %36, %cst_16 {dimension_numbers = #tpu.dot_dimension_numbers<[2], [1], [1], [2], [0, 0, 0, 1, 1, 2], [0], [0]>} : vector<1x32x32xf32>, vector<1x32x8xf32>, vector<1x32x8xf32> -> vector<1x32x8xf32>
    "tpu.trace_stop"() : () -> ()
    %49 = vector.shape_cast %48 : vector<1x32x8xf32> to vector<32x8xf32>
    %50 = vector.extract_strided_slice %9 {offsets = [0, 16], sizes = [32, 8], strides = [1, 1]} : vector<32x32xf32> to vector<32x8xf32>
    %51 = vector.shape_cast %50 : vector<32x8xf32> to vector<1x32x8xf32>
    %52 = vector.extract_strided_slice %10 {offsets = [0, 16], sizes = [32, 8], strides = [1, 1]} : vector<32x32xf32> to vector<32x8xf32>
    %53 = vector.shape_cast %52 : vector<32x8xf32> to vector<1x32x8xf32>
    %54 = vector.extract_strided_slice %11 {offsets = [0, 16], sizes = [32, 8], strides = [1, 1]} : vector<32x32xf32> to vector<32x8xf32>
    %55 = vector.shape_cast %54 : vector<32x8xf32> to vector<1x32x8xf32>
    "tpu.trace_start"() <{level = 10 : i32, message = "nld,nmd->nlm"}> : () -> ()
    %cst_17 = arith.constant dense<0.000000e+00> : vector<1x32x32xf32>
    %56 = tpu.matmul %51, %53, %cst_17 {dimension_numbers = #tpu.dot_dimension_numbers<[2], [2], [1], [1], [0, 0, 0, 1, 1, 1], [0], [0]>} : vector<1x32x8xf32>, vector<1x32x8xf32>, vector<1x32x32xf32> -> vector<1x32x32xf32>
    "tpu.trace_stop"() : () -> ()
    %cst_18 = arith.constant dense<0xFF800000> : vector<1x32xf32>
    %57 = vector.multi_reduction <maximumf>, %56, %cst_18 [2] : vector<1x32x32xf32> to vector<1x32xf32>
    %58 = vector.shape_cast %57 : vector<1x32xf32> to vector<1x32x1xf32>
    %59 = vector.broadcast %58 : vector<1x32x1xf32> to vector<1x32x32xf32>
    %60 = arith.subf %56, %59 : vector<1x32x32xf32>
    %61 = math.exp %60 : vector<1x32x32xf32>
    %cst_19 = arith.constant dense<0.000000e+00> : vector<1x32xf32>
    %62 = vector.multi_reduction <add>, %61, %cst_19 [2] : vector<1x32x32xf32> to vector<1x32xf32>
    %63 = vector.shape_cast %62 : vector<1x32xf32> to vector<1x32x1xf32>
    %64 = tpu.reciprocal %63 {approx = true} : vector<1x32x1xf32> -> vector<1x32x1xf32>
    %65 = vector.broadcast %64 : vector<1x32x1xf32> to vector<1x32x32xf32>
    %66 = arith.mulf %61, %65 : vector<1x32x32xf32>
    "tpu.trace_start"() <{level = 10 : i32, message = "nlm,nmd->nld"}> : () -> ()
    %cst_20 = arith.constant dense<0.000000e+00> : vector<1x32x8xf32>
    %67 = tpu.matmul %66, %55, %cst_20 {dimension_numbers = #tpu.dot_dimension_numbers<[2], [1], [1], [2], [0, 0, 0, 1, 1, 2], [0], [0]>} : vector<1x32x32xf32>, vector<1x32x8xf32>, vector<1x32x8xf32> -> vector<1x32x8xf32>
    "tpu.trace_stop"() : () -> ()
    %68 = vector.shape_cast %67 : vector<1x32x8xf32> to vector<32x8xf32>
    %69 = vector.extract_strided_slice %9 {offsets = [0, 24], sizes = [32, 8], strides = [1, 1]} : vector<32x32xf32> to vector<32x8xf32>
    %70 = vector.shape_cast %69 : vector<32x8xf32> to vector<1x32x8xf32>
    %71 = vector.extract_strided_slice %10 {offsets = [0, 24], sizes = [32, 8], strides = [1, 1]} : vector<32x32xf32> to vector<32x8xf32>
    %72 = vector.shape_cast %71 : vector<32x8xf32> to vector<1x32x8xf32>
    %73 = vector.extract_strided_slice %11 {offsets = [0, 24], sizes = [32, 8], strides = [1, 1]} : vector<32x32xf32> to vector<32x8xf32>
    %74 = vector.shape_cast %73 : vector<32x8xf32> to vector<1x32x8xf32>
    "tpu.trace_start"() <{level = 10 : i32, message = "nld,nmd->nlm"}> : () -> ()
    %cst_21 = arith.constant dense<0.000000e+00> : vector<1x32x32xf32>
    %75 = tpu.matmul %70, %72, %cst_21 {dimension_numbers = #tpu.dot_dimension_numbers<[2], [2], [1], [1], [0, 0, 0, 1, 1, 1], [0], [0]>} : vector<1x32x8xf32>, vector<1x32x8xf32>, vector<1x32x32xf32> -> vector<1x32x32xf32>
    "tpu.trace_stop"() : () -> ()
    %cst_22 = arith.constant dense<0xFF800000> : vector<1x32xf32>
    %76 = vector.multi_reduction <maximumf>, %75, %cst_22 [2] : vector<1x32x32xf32> to vector<1x32xf32>
    %77 = vector.shape_cast %76 : vector<1x32xf32> to vector<1x32x1xf32>
    %78 = vector.broadcast %77 : vector<1x32x1xf32> to vector<1x32x32xf32>
    %79 = arith.subf %75, %78 : vector<1x32x32xf32>
    %80 = math.exp %79 : vector<1x32x32xf32>
    %cst_23 = arith.constant dense<0.000000e+00> : vector<1x32xf32>
    %81 = vector.multi_reduction <add>, %80, %cst_23 [2] : vector<1x32x32xf32> to vector<1x32xf32>
    %82 = vector.shape_cast %81 : vector<1x32xf32> to vector<1x32x1xf32>
    %83 = tpu.reciprocal %82 {approx = true} : vector<1x32x1xf32> -> vector<1x32x1xf32>
    %84 = vector.broadcast %83 : vector<1x32x1xf32> to vector<1x32x32xf32>
    %85 = arith.mulf %80, %84 : vector<1x32x32xf32>
    "tpu.trace_start"() <{level = 10 : i32, message = "nlm,nmd->nld"}> : () -> ()
    %cst_24 = arith.constant dense<0.000000e+00> : vector<1x32x8xf32>
    %86 = tpu.matmul %85, %74, %cst_24 {dimension_numbers = #tpu.dot_dimension_numbers<[2], [1], [1], [2], [0, 0, 0, 1, 1, 2], [0], [0]>} : vector<1x32x32xf32>, vector<1x32x8xf32>, vector<1x32x8xf32> -> vector<1x32x8xf32>
    "tpu.trace_stop"() : () -> ()
    %87 = vector.shape_cast %86 : vector<1x32x8xf32> to vector<32x8xf32>
    %88 = tpu.concatenate %30, %49, %68, %87 in 1 : vector<32x8xf32>, vector<32x8xf32>, vector<32x8xf32>, vector<32x8xf32> -> vector<32x32xf32>
    %c0_25 = arith.constant 0 : index
    %c0_26 = arith.constant 0 : index
    %89 = vector.load %arg5[%c0_25, %c0_26] : memref<32x32xf32, #tpu.memory_space<vmem>>, vector<32x32xf32>
    %cst_27 = arith.constant dense<0.000000e+00> : vector<32x32xf32>
    %90 = tpu.matmul %88, %89, %cst_27 {dimension_numbers = #tpu.dot_dimension_numbers<[1], [0], [0], [1], [0, 0, 1, 1], [], []>} : vector<32x32xf32>, vector<32x32xf32>, vector<32x32xf32> -> vector<32x32xf32>
    %c0_28 = arith.constant 0 : index
    %c0_29 = arith.constant 0 : index
    %91 = vector.load %arg6[%c0_28, %c0_29] : memref<1x32xf32, #tpu.memory_space<vmem>>, vector<1x32xf32>
    %92 = vector.broadcast %91 : vector<1x32xf32> to vector<32x32xf32>
    %93 = arith.addf %90, %92 : vector<32x32xf32>
    %94 = vector.shape_cast %93 : vector<32x32xf32> to vector<1x32x32xf32>
    %c0_30 = arith.constant 0 : index
    %c0_31 = arith.constant 0 : index
    %c0_32 = arith.constant 0 : index
    %95 = vector.load %arg7[%c0_30, %c0_31, %c0_32] : memref<1x32x32xf32, #tpu.memory_space<vmem>>, vector<1x32x32xf32>
    tpu.vector_store %arg7[%c0_30, %c0_31, %c0_32], %94 {strides = array<i32>} : memref<1x32x32xf32, #tpu.memory_space<vmem>>, vector<1x32x32xf32>,
    return
  }
  func.func @transform_0(%arg0: i32) -> (i32, i32, i32) {
    %c0_i32 = arith.constant 0 : i32
    %c0_i32_0 = arith.constant 0 : i32
    %c0_i32_1 = arith.constant 0 : i32
    return %arg0, %c0_i32, %c0_i32_0 : i32, i32, i32
  }
  func.func @transform_1(%arg0: i32) -> (i32, i32, i32) {
    %c0_i32 = arith.constant 0 : i32
    %c0_i32_0 = arith.constant 0 : i32
    %c0_i32_1 = arith.constant 0 : i32
    return %arg0, %c0_i32, %c0_i32_0 : i32, i32, i32
  }
  func.func @transform_2(%arg0: i32) -> (i32, i32) {
    %c0_i32 = arith.constant 0 : i32
    %c0_i32_0 = arith.constant 0 : i32
    %c0_i32_1 = arith.constant 0 : i32
    return %c0_i32, %c0_i32_0 : i32, i32
  }
  func.func @transform_3(%arg0: i32) -> (i32, i32) {
    %c0_i32 = arith.constant 0 : i32
    %c0_i32_0 = arith.constant 0 : i32
    %c0_i32_1 = arith.constant 0 : i32
    return %c0_i32, %c0_i32_0 : i32, i32
  }
  func.func @transform_4(%arg0: i32) -> (i32, i32) {
    %c0_i32 = arith.constant 0 : i32
    %c0_i32_0 = arith.constant 0 : i32
    %c0_i32_1 = arith.constant 0 : i32
    return %c0_i32, %c0_i32_0 : i32, i32
  }
  func.func @transform_5(%arg0: i32) -> (i32, i32) {
    %c0_i32 = arith.constant 0 : i32
    %c0_i32_0 = arith.constant 0 : i32
    %c0_i32_1 = arith.constant 0 : i32
    return %c0_i32, %c0_i32_0 : i32, i32
  }
  func.func @transform_6(%arg0: i32) -> (i32, i32, i32) {
    %c0_i32 = arith.constant 0 : i32
    %c0_i32_0 = arith.constant 0 : i32
    %c0_i32_1 = arith.constant 0 : i32
    return %arg0, %c0_i32, %c0_i32_0 : i32, i32, i32
  }
}

module attributes {stable_mosaic.version = 11 : i64} {
  func.func @_fused_mha_kernel(%arg0: i32, %arg1: memref<1x16x32xf32, #tpu.memory_space<vmem>>, %arg2: memref<1x16x32xf32, #tpu.memory_space<vmem>>, %arg3: memref<32x96xf32, #tpu.memory_space<vmem>>, %arg4: memref<1x96xf32, #tpu.memory_space<vmem>>, %arg5: memref<32x32xf32, #tpu.memory_space<vmem>>, %arg6: memref<1x32xf32, #tpu.memory_space<vmem>>, %arg7: memref<1x32x32xf32, #tpu.memory_space<vmem>>) attributes {dimension_semantics = [#tpu.dimension_semantics<parallel>], iteration_bounds = array<i64: 2>, scalar_prefetch = 0 : i64, scratch_operands = 0 : i64, tpu.core_type = #tpu.core_type<tc>, window_params = [{transform_indices = @transform_0, window_bounds = array<i64: 1, 16, 32>}, {transform_indices = @transform_1, window_bounds = array<i64: 1, 16, 32>}, {pipeline_mode = #tpu.pipeline_mode<synchronous>, transform_indices = @transform_2, window_bounds = array<i64: 32, 96>}, {pipeline_mode = #tpu.pipeline_mode<synchronous>, transform_indices = @transform_3, window_bounds = array<i64: 1, 96>}, {pipeline_mode = #tpu.pipeline_mode<synchronous>, transform_indices = @transform_4, window_bounds = array<i64: 32, 32>}, {pipeline_mode = #tpu.pipeline_mode<synchronous>, transform_indices = @transform_5, window_bounds = array<i64: 1, 32>}, {transform_indices = @transform_6, window_bounds = array<i64: 1, 32, 32>}]} {
    %c0 = arith.constant 0 : index
    %c0_0 = arith.constant 0 : index
    %c0_1 = arith.constant 0 : index
    %0 = vector.load %arg1[%c0, %c0_0, %c0_1] : memref<1x16x32xf32, #tpu.memory_space<vmem>>, vector<1x16x32xf32>
    %c0_2 = arith.constant 0 : index
    %c0_3 = arith.constant 0 : index
    %c0_4 = arith.constant 0 : index
    %1 = vector.load %arg2[%c0_2, %c0_3, %c0_4] : memref<1x16x32xf32, #tpu.memory_space<vmem>>, vector<1x16x32xf32>
    %2 = tpu.concatenate %0, %1 in 1 : vector<1x16x32xf32>, vector<1x16x32xf32> -> vector<1x32x32xf32>
    %3 = vector.shape_cast %2 : vector<1x32x32xf32> to vector<32x32xf32>
    %c0_5 = arith.constant 0 : index
    %c0_6 = arith.constant 0 : index
    %4 = vector.load %arg3[%c0_5, %c0_6] : memref<32x96xf32, #tpu.memory_space<vmem>>, vector<32x96xf32>
    %cst = arith.constant dense<0.000000e+00> : vector<32x96xf32>
    %5 = tpu.matmul %3, %4, %cst {dimension_numbers = #tpu.dot_dimension_numbers<[1], [0], [0], [1], [0, 0, 1, 1], [], []>} : vector<32x32xf32>, vector<32x96xf32>, vector<32x96xf32> -> vector<32x96xf32>
    %c0_7 = arith.constant 0 : index
    %c0_8 = arith.constant 0 : index
    %6 = vector.load %arg4[%c0_7, %c0_8] : memref<1x96xf32, #tpu.memory_space<vmem>>, vector<1x96xf32>
    %7 = vector.broadcast %6 : vector<1x96xf32> to vector<32x96xf32>
    %8 = arith.addf %5, %7 : vector<32x96xf32>
    %9 = vector.extract_strided_slice %8 {offsets = [0, 0], sizes = [32, 32], strides = [1, 1]} : vector<32x96xf32> to vector<32x32xf32>
    %10 = vector.extract_strided_slice %8 {offsets = [0, 32], sizes = [32, 32], strides = [1, 1]} : vector<32x96xf32> to vector<32x32xf32>
    %11 = vector.extract_strided_slice %8 {offsets = [0, 64], sizes = [32, 32], strides = [1, 1]} : vector<32x96xf32> to vector<32x32xf32>
    %12 = vector.extract_strided_slice %9 {offsets = [0, 0], sizes = [32, 8], strides = [1, 1]} : vector<32x32xf32> to vector<32x8xf32>
    %13 = vector.shape_cast %12 : vector<32x8xf32> to vector<1x32x8xf32>
    %14 = vector.extract_strided_slice %10 {offsets = [0, 0], sizes = [32, 8], strides = [1, 1]} : vector<32x32xf32> to vector<32x8xf32>
    %15 = vector.shape_cast %14 : vector<32x8xf32> to vector<1x32x8xf32>
    %16 = vector.extract_strided_slice %11 {offsets = [0, 0], sizes = [32, 8], strides = [1, 1]} : vector<32x32xf32> to vector<32x8xf32>
    %17 = vector.shape_cast %16 : vector<32x8xf32> to vector<1x32x8xf32>
    "tpu.trace_start"() <{level = 10 : i32, message = "nld,nmd->nlm"}> : () -> ()
    %cst_9 = arith.constant dense<0.000000e+00> : vector<1x32x32xf32>
    %18 = tpu.matmul %13, %15, %cst_9 {dimension_numbers = #tpu.dot_dimension_numbers<[2], [2], [1], [1], [0, 0, 0, 1, 1, 1], [0], [0]>} : vector<1x32x8xf32>, vector<1x32x8xf32>, vector<1x32x32xf32> -> vector<1x32x32xf32>
    "tpu.trace_stop"() : () -> ()
    %cst_10 = arith.constant dense<0xFF800000> : vector<1x32xf32>
    %19 = vector.multi_reduction <maximumf>, %18, %cst_10 [2] : vector<1x32x32xf32> to vector<1x32xf32>
    %20 = vector.shape_cast %19 : vector<1x32xf32> to vector<1x32x1xf32>
    %21 = vector.broadcast %20 : vector<1x32x1xf32> to vector<1x32x32xf32>
    %22 = arith.subf %18, %21 : vector<1x32x32xf32>
    %23 = math.exp %22 : vector<1x32x32xf32>
    %cst_11 = arith.constant dense<0.000000e+00> : vector<1x32xf32>
    %24 = vector.multi_reduction <add>, %23, %cst_11 [2] : vector<1x32x32xf32> to vector<1x32xf32>
    %25 = vector.shape_cast %24 : vector<1x32xf32> to vector<1x32x1xf32>
    %26 = tpu.reciprocal %25 {approx = true} : vector<1x32x1xf32> -> vector<1x32x1xf32>
    %27 = vector.broadcast %26 : vector<1x32x1xf32> to vector<1x32x32xf32>
    %28 = arith.mulf %23, %27 : vector<1x32x32xf32>
    "tpu.trace_start"() <{level = 10 : i32, message = "nlm,nmd->nld"}> : () -> ()
    %cst_12 = arith.constant dense<0.000000e+00> : vector<1x32x8xf32>
    %29 = tpu.matmul %28, %17, %cst_12 {dimension_numbers = #tpu.dot_dimension_numbers<[2], [1], [1], [2], [0, 0, 0, 1, 1, 2], [0], [0]>} : vector<1x32x32xf32>, vector<1x32x8xf32>, vector<1x32x8xf32> -> vector<1x32x8xf32>
    "tpu.trace_stop"() : () -> ()
    %30 = vector.shape_cast %29 : vector<1x32x8xf32> to vector<32x8xf32>
    %31 = vector.extract_strided_slice %9 {offsets = [0, 8], sizes = [32, 8], strides = [1, 1]} : vector<32x32xf32> to vector<32x8xf32>
    %32 = vector.shape_cast %31 : vector<32x8xf32> to vector<1x32x8xf32>
    %33 = vector.extract_strided_slice %10 {offsets = [0, 8], sizes = [32, 8], strides = [1, 1]} : vector<32x32xf32> to vector<32x8xf32>
    %34 = vector.shape_cast %33 : vector<32x8xf32> to vector<1x32x8xf32>
    %35 = vector.extract_strided_slice %11 {offsets = [0, 8], sizes = [32, 8], strides = [1, 1]} : vector<32x32xf32> to vector<32x8xf32>
    %36 = vector.shape_cast %35 : vector<32x8xf32> to vector<1x32x8xf32>
    "tpu.trace_start"() <{level = 10 : i32, message = "nld,nmd->nlm"}> : () -> ()
    %cst_13 = arith.constant dense<0.000000e+00> : vector<1x32x32xf32>
    %37 = tpu.matmul %32, %34, %cst_13 {dimension_numbers = #tpu.dot_dimension_numbers<[2], [2], [1], [1], [0, 0, 0, 1, 1, 1], [0], [0]>} : vector<1x32x8xf32>, vector<1x32x8xf32>, vector<1x32x32xf32> -> vector<1x32x32xf32>
    "tpu.trace_stop"() : () -> ()
    %cst_14 = arith.constant dense<0xFF800000> : vector<1x32xf32>
    %38 = vector.multi_reduction <maximumf>, %37, %cst_14 [2] : vector<1x32x32xf32> to vector<1x32xf32>
    %39 = vector.shape_cast %38 : vector<1x32xf32> to vector<1x32x1xf32>
    %40 = vector.broadcast %39 : vector<1x32x1xf32> to vector<1x32x32xf32>
    %41 = arith.subf %37, %40 : vector<1x32x32xf32>
    %42 = math.exp %41 : vector<1x32x32xf32>
    %cst_15 = arith.constant dense<0.000000e+00> : vector<1x32xf32>
    %43 = vector.multi_reduction <add>, %42, %cst_15 [2] : vector<1x32x32xf32> to vector<1x32xf32>
    %44 = vector.shape_cast %43 : vector<1x32xf32> to vector<1x32x1xf32>
    %45 = tpu.reciprocal %44 {approx = true} : vector<1x32x1xf32> -> vector<1x32x1xf32>
    %46 = vector.broadcast %45 : vector<1x32x1xf32> to vector<1x32x32xf32>
    %47 = arith.mulf %42, %46 : vector<1x32x32xf32>
    "tpu.trace_start"() <{level = 10 : i32, message = "nlm,nmd->nld"}> : () -> ()
    %cst_16 = arith.constant dense<0.000000e+00> : vector<1x32x8xf32>
    %48 = tpu.matmul %47, %36, %cst_16 {dimension_numbers = #tpu.dot_dimension_numbers<[2], [1], [1], [2], [0, 0, 0, 1, 1, 2], [0], [0]>} : vector<1x32x32xf32>, vector<1x32x8xf32>, vector<1x32x8xf32> -> vector<1x32x8xf32>
    "tpu.trace_stop"() : () -> ()
    %49 = vector.shape_cast %48 : vector<1x32x8xf32> to vector<32x8xf32>
    %50 = vector.extract_strided_slice %9 {offsets = [0, 16], sizes = [32, 8], strides = [1, 1]} : vector<32x32xf32> to vector<32x8xf32>
    %51 = vector.shape_cast %50 : vector<32x8xf32> to vector<1x32x8xf32>
    %52 = vector.extract_strided_slice %10 {offsets = [0, 16], sizes = [32, 8], strides = [1, 1]} : vector<32x32xf32> to vector<32x8xf32>
    %53 = vector.shape_cast %52 : vector<32x8xf32> to vector<1x32x8xf32>
    %54 = vector.extract_strided_slice %11 {offsets = [0, 16], sizes = [32, 8], strides = [1, 1]} : vector<32x32xf32> to vector<32x8xf32>
    %55 = vector.shape_cast %54 : vector<32x8xf32> to vector<1x32x8xf32>
    "tpu.trace_start"() <{level = 10 : i32, message = "nld,nmd->nlm"}> : () -> ()
    %cst_17 = arith.constant dense<0.000000e+00> : vector<1x32x32xf32>
    %56 = tpu.matmul %51, %53, %cst_17 {dimension_numbers = #tpu.dot_dimension_numbers<[2], [2], [1], [1], [0, 0, 0, 1, 1, 1], [0], [0]>} : vector<1x32x8xf32>, vector<1x32x8xf32>, vector<1x32x32xf32> -> vector<1x32x32xf32>
    "tpu.trace_stop"() : () -> ()
    %cst_18 = arith.constant dense<0xFF800000> : vector<1x32xf32>
    %57 = vector.multi_reduction <maximumf>, %56, %cst_18 [2] : vector<1x32x32xf32> to vector<1x32xf32>
    %58 = vector.shape_cast %57 : vector<1x32xf32> to vector<1x32x1xf32>
    %59 = vector.broadcast %58 : vector<1x32x1xf32> to vector<1x32x32xf32>
    %60 = arith.subf %56, %59 : vector<1x32x32xf32>
    %61 = math.exp %60 : vector<1x32x32xf32>
    %cst_19 = arith.constant dense<0.000000e+00> : vector<1x32xf32>
    %62 = vector.multi_reduction <add>, %61, %cst_19 [2] : vector<1x32x32xf32> to vector<1x32xf32>
    %63 = vector.shape_cast %62 : vector<1x32xf32> to vector<1x32x1xf32>
    %64 = tpu.reciprocal %63 {approx = true} : vector<1x32x1xf32> -> vector<1x32x1xf32>
    %65 = vector.broadcast %64 : vector<1x32x1xf32> to vector<1x32x32xf32>
    %66 = arith.mulf %61, %65 : vector<1x32x32xf32>
    "tpu.trace_start"() <{level = 10 : i32, message = "nlm,nmd->nld"}> : () -> ()
    %cst_20 = arith.constant dense<0.000000e+00> : vector<1x32x8xf32>
    %67 = tpu.matmul %66, %55, %cst_20 {dimension_numbers = #tpu.dot_dimension_numbers<[2], [1], [1], [2], [0, 0, 0, 1, 1, 2], [0], [0]>} : vector<1x32x32xf32>, vector<1x32x8xf32>, vector<1x32x8xf32> -> vector<1x32x8xf32>
    "tpu.trace_stop"() : () -> ()
    %68 = vector.shape_cast %67 : vector<1x32x8xf32> to vector<32x8xf32>
    %69 = vector.extract_strided_slice %9 {offsets = [0, 24], sizes = [32, 8], strides = [1, 1]} : vector<32x32xf32> to vector<32x8xf32>
    %70 = vector.shape_cast %69 : vector<32x8xf32> to vector<1x32x8xf32>
    %71 = vector.extract_strided_slice %10 {offsets = [0, 24], sizes = [32, 8], strides = [1, 1]} : vector<32x32xf32> to vector<32x8xf32>
    %72 = vector.shape_cast %71 : vector<32x8xf32> to vector<1x32x8xf32>
    %73 = vector.extract_strided_slice %11 {offsets = [0, 24], sizes = [32, 8], strides = [1, 1]} : vector<32x32xf32> to vector<32x8xf32>
    %74 = vector.shape_cast %73 : vector<32x8xf32> to vector<1x32x8xf32>
    "tpu.trace_start"() <{level = 10 : i32, message = "nld,nmd->nlm"}> : () -> ()
    %cst_21 = arith.constant dense<0.000000e+00> : vector<1x32x32xf32>
    %75 = tpu.matmul %70, %72, %cst_21 {dimension_numbers = #tpu.dot_dimension_numbers<[2], [2], [1], [1], [0, 0, 0, 1, 1, 1], [0], [0]>} : vector<1x32x8xf32>, vector<1x32x8xf32>, vector<1x32x32xf32> -> vector<1x32x32xf32>
    "tpu.trace_stop"() : () -> ()
    %cst_22 = arith.constant dense<0xFF800000> : vector<1x32xf32>
    %76 = vector.multi_reduction <maximumf>, %75, %cst_22 [2] : vector<1x32x32xf32> to vector<1x32xf32>
    %77 = vector.shape_cast %76 : vector<1x32xf32> to vector<1x32x1xf32>
    %78 = vector.broadcast %77 : vector<1x32x1xf32> to vector<1x32x32xf32>
    %79 = arith.subf %75, %78 : vector<1x32x32xf32>
    %80 = math.exp %79 : vector<1x32x32xf32>
    %cst_23 = arith.constant dense<0.000000e+00> : vector<1x32xf32>
    %81 = vector.multi_reduction <add>, %80, %cst_23 [2] : vector<1x32x32xf32> to vector<1x32xf32>
    %82 = vector.shape_cast %81 : vector<1x32xf32> to vector<1x32x1xf32>
    %83 = tpu.reciprocal %82 {approx = true} : vector<1x32x1xf32> -> vector<1x32x1xf32>
    %84 = vector.broadcast %83 : vector<1x32x1xf32> to vector<1x32x32xf32>
    %85 = arith.mulf %80, %84 : vector<1x32x32xf32>
    "tpu.trace_start"() <{level = 10 : i32, message = "nlm,nmd->nld"}> : () -> ()
    %cst_24 = arith.constant dense<0.000000e+00> : vector<1x32x8xf32>
    %86 = tpu.matmul %85, %74, %cst_24 {dimension_numbers = #tpu.dot_dimension_numbers<[2], [1], [1], [2], [0, 0, 0, 1, 1, 2], [0], [0]>} : vector<1x32x32xf32>, vector<1x32x8xf32>, vector<1x32x8xf32> -> vector<1x32x8xf32>
    "tpu.trace_stop"() : () -> ()
    %87 = vector.shape_cast %86 : vector<1x32x8xf32> to vector<32x8xf32>
    %88 = tpu.concatenate %30, %49, %68, %87 in 1 : vector<32x8xf32>, vector<32x8xf32>, vector<32x8xf32>, vector<32x8xf32> -> vector<32x32xf32>
    %c0_25 = arith.constant 0 : index
    %c0_26 = arith.constant 0 : index
    %89 = vector.load %arg5[%c0_25, %c0_26] : memref<32x32xf32, #tpu.memory_space<vmem>>, vector<32x32xf32>
    %cst_27 = arith.constant dense<0.000000e+00> : vector<32x32xf32>
    %90 = tpu.matmul %88, %89, %cst_27 {dimension_numbers = #tpu.dot_dimension_numbers<[1], [0], [0], [1], [0, 0, 1, 1], [], []>} : vector<32x32xf32>, vector<32x32xf32>, vector<32x32xf32> -> vector<32x32xf32>
    %c0_28 = arith.constant 0 : index
    %c0_29 = arith.constant 0 : index
    %91 = vector.load %arg6[%c0_28, %c0_29] : memref<1x32xf32, #tpu.memory_space<vmem>>, vector<1x32xf32>
    %92 = vector.broadcast %91 : vector<1x32xf32> to vector<32x32xf32>
    %93 = arith.addf %90, %92 : vector<32x32xf32>
    %94 = vector.shape_cast %93 : vector<32x32xf32> to vector<1x32x32xf32>
    %c0_30 = arith.constant 0 : index
    %c0_31 = arith.constant 0 : index
    %c0_32 = arith.constant 0 : index
    %95 = vector.load %arg7[%c0_30, %c0_31, %c0_32] : memref<1x32x32xf32, #tpu.memory_space<vmem>>, vector<1x32x32xf32>
    tpu.vector_store %arg7[%c0_30, %c0_31, %c0_32], %94 {strides = array<i32>} : memref<1x32x32xf32, #tpu.memory_space<vmem>>, vector<1x32x32xf32>,
    return
  }
  func.func @transform_0(%arg0: i32) -> (i32, i32, i32) {
    %c0_i32 = arith.constant 0 : i32
    %c0_i32_0 = arith.constant 0 : i32
    %c0_i32_1 = arith.constant 0 : i32
    return %arg0, %c0_i32, %c0_i32_0 : i32, i32, i32
  }
  func.func @transform_1(%arg0: i32) -> (i32, i32, i32) {
    %c0_i32 = arith.constant 0 : i32
    %c0_i32_0 = arith.constant 0 : i32
    %c0_i32_1 = arith.constant 0 : i32
    return %arg0, %c0_i32, %c0_i32_0 : i32, i32, i32
  }
  func.func @transform_2(%arg0: i32) -> (i32, i32) {
    %c0_i32 = arith.constant 0 : i32
    %c0_i32_0 = arith.constant 0 : i32
    %c0_i32_1 = arith.constant 0 : i32
    return %c0_i32, %c0_i32_0 : i32, i32
  }
  func.func @transform_3(%arg0: i32) -> (i32, i32) {
    %c0_i32 = arith.constant 0 : i32
    %c0_i32_0 = arith.constant 0 : i32
    %c0_i32_1 = arith.constant 0 : i32
    return %c0_i32, %c0_i32_0 : i32, i32
  }
  func.func @transform_4(%arg0: i32) -> (i32, i32) {
    %c0_i32 = arith.constant 0 : i32
    %c0_i32_0 = arith.constant 0 : i32
    %c0_i32_1 = arith.constant 0 : i32
    return %c0_i32, %c0_i32_0 : i32, i32
  }
  func.func @transform_5(%arg0: i32) -> (i32, i32) {
    %c0_i32 = arith.constant 0 : i32
    %c0_i32_0 = arith.constant 0 : i32
    %c0_i32_1 = arith.constant 0 : i32
    return %c0_i32, %c0_i32_0 : i32, i32
  }
  func.func @transform_6(%arg0: i32) -> (i32, i32, i32) {
    %c0_i32 = arith.constant 0 : i32
    %c0_i32_0 = arith.constant 0 : i32
    %c0_i32_1 = arith.constant 0 : i32
    return %arg0, %c0_i32, %c0_i32_0 : i32, i32, i32
  }
}

</mosaic_0001>

<bundles_post_ra>
// kernel: tpu_custom_call.1
= control target key start
LH: loop header
LB: loop body
LE: loop exit
PB: predicated region body
PF: predicated region fallthrough
CT: control target
= control target key end

     0   :  { %s3391_s0 = inlined_call_operand.hbm [shape: f32[2,16,32], index: 0, kind: input, shape index: {}]   ;;  %s3392_s1 = inlined_call_operand.hbm [shape: f32[2,16,32], index: 1, kind: input, shape index: {}]   ;;  %s3393_s2 = inlined_call_operand.hbm [shape: f32[32,96], index: 2, kind: input, shape index: {}]   ;;  %s3394_s3 = inlined_call_operand.hbm [shape: f32[1,96], index: 3, kind: input, shape index: {}]   ;;  %s3395_s4 = inlined_call_operand.hbm [shape: f32[32,32], index: 4, kind: input, shape index: {}]   ;;  %s3396_s5 = inlined_call_operand.hbm [shape: f32[1,32], index: 5, kind: input, shape index: {}]   ;;  %s3397_s6 = inlined_call_operand.hbm [shape: f32[2,32,32], index: 6, kind: output, shape index: {}]  }
   0x1   :  { %3405 = sst [smem:[#allocation20_spill]] %s3391_s0 }
   0x2   :  { %3406 = sst [smem:[#allocation21_spill]] %s3393_s2 }
   0x3   :  { %3407 = sst [smem:[#allocation22_spill]] %s3394_s3 }
   0x4   :  { %11 = vsyncpa [#allocation3], 0 }
   0x5   :  { %13 = vsyncpa [#allocation3 + $0x1], 0 }
   0x6   :  { %14 = vsyncpa [#allocation6], 0 }
   0x7   :  { %16 = vsyncpa [#allocation6 + $0x1], 0 }
   0x8   :  { %17 = vsyncpa [#allocation9], 0 }
   0x9   :  { %18 = vsyncpa [#allocation12], 0 }
   0xa   :  { %19 = vsyncpa [#allocation4], 0 }
   0xb   :  { %21 = vsyncpa [#allocation4 + $0x1], 0  ;;  %s2847_s21 = smov 0   ;;  %s2849_s22 = smov 0  }
   0xc   :  { %s2851_s23 = smov 0   ;;  %s2853_s24 = smov 0  }
   0xd LB: > { %s2868_s25 = sadd.s32 4294967295, %s2786_s24   ;;  %s1876_s26 = sadd.s32 4294967294, %s2786_s24   ;;  %s2786_s24 = sphi %s2853_s24, %s3436_s24   ;;  %s2782_s23 = sphi %s2851_s23, %s3435_s23   ;;  %s2778_s22 = sphi %s2849_s22, %s3434_s22   ;;  %s2774_s21 = sphi %s2847_s21, %s3433_s21  }
   0xe   : > { %p47_p0 = scmp.ne.s32.totalorder %s2778_s22, %s2774_s21  ;;  %p3398_p1 = scmp.eq.s32.totalorder %s2868_s25, 0 }
   0xf   : > { %p187_p3 = scmp.eq.s32.totalorder %s1876_s26, 1  ;;  %p1877_p5 = scmp.ge.s32.totalorder %s2786_s24, 1 }
  0x10   : > { %p2877_p4 = por %p3398_p1, %p47_p0  ;;  %p194_p7 = scmp.lt.s32.totalorder %s2786_s24, 3 }
  0x11   : > { %p2882_p6 = por %p187_p3, %p47_p0  ;;  %s2788_s30 = smov [#allocation7]  }
  0x12   : > { %s3408_s27 = scalar_select %p2877_p4, 1, 0 }
  0x13   : > { %s3409_s28 = scalar_select %p2882_p6, 1, 0 }
  0x14   : > { %p2887_p8 = pnand %p1877_p5, %p194_p7  ;;  %s206_s7 = sshll.u32 %s2788_s30, 4  ;;  %s2891_s7 = int_to_ptr.vmem [resolvable:$true] %s206_s7 }
  0x15   : > { %s2789_s9 = smov [#allocation8]   ;;  %s2790_s11 = smov [#allocation10]  }
  0x16   : > { %s3410_s29 = scalar_select %p2887_p8, 1, 0 }
  0x17   : > { %p2301_p9 = pneg %p2887_p8  ;;  %s220_s10 = sshll.u32 %s2789_s9, 4  ;;  %s2902_s10 = int_to_ptr.vmem [resolvable:$true] %s220_s10 }
  0x18   : > { %s2904_s12 = sshll.u32 %s2790_s11, 4  ;;  %s3412_s2 = sld [smem:[#allocation21_spill]]  ;;  %s231_s12 = int_to_ptr.vmem [resolvable:$true] %s2904_s12 }
  0x19   : > { %p2898_p11 = pnand %p2301_p9, %p3398_p1 }
  0x1b   : > { %p2914_p13 = pneg %p2898_p11 }
  0x1e   : > { %s2532_s15 = scalar_lea.hbm %s3412_s2, 512 }
  0x1f   : > { %p2533_p12 = scmp.ne.s32.totalorder %s3412_s2, %s2532_s15  ;;  %p2539_p5 = scmp.lt.u32.totalorder %s2532_s15, %s3412_s2 }
  0x21   : > { %p2535_p0 = pnand %p2914_p13, %p2533_p12 }
  0x23   : > { %p2536_p3 = pneg %p2535_p0 }
  0x25   : > { %p2541_p7 = pnand %p2539_p5, %p2536_p3 }
  0x27   : > { %2544 = shalt.err (!%p2541_p7)
}
  0x28   : > { %s2545_s26 = scalar_lea.vmem %s2891_s7, 512  ;;  %p2553_p2 = scmp.lt.s32.totalorder %s2891_s7, %s2891_s7 }
  0x29   : > { %p2546_p9 = scmp.ne.s32.totalorder %s2891_s7, %s2545_s26  ;;  %p2554_p6 = scmp.lt.s32.totalorder %s2545_s26, %s2545_s26 }
  0x2b   : > { %p2548_p10 = pnand %p2546_p9, %p2914_p13  ;;  %p2555_p12 = por %p2554_p6, %p2553_p2 }
  0x2d   : > { %p2549_p1 = pneg %p2548_p10 }
  0x2f   : > { %p2556_p0 = pnand %p2555_p12, %p2549_p1 }
  0x31   : > { %2559 = shalt.err (!%p2556_p0)
}
  0x32   : > { %s3401_s30 = smov 128   ;;  %s3403_s9 = smov 8  }
  0x33   : > { %2304 = dma.hbm_to_vmem [thread:$0]  (!%p2898_p11), %s3412_s2, 512, %s2891_s7, [#allocation6], %s3401_s30, %s3401_s30, %s3403_s9  }
  0x34   : > { %s3414_s3 = sld [smem:[#allocation22_spill]] }
  0x3a   : > { %s2560_s16 = scalar_lea.hbm %s3414_s3, 16 }
  0x3b   : > { %p2561_p1 = scmp.ne.s32.totalorder %s3414_s3, %s2560_s16  ;;  %p2567_p10 = scmp.lt.u32.totalorder %s2560_s16, %s3414_s3 }
  0x3d   : > { %p2563_p2 = pnand %p2561_p1, %p2914_p13 }
  0x3f   : > { %p2564_p6 = pneg %p2563_p2 }
  0x41   : > { %p2569_p3 = pnand %p2567_p10, %p2564_p6 }
  0x43   : > { %2572 = shalt.err (!%p2569_p3)
}
  0x44   : > { %s2573_s7 = scalar_lea.vmem %s2902_s10, 16  ;;  %s2580_s11 = scalar_lea.vmem %s2902_s10, 32 }
  0x45   : > { %p2574_p5 = scmp.ne.s32.totalorder %s2902_s10, %s2573_s7  ;;  %p2581_p12 = scmp.lt.s32.totalorder %s2902_s10, %s2902_s10 }
  0x46   : > { %p2582_p0 = scmp.lt.s32.totalorder %s2580_s11, %s2573_s7 }
  0x47   : > { %p2576_p7 = pnand %p2574_p5, %p2914_p13 }
  0x48   : > { %p2583_p1 = por %p2582_p0, %p2581_p12 }
  0x49   : > { %p2577_p9 = pneg %p2576_p7 }
  0x4b   : > { %p2584_p2 = pnand %p2583_p1, %p2577_p9 }
  0x4d   : > { %2587 = shalt.err (!%p2584_p2)
}
  0x4e   : > { %2307 = dma.hbm_to_vmem [thread:$0]  (!%p2898_p11), %s3414_s3, 16, %s2902_s10, [#allocation9]  }
  0x4f   : > { %s2588_s17 = scalar_lea.hbm %s3395_s4, 512 }
  0x50   : > { %p2589_p6 = scmp.ne.s32.totalorder %s3395_s4, %s2588_s17  ;;  %p2595_p5 = scmp.lt.u32.totalorder %s2588_s17, %s3395_s4 }
  0x52   : > { %p2591_p10 = pnand %p2589_p6, %p2914_p13 }
  0x54   : > { %p2592_p3 = pneg %p2591_p10 }
  0x56   : > { %p2597_p7 = pnand %p2595_p5, %p2592_p3 }
  0x58   : > { %2600 = shalt.err (!%p2597_p7)
}
  0x59   : > { %s2601_s11 = scalar_lea.vmem %s231_s12, 512  ;;  %p2609_p1 = scmp.lt.s32.totalorder %s231_s12, %s231_s12 }
  0x5a   : > { %p2602_p9 = scmp.ne.s32.totalorder %s231_s12, %s2601_s11  ;;  %p2610_p2 = scmp.lt.s32.totalorder %s2601_s11, %s2601_s11 }
  0x5c   : > { %p2604_p12 = pnand %p2602_p9, %p2914_p13  ;;  %p2611_p4 = por %p2610_p2, %p2609_p1 }
  0x5e   : > { %p2605_p0 = pneg %p2604_p12 }
  0x60   : > { %p2612_p8 = pnand %p2611_p4, %p2605_p0 }
  0x62   : > { %2615 = shalt.err (!%p2612_p8)
}
  0x63   : > { %2310 = dma.hbm_to_vmem [thread:$0]  (!%p2898_p11), %s3395_s4, 512, %s231_s12, [#allocation9], %s3401_s30, %s3401_s30, %s3403_s9  }
  0x64   : > { %s2793_s14 = smov [#allocation11]   ;;  %s2616_s19 = scalar_lea.hbm %s3396_s5, 16 }
  0x65   : > { %s244_s15 = sshll.u32 %s2793_s14, 4  ;;  %p2617_p4 = scmp.ne.s32.totalorder %s3396_s5, %s2616_s19  ;;  %s245_s15 = int_to_ptr.vmem [resolvable:$true] %s244_s15 }
  0x66   : > { %p2623_p10 = scmp.lt.u32.totalorder %s2616_s19, %s3396_s5 }
  0x67   : > { %p2619_p8 = pnand %p2617_p4, %p2914_p13 }
  0x69   : > { %p2620_p6 = pneg %p2619_p8 }
  0x6b   : > { %p2625_p3 = pnand %p2623_p10, %p2620_p6 }
  0x6d   : > { %2628 = shalt.err (!%p2625_p3)
}
  0x6e   : > { %s2629_s12 = scalar_lea.vmem %s245_s15, 16  ;;  %s2636_s10 = scalar_lea.vmem %s245_s15, 32 }
  0x6f   : > { %p2630_p5 = scmp.ne.s32.totalorder %s245_s15, %s2629_s12  ;;  %p2637_p12 = scmp.lt.s32.totalorder %s245_s15, %s245_s15 }
  0x70   : > { %p2638_p0 = scmp.lt.s32.totalorder %s2636_s10, %s2629_s12 }
  0x71   : > { %p2632_p7 = pnand %p2630_p5, %p2914_p13 }
  0x72   : > { %p2639_p1 = por %p2638_p0, %p2637_p12 }
  0x73   : > { %p2633_p9 = pneg %p2632_p7 }
  0x75   : > { %p2640_p2 = pnand %p2639_p1, %p2633_p9 }
  0x77   : > { %2643 = shalt.err (!%p2640_p2)
}
  0x78   : > { %2313 = dma.hbm_to_vmem [thread:$0]  (!%p2898_p11), %s3396_s5, 16, %s245_s15, [#allocation12]  }
  0x79   : > { %s3003_s18 = sadd.s32 1, %s2786_s24   ;;  %s34_s16 = sadd.s32 1, %s2782_s23 }
  0x7a   : > { %s31_s8 = ssub.s32 %s2786_s24, %s3003_s18  ;;  %p41_p13 = scmp.ne.s32.totalorder %s2782_s23, %s2778_s22 }
  0x7b   : > { %p32_p4 = scmp.eq.s32.totalorder %s31_s8, 0  ;;  %p42_p8 = scmp.eq.s32.totalorder %s2786_s24, 0 }
  0x7c   : > { %p3415_p6 = scmp.eq.s32.totalorder %s2868_s25, 1  ;;  %p2329_p3 = scmp.lt.s32.totalorder %s2786_s24, 2 }
  0x7d   : > { %s3019_s19 = scalar_select %p32_p4, %s2782_s23, %s34_s16  }
  0x7e   : > { %p3013_p10 = por %p3415_p6, %p41_p13  ;;  %p43_p5 = por %p42_p8, %p41_p13 }
  0x7f   : > { %s255_s20 = sand.u32 1, %s2782_s23   ;;  %s1960_s15 = sshll.u32 %s2786_s24, 8 }
  0x80   : > { %s1883_s26 = sshll.u32 %s255_s20, 4  ;;  %s3417_s0 = sld [smem:[#allocation20_spill]] }
  0x81   : > { %s259_s10 = scalar_lea.vmem [#allocation2], %s1883_s26  ;;  %p3030_p11 = pnand %p2329_p3, %p43_p5 }
  0x82   : > { %s266_s13 = sshll.u32 %s259_s10, 4  ;;  %s3037_s7 = scalar_lea.hbm %s3392_s1, %s1960_s15  ;;  %s3028_s13 = int_to_ptr.vmem [resolvable:$true] %s266_s13 }
  0x83   : > { %s280_s11 = scalar_lea.vmem [#allocation5], %s1883_s26  ;;  %s3041_s9 = scalar_lea.sflag [#allocation3], %s255_s20 }
  0x84   : > { %s3039_s30 = sshll.u32 %s280_s11, 4  ;;  %p2646_p9 = pneg %p3030_p11  ;;  %s3073_s30 = int_to_ptr.vmem [resolvable:$true] %s3039_s30 }
  0x86   : > { %s3026_s12 = scalar_lea.hbm %s3417_s0, %s1960_s15  ;;  %s2649_s16 = scalar_lea.hbm %s3417_s0, 512 }
  0x87   : > { %s2644_s10 = scalar_lea.hbm %s3026_s12, 256  ;;  %p2650_p1 = scmp.lt.u32.totalorder %s3026_s12, %s3417_s0 }
  0x88   : > { %p2645_p7 = scmp.ne.s32.totalorder %s3026_s12, %s2644_s10  ;;  %p2651_p2 = scmp.lt.u32.totalorder %s2649_s16, %s2644_s10 }
  0x89   : > { %p2653_p4 = scmp.lt.u32.totalorder %s2644_s10, %s3026_s12 }
  0x8a   : > { %p2647_p12 = pnand %p2646_p9, %p2645_p7  ;;  %p2652_p13 = por %p2651_p2, %p2650_p1 }
  0x8c   : > { %p2648_p0 = pneg %p2647_p12  ;;  %p2654_p8 = por %p2653_p4, %p2652_p13 }
  0x8e   : > { %p2655_p6 = pnand %p2654_p8, %p2648_p0 }
  0x90   : > { %2658 = shalt.err (!%p2655_p6)
}
  0x91   : > { %s2659_s20 = scalar_lea.vmem %s3028_s13, 256  ;;  %s2794_s2 = smov [#allocation2]  }
  0x92   : > { %p2660_p3 = scmp.ne.s32.totalorder %s3028_s13, %s2659_s20  ;;  %s2664_s3 = sshll.u32 %s2794_s2, 4  ;;  %s2665_s3 = int_to_ptr.vmem [resolvable:$false] %s2664_s3 }
  0x93   : > { %s2666_s26 = scalar_lea.vmem %s2665_s3, 512  ;;  %p2667_p12 = scmp.lt.s32.totalorder %s3028_s13, %s2665_s3 }
  0x94   : > { %p2662_p5 = pnand %p2660_p3, %p2646_p9  ;;  %p2668_p1 = scmp.lt.s32.totalorder %s2666_s26, %s2659_s20 }
  0x96   : > { %p2663_p7 = pneg %p2662_p5  ;;  %p2669_p2 = por %p2668_p1, %p2667_p12 }
  0x98   : > { %p2670_p13 = pnand %p2669_p2, %p2663_p7 }
  0x9a   : > { %2673 = shalt.err (!%p2670_p13)
}
  0x9b   : > { %s3419_s11 = smov 8   ;;  %s3420_s10 = smov 128  }
  0x9c   : > { %2317 = dma.hbm_to_vmem [thread:$0]  (!%p3030_p11), %s3026_s12, 256, %s3028_s13, %s3041_s9, %s3420_s10, %s3420_s10, %s3419_s11  }
  0x9d   : > { %s276_s16 = sand.u32 1, %s2786_s24   ;;  %s2674_s15 = scalar_lea.hbm %s3037_s7, 256 }
  0x9e   : > { %s3076_s8 = scalar_lea.sflag [#allocation6], %s276_s16  ;;  %p2675_p0 = scmp.ne.s32.totalorder %s3037_s7, %s2674_s15 }
  0x9f   : > { %s2679_s3 = scalar_lea.hbm %s3392_s1, 512  ;;  %p2680_p6 = scmp.lt.u32.totalorder %s3037_s7, %s3392_s1 }
  0xa0   : > { %p2677_p4 = pnand %p2675_p0, %p2646_p9  ;;  %p2681_p3 = scmp.lt.u32.totalorder %s2679_s3, %s2674_s15 }
  0xa1   : > { %p2683_p7 = scmp.lt.u32.totalorder %s2674_s15, %s3037_s7 }
  0xa2   : > { %p2678_p8 = pneg %p2677_p4  ;;  %p2682_p5 = por %p2681_p3, %p2680_p6 }
  0xa4   : > { %p2684_p12 = por %p2683_p7, %p2682_p5 }
  0xa6   : > { %p2685_p1 = pnand %p2684_p12, %p2678_p8 }
  0xa8   : > { %2688 = shalt.err (!%p2685_p1)
}
  0xa9   : > { %s2689_s9 = scalar_lea.vmem %s3073_s30, 256  ;;  %s2795_s12 = smov [#allocation5]  }
  0xaa   : > { %p2690_p2 = scmp.ne.s32.totalorder %s3073_s30, %s2689_s9  ;;  %s2694_s13 = sshll.u32 %s2795_s12, 4  ;;  %s2695_s13 = int_to_ptr.vmem [resolvable:$false] %s2694_s13 }
  0xab   : > { %s2696_s0 = scalar_lea.vmem %s2695_s13, 512  ;;  %p2697_p4 = scmp.lt.s32.totalorder %s3073_s30, %s2695_s13 }
  0xac   : > { %p2692_p13 = pnand %p2690_p2, %p2646_p9  ;;  %p2698_p6 = scmp.lt.s32.totalorder %s2696_s0, %s2689_s9 }
  0xae   : > { %p2693_p0 = pneg %p2692_p13  ;;  %p2699_p3 = por %p2698_p6, %p2697_p4 }
  0xb0   : > { %p2700_p5 = pnand %p2699_p3, %p2693_p0 }
  0xb2   : > { %2703 = shalt.err (!%p2700_p5)
}
  0xb3   : > { %2320 = dma.hbm_to_vmem [thread:$0]  (!%p3030_p11), %s3037_s7, 256, %s3073_s30, %s3076_s8, %s3420_s10, %s3420_s10, %s3419_s11  }
  0xb4   : > { %p3421_p9 = scmp.ne.s32.totalorder %s3410_s29, 0 }
  0xb5   : > { %s3108_s16 = sand.u32 (!%p3421_p9), 1, %s2778_s22   ;;  %p3422_p8 = scmp.ne.s32.totalorder (!%p3421_p9), %s3408_s27, 0 }
  0xb6   : > { %299 = sbr.rel (%p3421_p9) target bundleno = 3386 (0xd3a), region = 44  ;;  %s1890_s15 = sshll.u32 (!%p3421_p9), %s3108_s16, 4 }
  0xb7   : > { %s302_s20 = scalar_lea.sflag (!%p3421_p9), [#allocation3], %s3108_s16  ;;  %s305_s2 = scalar_lea.vmem (!%p3421_p9), [#allocation2], %s1890_s15 }
  0xbd   : > { %2749 = dma.done.wait (%p3422_p8), %s302_s20, 256  }
  0xbe   : > { %2751 = vsyncadd (%p3422_p8), %s302_s20, 4294967040  ;;  %s310_s30 = sand.u32 1, %s2868_s25   ;;  %s314_s29 = scalar_lea.vmem [#allocation5], %s1890_s15 }
  0xbf   : > { %s311_s14 = scalar_lea.sflag [#allocation6], %s310_s30 }
  0xc0   : > { %2753 = dma.done.wait (%p3422_p8), %s311_s14, 256  }
  0xc1   : > { %2755 = vsyncadd (%p3422_p8), %s311_s14, 4294967040  ;;  %p3423_p11 = scmp.eq.s32.totalorder %s2868_s25, 0 }
  0xc3   : > { %2757 = dma.done.wait (%p3423_p11), [#allocation6], 512   ;;  %p3424_p7 = pmov %p3423_p11 }
  0xc5   : > { %2759 = vsyncadd (%p3424_p7), [#allocation6], 4294966784  ;;  %p3425_p12 = pmov %p3424_p7 }
  0xc6   : > { %p3426_p1 = pmov %p3424_p7 }
  0xc7   : > { %2761 = dma.done.wait (%p3425_p12), [#allocation9], 528  }
  0xc8   : > { %2763 = vsyncadd (%p3426_p1), [#allocation9], 4294966768  ;;  %p3427_p2 = pmov %p3426_p1 }
  0xc9   : > { %p3428_p13 = pmov %p3426_p1 }
  0xca   : > { %2765 = dma.done.wait (%p3427_p2), [#allocation12], 16  }
  0xcb   : > { %2767 = vsyncadd (%p3428_p13), [#allocation12], 4294967280  ;;  %vm379_vm0 = vcmask 261120   ;;  %v368_v0 = vld [vmem:[#allocation7] sm:$0xff]  ;;  %v369_v1 = vld [vmem:[#allocation7 + $0x8] sm:$0xff]  ;;  %vm489_vm1 = vcmask 64512  }
  0xcc   : > { %v370_v2 = vld [vmem:[#allocation7 + $0x10] sm:$0xff]  ;;  %v2183_v3 = vpack.c.bf16 %v369_v1, %v368_v0  ;;  %v371_v4 = vld [vmem:[#allocation7 + $0x18] sm:$0xff]  ;;  %v1897_v10 = vld [vmem:[#allocation8] ss:$0 sm:$0xff]  ;;  %s2796_s27 = smov 96   ;;  %s2797_s7 = smov 64  }
  0xcd   : > { %v364_v5 = vld [vmem:[%s305_s2] sm:$0xff]  ;;  %v2187_v6 = vpack.c.bf16 %v371_v4, %v370_v2  ;;  %v365_v7 = vld [vmem:[%s305_s2 + $0x8] sm:$0xff]  ;;  %vm3159_vm2 = vmpackc.low %vm489_vm1, %vm489_vm1  ;;  %s2798_s11 = smov 88   ;;  %s2799_s10 = smov 120   ;;  %vm1606_vm3 = vcmask 130048   ;;  %vm1611_vm4 = vcmask 195584  }
  0xce   : > { %2051 = vmatprep.mubr.msk.f32.mxu0 %vm379_vm0, %v364_v5  ;;  %2184 = vmatprep.subr.bf16.mxu0 %v2183_v3  ;;  %v366_v8 = vld [vmem:[%s314_s29] sm:$0xff]  ;;  %v367_v9 = vld [vmem:[%s314_s29 + $0x8] sm:$0xff]  ;;  %s2800_s8 = smov 56   ;;  %s2801_s3 = smov 80  }
  0xcf   : > { %2186 = vmatpush3.bf16.msra.mxu0 %v2183_v3  ;;  %s2802_s26 = smov 112   ;;  %s2803_s9 = smov 48  }
  0xd0   : > { %2188 = vmatprep.subr.bf16.mxu0 %v2187_v6  ;;  %s2804_s12 = smov 72   ;;  %s2805_s13 = smov 104  }
  0xd1   : > { %s2806_s0 = smov 40   ;;  %s2807_s15 = smov 8  }
  0xd2   : > { %s2808_s20 = smov 16   ;;  %s2809_s2 = smov 24  }
  0xd3   : > { %2190 = vmatpush3.bf16.msra.mxu0 %v2187_v6  ;;  %s1896_s30 = sshll.u32 %s3108_s16, 5 }
  0xd4   : > { %s363_s14 = scalar_lea.vmem [#allocation13], %s1896_s30 }
  0xd5   : > { %s1742_s29 = sshll.u32 %s363_s14, 4  ;;  %s3339_s29 = int_to_ptr.vmem [resolvable:$true] %s1742_s29 }
  0xd6   : > { %2052 = vmatmul.mubr.msk.f32.vlgmr.msra.gmra.mrb[0].mxu0 %vm379_vm0, %v365_v7 }
  0xd7   : > { %2054 = vmatprep.mubr.msk.f32.mxu0 %vm379_vm0, %v366_v8 }
  0xda   : > { %2055 = vmatmul.mubr.msk.f32.gmra.mrb[2].mxu0 %vm379_vm0, %v367_v9 }
 0x1a9   : > { %v2053_v11 = vpop.f32.mrb[0].mxu0 }
 0x1aa   : > { %v3137_v12 = vadd.f32 %v2053_v11, %v1897_v10  ;;  %v458_v13 = vpop.f32.mrb[1].mxu0 }
 0x1ab   : > { %v3139_v14 = vadd.f32 %v1897_v10, %v458_v13 }
 0x1ad   : > { %2065 = vmatprep.mubr.msk.f32.mxu1 %vm489_vm1, %v3139_v14  ;;  %v3145_v15 = vpack.i.bf16 %v3137_v12, %v3139_v14  ;;  %v2056_v16 = vpop.f32.mrb[2].mxu0 }
 0x1ae   : > { %v3147_v17 = vadd.f32 %v2056_v16, %v1897_v10  ;;  %v468_v18 = vpop.f32.mrb[3].mxu0 }
 0x1af   : > { %2389 = vrot.lane.b32.xlu0 %v3145_v15, %s2796_s27  ;;  %v3150_v19 = vadd.f32 %v1897_v10, %v468_v18 }
 0x1b1   : > { %v3154_v20 = vpack.i.bf16 %v3147_v17, %v3150_v19 }
 0x1b3   : > { %2394 = vrot.lane.b32.xlu0 %v3154_v20, %s2796_s27  ;;  %s1962_s27 = sshll.u32 %s2868_s25, 9  ;;  %s1729_s25 = scalar_lea.sflag [#allocation4], %s3108_s16 }
 0x221   : > { %v2390_v21 = vpop.permute.xlu0 %2389 }
 0x222   : > { %v2392_v22 = vunpack.i.h.bf16 %v2390_v21  ;;  %v2391_v23 = vunpack.i.l.bf16 %v2390_v21 }
 0x224   : > { %v2191_v25 = vpack.c.bf16 %v2392_v22, %v2391_v23 }
 0x225   : > { %v2395_v26 = vpop.permute.xlu0 %2394 }
 0x226   : > { %2193 = vmatprep.subr.msk.bf16.mxu1 %vm3159_vm2, %v2191_v25  ;;  %v2397_v27 = vunpack.i.h.bf16 %v2395_v26  ;;  %v2396_v28 = vunpack.i.l.bf16 %v2395_v26 }
 0x227   : > { %2196 = vmatpush3.bf16.xpose.msk.msra.mxu1 %vm3159_vm2, %v2191_v25 }
 0x228   : > { %v2197_v29 = vpack.c.bf16 %v2397_v27, %v2396_v28 }
 0x22a   : > { %2199 = vmatprep.subr.msk.bf16.mxu1 %vm3159_vm2, %v2197_v29 }
 0x22f   : > { %2202 = vmatpush3.bf16.xpose.msk.msra.mxu1 %vm3159_vm2, %v2197_v29 }
 0x236   : > { %2066 = vmatmul.mubr.msk.f32.vlgmr.msra.gmra.mrb[0].mxu1 %vm489_vm1, %v3137_v12 }
 0x237   : > { %2068 = vmatprep.mubr.msk.f32.mxu1 %vm489_vm1, %v3150_v19 }
 0x23a   : > { %2069 = vmatmul.mubr.msk.f32.gmra.mrb[2].mxu1 %vm489_vm1, %v3147_v17 }
 0x309   : > { %v2067_v30 = vpop.f32.mrb[0].mxu1 }
 0x30a   : > { %v572_v31 = vpop.f32.mrb[1].mxu1  ;;  %v594_v35 = vsel %vm379_vm0, %v2067_v30, -inf }
 0x30b   : > { %v591_v32 = vsel %vm379_vm0, %v572_v31, -inf }
 0x30c   : > { %592 = vmax.xlane.f32.xlu1 %v591_v32 }
 0x30d   : > { %v2070_v33 = vpop.f32.mrb[2].mxu1 }
 0x30e   : > { %v582_v34 = vpop.f32.mrb[3].mxu1  ;;  %v600_v37 = vsel %vm379_vm0, %v2070_v33, -inf }
 0x30f   : > { %v597_v36 = vsel %vm379_vm0, %v582_v34, -inf }
 0x310   : > { %595 = vmax.xlane.f32.xlu1 %v594_v35  ;;  %598 = vmax.xlane.f32.xlu0 %v597_v36 }
 0x314   : > { %601 = vmax.xlane.f32.xlu1 %v600_v37 }
 0x325   : > { %2399 = vrot.lane.b32.xlu1 %v3145_v15, %s2797_s7 }
 0x326   : > { %2404 = vrot.lane.b32.xlu0 %v3154_v20, %s2797_s7 }
 0x329   : > { %2409 = vrot.lane.b32.xlu1 %v3145_v15, %s2798_s11 }
 0x32a   : > { %748 = vrot.lane.b32.xlu0 %v3150_v19, %s2799_s10 }
 0x32d   : > { %2414 = vrot.lane.b32.xlu1 %v3154_v20, %s2798_s11 }
 0x331   : > { %744 = vrot.lane.b32.xlu1 %v3139_v14, %s2799_s10 }
 0x399   : > { %v593_v38 = vpop.xlane.xlu1 %592 }
 0x39a   : > { %v603_v39 = vsub.f32 %v572_v31, %v593_v38 }
 0x39c   : > { %v607_v43 = vmul.f32 1.442695, %v603_v39 }
 0x39d   : > { %v596_v40 = vpop.xlane.xlu1 %595  ;;  %v599_v41 = vpop.xlane.xlu0 %598 }
 0x39e   : > { %v604_v42 = vsub.f32 %v2067_v30, %v596_v40  ;;  %v605_v48 = vsub.f32 %v582_v34, %v599_v41 }
 0x3a0   : > { %v609_v44 = vmul.f32 1.442695, %v604_v42  ;;  %v611_v55 = vmul.f32 1.442695, %v605_v48 }
 0x3a1   : > { %v602_v45 = vpop.xlane.xlu1 %601  ;;  %v2405_v47 = vpop.permute.xlu0 %2404 }
 0x3a2   : > { %2468 = vpow2.f32 %v609_v44  ;;  %v606_v46 = vsub.f32 %v2070_v33, %v602_v45  ;;  %v2407_v51 = vunpack.i.h.bf16 %v2405_v47  ;;  %v2406_v52 = vunpack.i.l.bf16 %v2405_v47 }
 0x3a3   : > { %2470 = vpow2.f32 %v607_v43 }
 0x3a4   : > { %v613_v49 = vmul.f32 1.442695, %v606_v46  ;;  %v2207_v58 = vpack.c.bf16 %v2407_v51, %v2406_v52 }
 0x3a5   : > { %v2400_v50 = vpop.permute.xlu1 %2399  ;;  %v749_v31 = vpop.permute.xlu0 %748 }
 0x3a6   : > { %v2402_v53 = vunpack.i.h.bf16 %v2400_v50  ;;  %v2401_v54 = vunpack.i.l.bf16 %v2400_v50  ;;  %2472 = vpow2.f32 %v613_v49 }
 0x3a7   : > { %2474 = vpow2.f32 %v611_v55 }
 0x3a8   : > { %v2203_v56 = vpack.c.bf16 %v2402_v53, %v2401_v54 }
 0x3a9   : > { %v2410_v57 = vpop.permute.xlu1 %2409 }
 0x3aa   : > { %v2412_v59 = vunpack.i.h.bf16 %v2410_v57  ;;  %v2411_v60 = vunpack.i.l.bf16 %v2410_v57  ;;  %2204 = vmatprep.subr.bf16.mxu0 %v2203_v56 }
 0x3ab   : > { %2206 = vmatpush3.bf16.msra.mxu0 %v2203_v56 }
 0x3ac   : > { %v2469_v61 = vpop.eup %2468  ;;  %2208 = vmatprep.subr.bf16.mxu0 %v2207_v58  ;;  %v2211_v0 = vpack.c.bf16 %v2412_v59, %v2411_v60 }
 0x3ad   : > { %v618_v62 = vsel %vm379_vm0, %v2469_v61, 0.0  ;;  %v2471_v63 = vpop.eup %2470  ;;  %v2415_v6 = vpop.permute.xlu1 %2414 }
 0x3ae   : > { %619 = vadd.xlane.f32.xlu1 %v618_v62  ;;  %v615_v1 = vsel %vm379_vm0, %v2471_v63, 0.0  ;;  %v2417_v18 = vunpack.i.h.bf16 %v2415_v6  ;;  %v2416_v21 = vunpack.i.l.bf16 %v2415_v6 }
 0x3af   : > { %2210 = vmatpush3.bf16.msra.mxu0 %v2207_v58 }
 0x3b0   : > { %2213 = vmatprep.subr.msk.bf16.mxu0 %vm3159_vm2, %v2211_v0  ;;  %v2473_v2 = vpop.eup %2472  ;;  %v2217_v25 = vpack.c.bf16 %v2417_v18, %v2416_v21 }
 0x3b1   : > { %v624_v3 = vsel %vm379_vm0, %v2473_v2, 0.0  ;;  %v2475_v4 = vpop.eup %2474  ;;  %v745_v7 = vpop.permute.xlu1 %744 }
 0x3b2   : > { %616 = vadd.xlane.f32.xlu1 %v615_v1  ;;  %v621_v5 = vsel %vm379_vm0, %v2475_v4, 0.0 }
 0x3b6   : > { %625 = vadd.xlane.f32.xlu1 %v624_v3 }
 0x3ba   : > { %622 = vadd.xlane.f32.xlu1 %v621_v5 }
 0x3cb   : > { %746 = vrot.lane.b32.xlu1 %v3137_v12, %s2799_s10 }
 0x3cf   : > { %750 = vrot.lane.b32.xlu1 %v3147_v17, %s2799_s10  ;;  %s3344_s10 = scalar_lea.hbm %s3397_s6, %s1962_s27 }
 0x43b   : > { %v620_v8 = vpop.xlane.xlu1 %619 }
 0x43c   : > { %2476 = vrcp.f32 %v620_v8 }
 0x43f   : > { %v617_v9 = vpop.xlane.xlu1 %616 }
 0x440   : > { %2478 = vrcp.f32 %v617_v9 }
 0x443   : > { %v626_v10 = vpop.xlane.xlu1 %625 }
 0x444   : > { %2480 = vrcp.f32 %v626_v10 }
 0x446   : > { %v2477_v13 = vpop.eup %2476 }
 0x447   : > { %v623_v11 = vpop.xlane.xlu1 %622  ;;  %v632_v23 = vmul.f32 %v2477_v13, %v2469_v61 }
 0x448   : > { %2482 = vrcp.f32 %v623_v11 }
 0x44a   : > { %v2479_v16 = vpop.eup %2478 }
 0x44b   : > { %v631_v22 = vmul.f32 %v2479_v16, %v2471_v63  ;;  %v747_v30 = vpop.permute.xlu1 %746 }
 0x44d   : > { %2079 = vmatprep.mubr.msk.f32.mxu0 %vm379_vm0, %v631_v22 }
 0x44e   : > { %2080 = vmatmul.mubr.msk.f32.vlgmr.msra.gmra.mrb[4].mxu0 %vm379_vm0, %v632_v23  ;;  %v2481_v26 = vpop.eup %2480 }
 0x44f   : > { %2216 = vmatpush3.bf16.xpose.msk.msra.mxu0 %vm3159_vm2, %v2211_v0  ;;  %v634_v29 = vmul.f32 %v2481_v26, %v2473_v2  ;;  %v751_v32 = vpop.permute.xlu1 %750 }
 0x450   : > { %2219 = vmatprep.subr.msk.bf16.mxu0 %vm3159_vm2, %v2217_v25 }
 0x452   : > { %v2483_v27 = vpop.eup %2482 }
 0x453   : > { %v633_v28 = vmul.f32 %v2483_v27, %v2475_v4 }
 0x455   : > { %2082 = vmatprep.mubr.msk.f32.mxu0 %vm379_vm0, %v633_v28 }
 0x456   : > { %2083 = vmatmul.mubr.msk.f32.gmra.mrb[6].mxu0 %vm379_vm0, %v634_v29 }
 0x457   : > { %2222 = vmatpush3.bf16.xpose.msk.msra.mxu0 %vm3159_vm2, %v2217_v25  ;;  %2093 = vmatprep.mubr.msk.f32.mxu0 %vm489_vm1, %v745_v7 }
 0x45e   : > { %2094 = vmatmul.mubr.msk.f32.vlgmr.msra.gmra.mrb[8].mxu0 %vm489_vm1, %v747_v30 }
 0x45f   : > { %2096 = vmatprep.mubr.msk.f32.mxu0 %vm489_vm1, %v749_v31 }
 0x462   : > { %2097 = vmatmul.mubr.msk.f32.gmra.mrb[10].mxu0 %vm489_vm1, %v751_v32 }
 0x521   : > { %v3213_v33 = vpop.f32.mrb[4].mxu0 }
 0x522   : > { %v3215_v34 = vpop.f32.mrb[5].mxu0 }
 0x529   : > { %v3217_v35 = vpop.f32.mrb[6].mxu0 }
 0x52a   : > { %v3219_v36 = vpop.f32.mrb[7].mxu0 }
 0x531   : > { %v2095_v37 = vpop.f32.mrb[8].mxu0 }
 0x532   : > { %v842_v38 = vpop.f32.mrb[9].mxu0  ;;  %v864_v39 = vsel %vm379_vm0, %v2095_v37, -inf }
 0x533   : > { %865 = vmax.xlane.f32.xlu1 %v864_v39  ;;  %v861_v40 = vsel %vm379_vm0, %v842_v38, -inf }
 0x534   : > { %862 = vmax.xlane.f32.xlu0 %v861_v40 }
 0x535   : > { %v2098_v41 = vpop.f32.mrb[10].mxu0 }
 0x536   : > { %v852_v42 = vpop.f32.mrb[11].mxu0  ;;  %v870_v44 = vsel %vm379_vm0, %v2098_v41, -inf }
 0x537   : > { %v867_v43 = vsel %vm379_vm0, %v852_v42, -inf }
 0x538   : > { %868 = vmax.xlane.f32.xlu0 %v867_v43 }
 0x53c   : > { %871 = vmax.xlane.f32.xlu0 %v870_v44 }
 0x544   : > { %2419 = vrot.lane.b32.xlu1 %v3145_v15, %s2800_s8 }
 0x548   : > { %2429 = vrot.lane.b32.xlu1 %v3145_v15, %s2801_s3 }
 0x5c0   : > { %v866_v45 = vpop.xlane.xlu1 %865 }
 0x5c1   : > { %v874_v46 = vsub.f32 %v2095_v37, %v866_v45  ;;  %v863_v47 = vpop.xlane.xlu0 %862 }
 0x5c2   : > { %v873_v48 = vsub.f32 %v842_v38, %v863_v47 }
 0x5c3   : > { %v879_v49 = vmul.f32 1.442695, %v874_v46 }
 0x5c4   : > { %v877_v50 = vmul.f32 1.442695, %v873_v48  ;;  %v2420_v51 = vpop.permute.xlu1 %2419 }
 0x5c5   : > { %2484 = vpow2.f32 %v879_v49  ;;  %v2422_v52 = vunpack.i.h.bf16 %v2420_v51  ;;  %v2421_v53 = vunpack.i.l.bf16 %v2420_v51  ;;  %v869_v59 = vpop.xlane.xlu0 %868 }
 0x5c6   : > { %2486 = vpow2.f32 %v877_v50  ;;  %v875_v62 = vsub.f32 %v852_v42, %v869_v59 }
 0x5c7   : > { %v2223_v54 = vpack.c.bf16 %v2422_v52, %v2421_v53 }
 0x5c8   : > { %v881_v0 = vmul.f32 1.442695, %v875_v62  ;;  %v2430_v5 = vpop.permute.xlu1 %2429 }
 0x5c9   : > { %2224 = vmatprep.subr.bf16.mxu1 %v2223_v54  ;;  %v872_v60 = vpop.xlane.xlu0 %871  ;;  %v2432_v9 = vunpack.i.h.bf16 %v2430_v5  ;;  %v2431_v10 = vunpack.i.l.bf16 %v2430_v5 }
 0x5ca   : > { %2226 = vmatpush3.bf16.msra.mxu1 %v2223_v54  ;;  %v876_v61 = vsub.f32 %v2098_v41, %v872_v60 }
 0x5cb   : > { %v2231_v18 = vpack.c.bf16 %v2432_v9, %v2431_v10 }
 0x5cc   : > { %v883_v63 = vmul.f32 1.442695, %v876_v61 }
 0x5ce   : > { %2488 = vpow2.f32 %v883_v63 }
 0x5cf   : > { %v2485_v55 = vpop.eup %2484  ;;  %2490 = vpow2.f32 %v881_v0 }
 0x5d0   : > { %v2487_v56 = vpop.eup %2486  ;;  %v888_v57 = vsel %vm379_vm0, %v2485_v55, 0.0 }
 0x5d1   : > { %889 = vadd.xlane.f32.xlu0 %v888_v57  ;;  %v885_v58 = vsel %vm379_vm0, %v2487_v56, 0.0 }
 0x5d2   : > { %886 = vadd.xlane.f32.xlu1 %v885_v58 }
 0x5d8   : > { %v2489_v1 = vpop.eup %2488 }
 0x5d9   : > { %v2491_v2 = vpop.eup %2490  ;;  %v894_v3 = vsel %vm379_vm0, %v2489_v1, 0.0 }
 0x5da   : > { %v891_v4 = vsel %vm379_vm0, %v2491_v2, 0.0 }
 0x5e3   : > { %2434 = vrot.lane.b32.xlu1 %v3154_v20, %s2801_s3  ;;  %s2810_s3 = smov [#allocation13]  }
 0x5e7   : > { %2424 = vrot.lane.b32.xlu0 %v3154_v20, %s2800_s8  ;;  %s2704_s8 = scalar_lea.vmem %s3339_s29, 512 }
 0x5e8   : > { %p2705_p0 = scmp.ne.s32.totalorder %s3339_s29, %s2704_s8 }
 0x5ea   : > { %p2706_p4 = pnand %p2705_p0, %p3013_p10 }
 0x5ec   : > { %p2707_p6 = pneg %p2706_p4 }
 0x606   : > { %895 = vadd.xlane.f32.xlu0 %v894_v3 }
 0x607   : > { %892 = vadd.xlane.f32.xlu1 %v891_v4 }
 0x618   : > { %1016 = vrot.lane.b32.xlu1 %v3137_v12, %s2802_s26 }
 0x61c   : > { %1020 = vrot.lane.b32.xlu1 %v3147_v17, %s2802_s26  ;;  %1014 = vrot.lane.b32.xlu0 %v3139_v14, %s2802_s26 }
 0x620   : > { %1018 = vrot.lane.b32.xlu0 %v3150_v19, %s2802_s26  ;;  %s2708_s26 = sshll.u32 %s2810_s3, 4  ;;  %s2709_s26 = int_to_ptr.vmem [resolvable:$false] %s2708_s26 }
 0x621   : > { %p2711_p3 = scmp.lt.s32.totalorder %s3339_s29, %s2709_s26 }
 0x65e   : > { %v890_v6 = vpop.xlane.xlu0 %889 }
 0x65f   : > { %2492 = vrcp.f32 %v890_v6  ;;  %v887_v7 = vpop.xlane.xlu1 %886 }
 0x660   : > { %2494 = vrcp.f32 %v887_v7 }
 0x662   : > { %v2425_v8 = vpop.permute.xlu0 %2424 }
 0x663   : > { %v2427_v11 = vunpack.i.h.bf16 %v2425_v8  ;;  %v2426_v13 = vunpack.i.l.bf16 %v2425_v8  ;;  %v2435_v22 = vpop.permute.xlu1 %2434 }
 0x664   : > { %v2437_v27 = vunpack.i.h.bf16 %v2435_v22  ;;  %v2436_v28 = vunpack.i.l.bf16 %v2435_v22 }
 0x665   : > { %v2227_v16 = vpack.c.bf16 %v2427_v11, %v2426_v13 }
 0x666   : > { %v2237_v29 = vpack.c.bf16 %v2437_v27, %v2436_v28 }
 0x667   : > { %2228 = vmatprep.subr.bf16.mxu1 %v2227_v16 }
 0x668   : > { %2230 = vmatpush3.bf16.msra.mxu1 %v2227_v16 }
 0x669   : > { %v2493_v21 = vpop.eup %2492  ;;  %2233 = vmatprep.subr.msk.bf16.mxu1 %vm3159_vm2, %v2231_v18 }
 0x66a   : > { %v2495_v23 = vpop.eup %2494  ;;  %v902_v26 = vmul.f32 %v2493_v21, %v2485_v55 }
 0x66b   : > { %v901_v25 = vmul.f32 %v2495_v23, %v2487_v56 }
 0x66d   : > { %2107 = vmatprep.mubr.msk.f32.mxu1 %vm379_vm0, %v901_v25 }
 0x66e   : > { %2108 = vmatmul.mubr.msk.f32.vlgmr.msra.gmra.mrb[4].mxu1 %vm379_vm0, %v902_v26 }
 0x671   : > { %2236 = vmatpush3.bf16.xpose.msk.msra.mxu1 %vm3159_vm2, %v2231_v18 }
 0x672   : > { %2239 = vmatprep.subr.msk.bf16.mxu1 %vm3159_vm2, %v2237_v29 }
 0x679   : > { %2242 = vmatpush3.bf16.xpose.msk.msra.mxu1 %vm3159_vm2, %v2237_v29 }
 0x693   : > { %v896_v30 = vpop.xlane.xlu0 %895 }
 0x694   : > { %2496 = vrcp.f32 %v896_v30  ;;  %v893_v31 = vpop.xlane.xlu1 %892 }
 0x695   : > { %2498 = vrcp.f32 %v893_v31 }
 0x697   : > { %v1015_v39 = vpop.permute.xlu0 %1014 }
 0x698   : > { %v1017_v41 = vpop.permute.xlu1 %1016 }
 0x69b   : > { %v1019_v42 = vpop.permute.xlu0 %1018 }
 0x69c   : > { %v1021_v43 = vpop.permute.xlu1 %1020 }
 0x69e   : > { %v2497_v32 = vpop.eup %2496 }
 0x69f   : > { %v2499_v37 = vpop.eup %2498  ;;  %v904_v40 = vmul.f32 %v2497_v32, %v2489_v1 }
 0x6a0   : > { %v903_v38 = vmul.f32 %v2499_v37, %v2491_v2 }
 0x6a2   : > { %2110 = vmatprep.mubr.msk.f32.mxu1 %vm379_vm0, %v903_v38 }
 0x6a3   : > { %2111 = vmatmul.mubr.msk.f32.gmra.mrb[6].mxu1 %vm379_vm0, %v904_v40 }
 0x6a4   : > { %2121 = vmatprep.mubr.msk.f32.mxu1 %vm489_vm1, %v1015_v39 }
 0x6a7   : > { %2122 = vmatmul.mubr.msk.f32.vlgmr.msra.gmra.mrb[8].mxu1 %vm489_vm1, %v1017_v41 }
 0x6a8   : > { %2124 = vmatprep.mubr.msk.f32.mxu1 %vm489_vm1, %v1019_v42 }
 0x6ab   : > { %2125 = vmatmul.mubr.msk.f32.gmra.mrb[10].mxu1 %vm489_vm1, %v1021_v43 }
 0x741   : > { %v3253_v44 = vpop.f32.mrb[4].mxu1 }
 0x742   : > { %v3255_v45 = vpop.f32.mrb[5].mxu1 }
 0x776   : > { %v3257_v46 = vpop.f32.mrb[6].mxu1 }
 0x777   : > { %v3259_v47 = vpop.f32.mrb[7].mxu1 }
 0x77a   : > { %v2123_v48 = vpop.f32.mrb[8].mxu1 }
 0x77b   : > { %v1112_v49 = vpop.f32.mrb[9].mxu1  ;;  %v1134_v50 = vsel %vm379_vm0, %v2123_v48, -inf }
 0x77c   : > { %1135 = vmax.xlane.f32.xlu1 %v1134_v50  ;;  %v1131_v51 = vsel %vm379_vm0, %v1112_v49, -inf }
 0x77d   : > { %1132 = vmax.xlane.f32.xlu0 %v1131_v51 }
 0x77e   : > { %v2126_v52 = vpop.f32.mrb[10].mxu1 }
 0x77f   : > { %v1122_v53 = vpop.f32.mrb[11].mxu1  ;;  %v1140_v55 = vsel %vm379_vm0, %v2126_v52, -inf }
 0x780   : > { %v1137_v54 = vsel %vm379_vm0, %v1122_v53, -inf }
 0x781   : > { %1138 = vmax.xlane.f32.xlu0 %v1137_v54 }
 0x785   : > { %1141 = vmax.xlane.f32.xlu0 %v1140_v55 }
 0x78d   : > { %2439 = vrot.lane.b32.xlu1 %v3145_v15, %s2803_s9 }
 0x791   : > { %2449 = vrot.lane.b32.xlu1 %v3145_v15, %s2804_s12 }
 0x795   : > { %2454 = vrot.lane.b32.xlu1 %v3154_v20, %s2804_s12 }
 0x809   : > { %v1136_v56 = vpop.xlane.xlu1 %1135 }
 0x80a   : > { %v1144_v57 = vsub.f32 %v2123_v48, %v1136_v56  ;;  %v1133_v58 = vpop.xlane.xlu0 %1132 }
 0x80b   : > { %v1143_v59 = vsub.f32 %v1112_v49, %v1133_v58 }
 0x80c   : > { %v1149_v60 = vmul.f32 1.442695, %v1144_v57 }
 0x80d   : > { %v1147_v61 = vmul.f32 1.442695, %v1143_v59  ;;  %v2440_v62 = vpop.permute.xlu1 %2439 }
 0x80e   : > { %2500 = vpow2.f32 %v1149_v60  ;;  %v2442_v63 = vunpack.i.h.bf16 %v2440_v62  ;;  %v2441_v0 = vunpack.i.l.bf16 %v2440_v62  ;;  %v1139_v6 = vpop.xlane.xlu0 %1138 }
 0x80f   : > { %2502 = vpow2.f32 %v1147_v61  ;;  %v1145_v9 = vsub.f32 %v1122_v53, %v1139_v6 }
 0x810   : > { %v2243_v1 = vpack.c.bf16 %v2442_v63, %v2441_v0 }
 0x811   : > { %v1151_v11 = vmul.f32 1.442695, %v1145_v9 }
 0x812   : > { %2244 = vmatprep.subr.bf16.mxu0 %v2243_v1  ;;  %v1142_v7 = vpop.xlane.xlu0 %1141 }
 0x813   : > { %2246 = vmatpush3.bf16.msra.mxu0 %v2243_v1  ;;  %v1146_v8 = vsub.f32 %v2126_v52, %v1142_v7 }
 0x815   : > { %v1153_v10 = vmul.f32 1.442695, %v1146_v8 }
 0x817   : > { %2504 = vpow2.f32 %v1153_v10 }
 0x818   : > { %v2501_v2 = vpop.eup %2500  ;;  %2506 = vpow2.f32 %v1151_v11 }
 0x819   : > { %v2503_v3 = vpop.eup %2502  ;;  %v1158_v4 = vsel %vm379_vm0, %v2501_v2, 0.0 }
 0x81a   : > { %1159 = vadd.xlane.f32.xlu0 %v1158_v4  ;;  %v1155_v5 = vsel %vm379_vm0, %v2503_v3, 0.0 }
 0x81b   : > { %1156 = vadd.xlane.f32.xlu1 %v1155_v5 }
 0x821   : > { %v2505_v13 = vpop.eup %2504 }
 0x822   : > { %v2507_v16 = vpop.eup %2506  ;;  %v1164_v18 = vsel %vm379_vm0, %v2505_v13, 0.0 }
 0x823   : > { %v1161_v21 = vsel %vm379_vm0, %v2507_v16, 0.0 }
 0x82c   : > { %1286 = vrot.lane.b32.xlu1 %v3137_v12, %s2805_s13  ;;  %v2450_v12 = vpop.permute.xlu1 %2449 }
 0x82d   : > { %v2452_v27 = vunpack.i.h.bf16 %v2450_v12  ;;  %v2451_v28 = vunpack.i.l.bf16 %v2450_v12 }
 0x82f   : > { %v2251_v32 = vpack.c.bf16 %v2452_v27, %v2451_v28 }
 0x830   : > { %2444 = vrot.lane.b32.xlu0 %v3154_v20, %s2803_s9  ;;  %v2455_v22 = vpop.permute.xlu1 %2454  ;;  %s2710_s9 = scalar_lea.vmem %s2709_s26, 1024 }
 0x831   : > { %v2457_v37 = vunpack.i.h.bf16 %v2455_v22  ;;  %v2456_v38 = vunpack.i.l.bf16 %v2455_v22  ;;  %p2712_p5 = scmp.lt.s32.totalorder %s2710_s9, %s2704_s8 }
 0x833   : > { %v2257_v40 = vpack.c.bf16 %v2457_v37, %v2456_v38  ;;  %p2713_p9 = por %p2712_p5, %p2711_p3 }
 0x835   : > { %p2714_p8 = pnand %p2713_p9, %p2707_p6 }
 0x84f   : > { %1165 = vadd.xlane.f32.xlu0 %v1164_v18 }
 0x850   : > { %1162 = vadd.xlane.f32.xlu1 %v1161_v21 }
 0x861   : > { %1290 = vrot.lane.b32.xlu1 %v3147_v17, %s2805_s13 }
 0x865   : > { %1284 = vrot.lane.b32.xlu0 %v3139_v14, %s2805_s13 }
 0x869   : > { %1288 = vrot.lane.b32.xlu0 %v3150_v19, %s2805_s13 }
 0x8a7   : > { %v1160_v23 = vpop.xlane.xlu0 %1159 }
 0x8a8   : > { %2508 = vrcp.f32 %v1160_v23  ;;  %v1157_v25 = vpop.xlane.xlu1 %1156 }
 0x8a9   : > { %2510 = vrcp.f32 %v1157_v25 }
 0x8ab   : > { %v2445_v26 = vpop.permute.xlu0 %2444 }
 0x8ac   : > { %v2447_v29 = vunpack.i.h.bf16 %v2445_v26  ;;  %v2446_v30 = vunpack.i.l.bf16 %v2445_v26  ;;  %v1287_v41 = vpop.permute.xlu1 %1286 }
 0x8ae   : > { %v2247_v31 = vpack.c.bf16 %v2447_v29, %v2446_v30 }
 0x8b0   : > { %2248 = vmatprep.subr.bf16.mxu0 %v2247_v31 }
 0x8b1   : > { %2250 = vmatpush3.bf16.msra.mxu0 %v2247_v31 }
 0x8b2   : > { %v2509_v17 = vpop.eup %2508  ;;  %2253 = vmatprep.subr.msk.bf16.mxu0 %vm3159_vm2, %v2251_v32 }
 0x8b3   : > { %v2511_v14 = vpop.eup %2510  ;;  %v1172_v39 = vmul.f32 %v2509_v17, %v2501_v2 }
 0x8b4   : > { %v1171_v19 = vmul.f32 %v2511_v14, %v2503_v3 }
 0x8b6   : > { %2135 = vmatprep.mubr.msk.f32.mxu0 %vm379_vm0, %v1171_v19 }
 0x8b7   : > { %2136 = vmatmul.mubr.msk.f32.vlgmr.msra.gmra.mrb[12].mxu0 %vm379_vm0, %v1172_v39 }
 0x8ba   : > { %2256 = vmatpush3.bf16.xpose.msk.msra.mxu0 %vm3159_vm2, %v2251_v32 }
 0x8bb   : > { %2259 = vmatprep.subr.msk.bf16.mxu0 %vm3159_vm2, %v2257_v40 }
 0x8c2   : > { %2262 = vmatpush3.bf16.xpose.msk.msra.mxu0 %vm3159_vm2, %v2257_v40 }
 0x8dc   : > { %v1166_v42 = vpop.xlane.xlu0 %1165 }
 0x8dd   : > { %2512 = vrcp.f32 %v1166_v42  ;;  %v1163_v43 = vpop.xlane.xlu1 %1162 }
 0x8de   : > { %2514 = vrcp.f32 %v1163_v43  ;;  %v1616_v43 = vld [vmem:[#allocation10] sm:$0xff] }
 0x8e0   : > { %v1285_v51 = vpop.permute.xlu0 %1284 }
 0x8e1   : > { %v1291_v24 = vpop.permute.xlu1 %1290 }
 0x8e4   : > { %v1289_v53 = vpop.permute.xlu0 %1288 }
 0x8e7   : > { %v2513_v48 = vpop.eup %2512 }
 0x8e8   : > { %v2515_v49 = vpop.eup %2514  ;;  %v1174_v52 = vmul.f32 %v2513_v48, %v2505_v13  ;;  %v1617_v48 = vld [vmem:[#allocation10 + $0x8] sm:$0xff] }
 0x8e9   : > { %v1173_v50 = vmul.f32 %v2515_v49, %v2507_v16  ;;  %v1618_v49 = vld [vmem:[#allocation10 + $0x10] sm:$0xff] }
 0x8eb   : > { %2138 = vmatprep.mubr.msk.f32.mxu0 %vm379_vm0, %v1173_v50  ;;  %v2271_v50 = vpack.c.bf16 %v1617_v48, %v1616_v43 }
 0x8ec   : > { %2139 = vmatmul.mubr.msk.f32.gmra.mrb[14].mxu0 %vm379_vm0, %v1174_v52 }
 0x8ed   : > { %2149 = vmatprep.mubr.msk.f32.mxu0 %vm489_vm1, %v1285_v51  ;;  %v1619_v51 = vld [vmem:[#allocation10 + $0x18] sm:$0xff] }
 0x8ee   : > { %v2275_v52 = vpack.c.bf16 %v1619_v51, %v1618_v49 }
 0x8f0   : > { %2150 = vmatmul.mubr.msk.f32.vlgmr.msra.gmra.mrb[16].mxu0 %vm489_vm1, %v1287_v41 }
 0x8f1   : > { %2152 = vmatprep.mubr.msk.f32.mxu0 %vm489_vm1, %v1289_v53 }
 0x8f4   : > { %2153 = vmatmul.mubr.msk.f32.gmra.mrb[18].mxu0 %vm489_vm1, %v1291_v24 }
 0x98a   : > { %v2137_v54 = vpop.f32.mrb[12].mxu0 }
 0x98b   : > { %v1265_v55 = vpop.f32.mrb[13].mxu0 }
 0x9bf   : > { %v2140_v56 = vpop.f32.mrb[14].mxu0 }
 0x9c0   : > { %v1275_v57 = vpop.f32.mrb[15].mxu0 }
 0x9c3   : > { %v2151_v58 = vpop.f32.mrb[16].mxu0 }
 0x9c4   : > { %v1382_v59 = vpop.f32.mrb[17].mxu0  ;;  %v1404_v60 = vsel %vm379_vm0, %v2151_v58, -inf }
 0x9c5   : > { %1405 = vmax.xlane.f32.xlu1 %v1404_v60  ;;  %v1401_v61 = vsel %vm379_vm0, %v1382_v59, -inf }
 0x9c6   : > { %1402 = vmax.xlane.f32.xlu0 %v1401_v61 }
 0x9c7   : > { %v2154_v62 = vpop.f32.mrb[18].mxu0 }
 0x9c8   : > { %v1392_v63 = vpop.f32.mrb[19].mxu0  ;;  %v1410_v1 = vsel %vm379_vm0, %v2154_v62, -inf }
 0x9c9   : > { %v1407_v0 = vsel %vm379_vm0, %v1392_v63, -inf }
 0x9ca   : > { %1408 = vmax.xlane.f32.xlu0 %v1407_v0 }
 0x9ce   : > { %1411 = vmax.xlane.f32.xlu0 %v1410_v1 }
 0xa52   : > { %v1406_v2 = vpop.xlane.xlu1 %1405 }
 0xa53   : > { %v1414_v3 = vsub.f32 %v2151_v58, %v1406_v2  ;;  %v1403_v4 = vpop.xlane.xlu0 %1402 }
 0xa54   : > { %v1413_v5 = vsub.f32 %v1382_v59, %v1403_v4 }
 0xa55   : > { %v1419_v6 = vmul.f32 1.442695, %v1414_v3 }
 0xa56   : > { %v1417_v7 = vmul.f32 1.442695, %v1413_v5 }
 0xa57   : > { %2516 = vpow2.f32 %v1419_v6  ;;  %v1409_v8 = vpop.xlane.xlu0 %1408 }
 0xa58   : > { %2518 = vpow2.f32 %v1417_v7  ;;  %v1415_v9 = vsub.f32 %v1392_v63, %v1409_v8 }
 0xa5a   : > { %v1421_v10 = vmul.f32 1.442695, %v1415_v9 }
 0xa5b   : > { %v1412_v11 = vpop.xlane.xlu0 %1411 }
 0xa5c   : > { %2520 = vpow2.f32 %v1421_v10  ;;  %v1416_v13 = vsub.f32 %v2154_v62, %v1412_v11 }
 0xa5e   : > { %v1423_v16 = vmul.f32 1.442695, %v1416_v13 }
 0xa60   : > { %2522 = vpow2.f32 %v1423_v16 }
 0xa61   : > { %v2517_v18 = vpop.eup %2516 }
 0xa62   : > { %v2519_v21 = vpop.eup %2518  ;;  %v1428_v12 = vsel %vm379_vm0, %v2517_v18, 0.0 }
 0xa63   : > { %1429 = vadd.xlane.f32.xlu0 %v1428_v12  ;;  %v1425_v22 = vsel %vm379_vm0, %v2519_v21, 0.0 }
 0xa64   : > { %1426 = vadd.xlane.f32.xlu1 %v1425_v22 }
 0xa66   : > { %v2521_v23 = vpop.eup %2520 }
 0xa67   : > { %v1431_v25 = vsel %vm379_vm0, %v2521_v23, 0.0 }
 0xa68   : > { %1432 = vadd.xlane.f32.xlu1 %v1431_v25 }
 0xa6a   : > { %v2523_v26 = vpop.eup %2522 }
 0xa6b   : > { %v1434_v27 = vsel %vm379_vm0, %v2523_v26, 0.0 }
 0xa6c   : > { %1435 = vadd.xlane.f32.xlu0 %v1434_v27 }
 0xa79   : > { %2459 = vrot.lane.b32.xlu1 %v3145_v15, %s2806_s0 }
 0xa7d   : > { %1558 = vrot.lane.b32.xlu1 %v3255_v45, %s2807_s15 }
 0xa81   : > { %1560 = vrot.lane.b32.xlu1 %v3253_v44, %s2807_s15 }
 0xa82   : > { %2464 = vrot.lane.b32.xlu0 %v3154_v20, %s2806_s0 }
 0xa85   : > { %1576 = vrot.lane.b32.xlu1 %v2137_v54, %s2808_s20 }
 0xa86   : > { %1574 = vrot.lane.b32.xlu0 %v1265_v55, %s2808_s20 }
 0xa89   : > { %1564 = vrot.lane.b32.xlu1 %v3257_v46, %s2807_s15 }
 0xa8a   : > { %1562 = vrot.lane.b32.xlu0 %v3259_v47, %s2807_s15 }
 0xa8d   : > { %1580 = vrot.lane.b32.xlu1 %v2140_v56, %s2808_s20 }
 0xa8e   : > { %1578 = vrot.lane.b32.xlu0 %v1275_v57, %s2808_s20 }
 0xaf0   : > { %v1430_v28 = vpop.xlane.xlu0 %1429 }
 0xaf1   : > { %v1427_v15 = vpop.xlane.xlu1 %1426 }
 0xaf2   : > { %2524 = vrcp.f32 %v1427_v15 }
 0xaf3   : > { %2526 = vrcp.f32 %v1430_v28 }
 0xaf5   : > { %v1433_v45 = vpop.xlane.xlu1 %1432 }
 0xaf6   : > { %2528 = vrcp.f32 %v1433_v45 }
 0xaf9   : > { %v2460_v44 = vpop.permute.xlu1 %2459  ;;  %v1436_v29 = vpop.xlane.xlu0 %1435 }
 0xafa   : > { %v2462_v20 = vunpack.i.h.bf16 %v2460_v44  ;;  %v2461_v30 = vunpack.i.l.bf16 %v2460_v44  ;;  %2530 = vrcp.f32 %v1436_v29 }
 0xafc   : > { %v2525_v31 = vpop.eup %2524  ;;  %v2263_v32 = vpack.c.bf16 %v2462_v20, %v2461_v30 }
 0xafd   : > { %v2465_v17 = vpop.permute.xlu0 %2464  ;;  %v1441_v46 = vmul.f32 %v2525_v31, %v2519_v21  ;;  %v2527_v37 = vpop.eup %2526 }
 0xafe   : > { %v2467_v14 = vunpack.i.h.bf16 %v2465_v17  ;;  %v2466_v19 = vunpack.i.l.bf16 %v2465_v17  ;;  %2264 = vmatprep.subr.bf16.mxu1 %v2263_v32  ;;  %v1442_v39 = vmul.f32 %v2527_v37, %v2517_v18  ;;  %v1559_v56 = vpop.permute.xlu1 %1558 }
 0xaff   : > { %2266 = vmatpush3.bf16.msra.mxu1 %v2263_v32  ;;  %2163 = vmatprep.mubr.msk.f32.mxu1 %vm379_vm0, %v1441_v46  ;;  %v1602_v0 = vsel %vm489_vm1, %v3215_v34, %v1559_v56 }
 0xb00   : > { %v2267_v47 = vpack.c.bf16 %v2467_v14, %v2466_v19  ;;  %v2529_v38 = vpop.eup %2528 }
 0xb01   : > { %v1443_v41 = vmul.f32 %v2529_v38, %v2521_v23  ;;  %v1575_v59 = vpop.permute.xlu0 %1574 }
 0xb02   : > { %2268 = vmatprep.subr.bf16.mxu1 %v2267_v47  ;;  %v1561_v57 = vpop.permute.xlu1 %1560  ;;  %v1607_v3 = vsel %vm1606_vm3, %v1602_v0, %v1575_v59 }
 0xb03   : > { %2270 = vmatpush3.bf16.msra.mxu1 %v2267_v47  ;;  %v1603_v2 = vsel %vm489_vm1, %v3213_v33, %v1561_v57 }
 0xb04   : > { %v2531_v40 = vpop.eup %2530  ;;  %2272 = vmatprep.subr.bf16.mxu1 %v2271_v50 }
 0xb05   : > { %v1444_v42 = vmul.f32 %v2531_v40, %v2523_v26  ;;  %v1563_v61 = vpop.permute.xlu0 %1562 }
 0xb06   : > { %2164 = vmatmul.mubr.msk.f32.vlgmr.msra.gmra.mrb[12].mxu1 %vm379_vm0, %v1442_v39  ;;  %v1577_v58 = vpop.permute.xlu1 %1576  ;;  %v1604_v8 = vsel %vm489_vm1, %v3219_v36, %v1563_v61  ;;  %v1950_v36 = vld [vmem:[#allocation11] ss:$0 sm:$0xff] }
 0xb07   : > { %2166 = vmatprep.mubr.msk.f32.mxu1 %vm379_vm0, %v1443_v41  ;;  %2274 = vmatpush3.bf16.msra.mxu1 %v2271_v50  ;;  %v1608_v5 = vsel %vm1606_vm3, %v1603_v2, %v1577_v58 }
 0xb08   : > { %2276 = vmatprep.subr.bf16.mxu1 %v2275_v52 }
 0xb09   : > { %v1579_v63 = vpop.permute.xlu0 %1578 }
 0xb0a   : > { %2167 = vmatmul.mubr.msk.f32.gmra.mrb[14].mxu1 %vm379_vm0, %v1444_v42  ;;  %v1565_v60 = vpop.permute.xlu1 %1564  ;;  %v1609_v9 = vsel %vm1606_vm3, %v1604_v8, %v1579_v63 }
 0xb0b   : > { %2278 = vmatpush3.bf16.msra.mxu1 %v2275_v52  ;;  %v1605_v33 = vsel %vm489_vm1, %v3217_v35, %v1565_v60 }
 0xb0e   : > { %v1581_v62 = vpop.permute.xlu1 %1580 }
 0xb0f   : > { %v1610_v11 = vsel %vm1606_vm3, %v1605_v33, %v1581_v62 }
 0xbd9   : > { %v2165_v53 = vpop.f32.mrb[12].mxu1 }
 0xbda   : > { %1592 = vrot.lane.b32.xlu1 %v2165_v53, %s2809_s2  ;;  %v1535_v24 = vpop.f32.mrb[13].mxu1 }
 0xbdb   : > { %1590 = vrot.lane.b32.xlu0 %v1535_v24, %s2809_s2 }
 0xbdd   : > { %v2168_v54 = vpop.f32.mrb[14].mxu1 }
 0xbde   : > { %1596 = vrot.lane.b32.xlu1 %v2168_v54, %s2809_s2  ;;  %v1545_v55 = vpop.f32.mrb[15].mxu1 }
 0xbdf   : > { %1594 = vrot.lane.b32.xlu0 %v1545_v55, %s2809_s2 }
 0xc4c   : > { %v1593_v1 = vpop.permute.xlu1 %1592 }
 0xc4d   : > { %v1591_v4 = vpop.permute.xlu0 %1590  ;;  %v1613_v7 = vsel %vm1611_vm4, %v1608_v5, %v1593_v1 }
 0xc4e   : > { %v1612_v6 = vsel %vm1611_vm4, %v1607_v3, %v1591_v4 }
 0xc4f   : > { %2177 = vmatprep.mubr.msk.f32.mxu1 %vm379_vm0, %v1612_v6 }
 0xc50   : > { %2178 = vmatmul.mubr.msk.f32.vlgmr.msra.gmra.mrb[16].mxu1 %vm379_vm0, %v1613_v7  ;;  %v1597_v34 = vpop.permute.xlu1 %1596 }
 0xc51   : > { %v1595_v10 = vpop.permute.xlu0 %1594  ;;  %v1615_v16 = vsel %vm1611_vm4, %v1610_v11, %v1597_v34 }
 0xc52   : > { %v1614_v13 = vsel %vm1611_vm4, %v1609_v9, %v1595_v10 }
 0xc53   : > { %2180 = vmatprep.mubr.msk.f32.mxu1 %vm379_vm0, %v1614_v13 }
 0xc54   : > { %2181 = vmatmul.mubr.msk.f32.gmra.mrb[18].mxu1 %vm379_vm0, %v1615_v16 }
 0xd23   : > { %v2179_v18 = vpop.f32.mrb[16].mxu1 }
 0xd24   : > { %v1711_v21 = vadd.f32 %v2179_v18, %v1950_v36  ;;  %v1705_v35 = vpop.f32.mrb[17].mxu1 }
 0xd25   : > { %v1706_v12 = vadd.f32 %v1950_v36, %v1705_v35 }
 0xd26   : > { %1725 = vst.msk [vmem:[%s363_s14 + $0x8] sm:$0xff] %vm379_vm0, %v1711_v21 }
 0xd27   : > { %1724 = vst.msk [vmem:[%s363_s14] sm:$0xff] %vm379_vm0, %v1706_v12  ;;  %v2182_v22 = vpop.f32.mrb[18].mxu1 }
 0xd28   : > { %v1721_v23 = vadd.f32 %v2182_v22, %v1950_v36  ;;  %v1715_v25 = vpop.f32.mrb[19].mxu1 }
 0xd29   : > { %v1716_v26 = vadd.f32 %v1950_v36, %v1715_v25 }
 0xd2a   : > { %1727 = vst.msk [vmem:[%s363_s14 + $0x18] sm:$0xff] %vm379_vm0, %v1721_v23 }
 0xd2b   : > { %1726 = vst.msk [vmem:[%s363_s14 + $0x10] sm:$0xff] %vm379_vm0, %v1716_v26 }
 0xd2c   : > { %2717 = shalt.err (!%p2714_p8)
}
 0xd2d   : > { %s2718_s12 = scalar_lea.hbm %s3344_s10, 512  ;;  %s2722_s20 = scalar_lea.hbm %s3397_s6, 1024 }
 0xd2e   : > { %p2719_p11 = scmp.ne.s32.totalorder %s3344_s10, %s2718_s12  ;;  %p2723_p1 = scmp.lt.u32.totalorder %s3344_s10, %s3397_s6 }
 0xd2f   : > { %p2724_p2 = scmp.lt.u32.totalorder %s2722_s20, %s2718_s12  ;;  %p2726_p0 = scmp.lt.u32.totalorder %s2718_s12, %s3344_s10 }
 0xd30   : > { %p2720_p7 = pnand %p2719_p11, %p3013_p10 }
 0xd31   : > { %p2725_p13 = por %p2724_p2, %p2723_p1 }
 0xd32   : > { %p2721_p12 = pneg %p2720_p7 }
 0xd33   : > { %p2727_p4 = por %p2726_p0, %p2725_p13 }
 0xd35   : > { %p2728_p6 = pnand %p2727_p4, %p2721_p12 }
 0xd37   : > { %2731 = shalt.err (!%p2728_p6)
}
 0xd38   : > { %s2811_s14 = smov 128  }
 0xd39   : > { %2299 = dma.vmem_to_hbm [thread:$0]  (%p3013_p10), %s3339_s29, 512, %s3344_s10, %s1729_s25, %s2811_s14, %s2811_s14, %s2807_s15  }
 0xd3a PF: > { %s1757_s27 = sand.u32 1, %s2774_s21   ;;  %p3431_p3 = scmp.ne.s32.totalorder %s3409_s28, 0 }
 0xd3b   : > { %p3432_p5 = scmp.ge.s32.totalorder %s2786_s24, 2  ;;  %s1758_s7 = scalar_lea.sflag [#allocation4], %s1757_s27 }
 0xd3d   : > { %p2322_p9 = pnand %p3432_p5, %p3431_p3 }
 0xd3f   : > { %2769 = dma.done.wait (!%p2322_p9), %s1758_s7, 512  }
 0xd40   : > { %2771 = vsyncadd (!%p2322_p9), %s1758_s7, 4294966784  ;;  %p24_p8 = scmp.ge.s32.totalorder %s3003_s18, 4   ;;  %s3433_s21 = smov %s2778_s22 }
 0xd41   : > { %s3434_s22 = smov %s2782_s23  ;;  %s3435_s23 = smov %s3019_s19 }
 0xd42   : > { %s3436_s24 = smov %s3003_s18  ;;  %26 = sbr.rel (!%p24_p8) target bundleno = 13 (0xd), region = 118 }
 0xd49   :  { %1763 = vsyncpa [#allocation3], 1 }
 0xd4a   :  { %1765 = vsyncpa [#allocation3 + $0x1], 1 }
 0xd4b   :  { %1766 = vsyncpa [#allocation6], 1 }
 0xd4c   :  { %1768 = vsyncpa [#allocation6 + $0x1], 1 }
 0xd4d   :  { %1769 = vsyncpa [#allocation9], 1 }
 0xd4e   :  { %1770 = vsyncpa [#allocation12], 1 }
 0xd4f   :  { %1771 = vsyncpa [#allocation4], 1 }
 0xd50   :  { %1773 = vsyncpa [#allocation4 + $0x1], 1 }

// kernel: tpu_custom_call.1
= control target key start
LH: loop header
LB: loop body
LE: loop exit
PB: predicated region body
PF: predicated region fallthrough
CT: control target
= control target key end

     0   :  { %s3391_s0 = inlined_call_operand.hbm [shape: f32[2,16,32], index: 0, kind: input, shape index: {}]   ;;  %s3392_s1 = inlined_call_operand.hbm [shape: f32[2,16,32], index: 1, kind: input, shape index: {}]   ;;  %s3393_s2 = inlined_call_operand.hbm [shape: f32[32,96], index: 2, kind: input, shape index: {}]   ;;  %s3394_s3 = inlined_call_operand.hbm [shape: f32[1,96], index: 3, kind: input, shape index: {}]   ;;  %s3395_s4 = inlined_call_operand.hbm [shape: f32[32,32], index: 4, kind: input, shape index: {}]   ;;  %s3396_s5 = inlined_call_operand.hbm [shape: f32[1,32], index: 5, kind: input, shape index: {}]   ;;  %s3397_s6 = inlined_call_operand.hbm [shape: f32[2,32,32], index: 6, kind: output, shape index: {}]  }
   0x1   :  { %3405 = sst [smem:[#allocation20_spill]] %s3391_s0 }
   0x2   :  { %3406 = sst [smem:[#allocation21_spill]] %s3393_s2 }
   0x3   :  { %3407 = sst [smem:[#allocation22_spill]] %s3394_s3 }
   0x4   :  { %11 = vsyncpa [#allocation3], 0 }
   0x5   :  { %13 = vsyncpa [#allocation3 + $0x1], 0 }
   0x6   :  { %14 = vsyncpa [#allocation6], 0 }
   0x7   :  { %16 = vsyncpa [#allocation6 + $0x1], 0 }
   0x8   :  { %17 = vsyncpa [#allocation9], 0 }
   0x9   :  { %18 = vsyncpa [#allocation12], 0 }
   0xa   :  { %19 = vsyncpa [#allocation4], 0 }
   0xb   :  { %21 = vsyncpa [#allocation4 + $0x1], 0  ;;  %s2847_s21 = smov 0   ;;  %s2849_s22 = smov 0  }
   0xc   :  { %s2851_s23 = smov 0   ;;  %s2853_s24 = smov 0  }
   0xd LB: > { %s2868_s25 = sadd.s32 4294967295, %s2786_s24   ;;  %s1876_s26 = sadd.s32 4294967294, %s2786_s24   ;;  %s2786_s24 = sphi %s2853_s24, %s3436_s24   ;;  %s2782_s23 = sphi %s2851_s23, %s3435_s23   ;;  %s2778_s22 = sphi %s2849_s22, %s3434_s22   ;;  %s2774_s21 = sphi %s2847_s21, %s3433_s21  }
   0xe   : > { %p47_p0 = scmp.ne.s32.totalorder %s2778_s22, %s2774_s21  ;;  %p3398_p1 = scmp.eq.s32.totalorder %s2868_s25, 0 }
   0xf   : > { %p187_p3 = scmp.eq.s32.totalorder %s1876_s26, 1  ;;  %p1877_p5 = scmp.ge.s32.totalorder %s2786_s24, 1 }
  0x10   : > { %p2877_p4 = por %p3398_p1, %p47_p0  ;;  %p194_p7 = scmp.lt.s32.totalorder %s2786_s24, 3 }
  0x11   : > { %p2882_p6 = por %p187_p3, %p47_p0  ;;  %s2788_s30 = smov [#allocation7]  }
  0x12   : > { %s3408_s27 = scalar_select %p2877_p4, 1, 0 }
  0x13   : > { %s3409_s28 = scalar_select %p2882_p6, 1, 0 }
  0x14   : > { %p2887_p8 = pnand %p1877_p5, %p194_p7  ;;  %s206_s7 = sshll.u32 %s2788_s30, 4  ;;  %s2891_s7 = int_to_ptr.vmem [resolvable:$true] %s206_s7 }
  0x15   : > { %s2789_s9 = smov [#allocation8]   ;;  %s2790_s11 = smov [#allocation10]  }
  0x16   : > { %s3410_s29 = scalar_select %p2887_p8, 1, 0 }
  0x17   : > { %p2301_p9 = pneg %p2887_p8  ;;  %s220_s10 = sshll.u32 %s2789_s9, 4  ;;  %s2902_s10 = int_to_ptr.vmem [resolvable:$true] %s220_s10 }
  0x18   : > { %s2904_s12 = sshll.u32 %s2790_s11, 4  ;;  %s3412_s2 = sld [smem:[#allocation21_spill]]  ;;  %s231_s12 = int_to_ptr.vmem [resolvable:$true] %s2904_s12 }
  0x19   : > { %p2898_p11 = pnand %p2301_p9, %p3398_p1 }
  0x1b   : > { %p2914_p13 = pneg %p2898_p11 }
  0x1e   : > { %s2532_s15 = scalar_lea.hbm %s3412_s2, 512 }
  0x1f   : > { %p2533_p12 = scmp.ne.s32.totalorder %s3412_s2, %s2532_s15  ;;  %p2539_p5 = scmp.lt.u32.totalorder %s2532_s15, %s3412_s2 }
  0x21   : > { %p2535_p0 = pnand %p2914_p13, %p2533_p12 }
  0x23   : > { %p2536_p3 = pneg %p2535_p0 }
  0x25   : > { %p2541_p7 = pnand %p2539_p5, %p2536_p3 }
  0x27   : > { %2544 = shalt.err (!%p2541_p7)
}
  0x28   : > { %s2545_s26 = scalar_lea.vmem %s2891_s7, 512  ;;  %p2553_p2 = scmp.lt.s32.totalorder %s2891_s7, %s2891_s7 }
  0x29   : > { %p2546_p9 = scmp.ne.s32.totalorder %s2891_s7, %s2545_s26  ;;  %p2554_p6 = scmp.lt.s32.totalorder %s2545_s26, %s2545_s26 }
  0x2b   : > { %p2548_p10 = pnand %p2546_p9, %p2914_p13  ;;  %p2555_p12 = por %p2554_p6, %p2553_p2 }
  0x2d   : > { %p2549_p1 = pneg %p2548_p10 }
  0x2f   : > { %p2556_p0 = pnand %p2555_p12, %p2549_p1 }
  0x31   : > { %2559 = shalt.err (!%p2556_p0)
}
  0x32   : > { %s3401_s30 = smov 128   ;;  %s3403_s9 = smov 8  }
  0x33   : > { %2304 = dma.hbm_to_vmem [thread:$0]  (!%p2898_p11), %s3412_s2, 512, %s2891_s7, [#allocation6], %s3401_s30, %s3401_s30, %s3403_s9  }
  0x34   : > { %s3414_s3 = sld [smem:[#allocation22_spill]] }
  0x3a   : > { %s2560_s16 = scalar_lea.hbm %s3414_s3, 16 }
  0x3b   : > { %p2561_p1 = scmp.ne.s32.totalorder %s3414_s3, %s2560_s16  ;;  %p2567_p10 = scmp.lt.u32.totalorder %s2560_s16, %s3414_s3 }
  0x3d   : > { %p2563_p2 = pnand %p2561_p1, %p2914_p13 }
  0x3f   : > { %p2564_p6 = pneg %p2563_p2 }
  0x41   : > { %p2569_p3 = pnand %p2567_p10, %p2564_p6 }
  0x43   : > { %2572 = shalt.err (!%p2569_p3)
}
  0x44   : > { %s2573_s7 = scalar_lea.vmem %s2902_s10, 16  ;;  %s2580_s11 = scalar_lea.vmem %s2902_s10, 32 }
  0x45   : > { %p2574_p5 = scmp.ne.s32.totalorder %s2902_s10, %s2573_s7  ;;  %p2581_p12 = scmp.lt.s32.totalorder %s2902_s10, %s2902_s10 }
  0x46   : > { %p2582_p0 = scmp.lt.s32.totalorder %s2580_s11, %s2573_s7 }
  0x47   : > { %p2576_p7 = pnand %p2574_p5, %p2914_p13 }
  0x48   : > { %p2583_p1 = por %p2582_p0, %p2581_p12 }
  0x49   : > { %p2577_p9 = pneg %p2576_p7 }
  0x4b   : > { %p2584_p2 = pnand %p2583_p1, %p2577_p9 }
  0x4d   : > { %2587 = shalt.err (!%p2584_p2)
}
  0x4e   : > { %2307 = dma.hbm_to_vmem [thread:$0]  (!%p2898_p11), %s3414_s3, 16, %s2902_s10, [#allocation9]  }
  0x4f   : > { %s2588_s17 = scalar_lea.hbm %s3395_s4, 512 }
  0x50   : > { %p2589_p6 = scmp.ne.s32.totalorder %s3395_s4, %s2588_s17  ;;  %p2595_p5 = scmp.lt.u32.totalorder %s2588_s17, %s3395_s4 }
  0x52   : > { %p2591_p10 = pnand %p2589_p6, %p2914_p13 }
  0x54   : > { %p2592_p3 = pneg %p2591_p10 }
  0x56   : > { %p2597_p7 = pnand %p2595_p5, %p2592_p3 }
  0x58   : > { %2600 = shalt.err (!%p2597_p7)
}
  0x59   : > { %s2601_s11 = scalar_lea.vmem %s231_s12, 512  ;;  %p2609_p1 = scmp.lt.s32.totalorder %s231_s12, %s231_s12 }
  0x5a   : > { %p2602_p9 = scmp.ne.s32.totalorder %s231_s12, %s2601_s11  ;;  %p2610_p2 = scmp.lt.s32.totalorder %s2601_s11, %s2601_s11 }
  0x5c   : > { %p2604_p12 = pnand %p2602_p9, %p2914_p13  ;;  %p2611_p4 = por %p2610_p2, %p2609_p1 }
  0x5e   : > { %p2605_p0 = pneg %p2604_p12 }
  0x60   : > { %p2612_p8 = pnand %p2611_p4, %p2605_p0 }
  0x62   : > { %2615 = shalt.err (!%p2612_p8)
}
  0x63   : > { %2310 = dma.hbm_to_vmem [thread:$0]  (!%p2898_p11), %s3395_s4, 512, %s231_s12, [#allocation9], %s3401_s30, %s3401_s30, %s3403_s9  }
  0x64   : > { %s2793_s14 = smov [#allocation11]   ;;  %s2616_s19 = scalar_lea.hbm %s3396_s5, 16 }
  0x65   : > { %s244_s15 = sshll.u32 %s2793_s14, 4  ;;  %p2617_p4 = scmp.ne.s32.totalorder %s3396_s5, %s2616_s19  ;;  %s245_s15 = int_to_ptr.vmem [resolvable:$true] %s244_s15 }
  0x66   : > { %p2623_p10 = scmp.lt.u32.totalorder %s2616_s19, %s3396_s5 }
  0x67   : > { %p2619_p8 = pnand %p2617_p4, %p2914_p13 }
  0x69   : > { %p2620_p6 = pneg %p2619_p8 }
  0x6b   : > { %p2625_p3 = pnand %p2623_p10, %p2620_p6 }
  0x6d   : > { %2628 = shalt.err (!%p2625_p3)
}
  0x6e   : > { %s2629_s12 = scalar_lea.vmem %s245_s15, 16  ;;  %s2636_s10 = scalar_lea.vmem %s245_s15, 32 }
  0x6f   : > { %p2630_p5 = scmp.ne.s32.totalorder %s245_s15, %s2629_s12  ;;  %p2637_p12 = scmp.lt.s32.totalorder %s245_s15, %s245_s15 }
  0x70   : > { %p2638_p0 = scmp.lt.s32.totalorder %s2636_s10, %s2629_s12 }
  0x71   : > { %p2632_p7 = pnand %p2630_p5, %p2914_p13 }
  0x72   : > { %p2639_p1 = por %p2638_p0, %p2637_p12 }
  0x73   : > { %p2633_p9 = pneg %p2632_p7 }
  0x75   : > { %p2640_p2 = pnand %p2639_p1, %p2633_p9 }
  0x77   : > { %2643 = shalt.err (!%p2640_p2)
}
  0x78   : > { %2313 = dma.hbm_to_vmem [thread:$0]  (!%p2898_p11), %s3396_s5, 16, %s245_s15, [#allocation12]  }
  0x79   : > { %s3003_s18 = sadd.s32 1, %s2786_s24   ;;  %s34_s16 = sadd.s32 1, %s2782_s23 }
  0x7a   : > { %s31_s8 = ssub.s32 %s2786_s24, %s3003_s18  ;;  %p41_p13 = scmp.ne.s32.totalorder %s2782_s23, %s2778_s22 }
  0x7b   : > { %p32_p4 = scmp.eq.s32.totalorder %s31_s8, 0  ;;  %p42_p8 = scmp.eq.s32.totalorder %s2786_s24, 0 }
  0x7c   : > { %p3415_p6 = scmp.eq.s32.totalorder %s2868_s25, 1  ;;  %p2329_p3 = scmp.lt.s32.totalorder %s2786_s24, 2 }
  0x7d   : > { %s3019_s19 = scalar_select %p32_p4, %s2782_s23, %s34_s16  }
  0x7e   : > { %p3013_p10 = por %p3415_p6, %p41_p13  ;;  %p43_p5 = por %p42_p8, %p41_p13 }
  0x7f   : > { %s255_s20 = sand.u32 1, %s2782_s23   ;;  %s1960_s15 = sshll.u32 %s2786_s24, 8 }
  0x80   : > { %s1883_s26 = sshll.u32 %s255_s20, 4  ;;  %s3417_s0 = sld [smem:[#allocation20_spill]] }
  0x81   : > { %s259_s10 = scalar_lea.vmem [#allocation2], %s1883_s26  ;;  %p3030_p11 = pnand %p2329_p3, %p43_p5 }
  0x82   : > { %s266_s13 = sshll.u32 %s259_s10, 4  ;;  %s3037_s7 = scalar_lea.hbm %s3392_s1, %s1960_s15  ;;  %s3028_s13 = int_to_ptr.vmem [resolvable:$true] %s266_s13 }
  0x83   : > { %s280_s11 = scalar_lea.vmem [#allocation5], %s1883_s26  ;;  %s3041_s9 = scalar_lea.sflag [#allocation3], %s255_s20 }
  0x84   : > { %s3039_s30 = sshll.u32 %s280_s11, 4  ;;  %p2646_p9 = pneg %p3030_p11  ;;  %s3073_s30 = int_to_ptr.vmem [resolvable:$true] %s3039_s30 }
  0x86   : > { %s3026_s12 = scalar_lea.hbm %s3417_s0, %s1960_s15  ;;  %s2649_s16 = scalar_lea.hbm %s3417_s0, 512 }
  0x87   : > { %s2644_s10 = scalar_lea.hbm %s3026_s12, 256  ;;  %p2650_p1 = scmp.lt.u32.totalorder %s3026_s12, %s3417_s0 }
  0x88   : > { %p2645_p7 = scmp.ne.s32.totalorder %s3026_s12, %s2644_s10  ;;  %p2651_p2 = scmp.lt.u32.totalorder %s2649_s16, %s2644_s10 }
  0x89   : > { %p2653_p4 = scmp.lt.u32.totalorder %s2644_s10, %s3026_s12 }
  0x8a   : > { %p2647_p12 = pnand %p2646_p9, %p2645_p7  ;;  %p2652_p13 = por %p2651_p2, %p2650_p1 }
  0x8c   : > { %p2648_p0 = pneg %p2647_p12  ;;  %p2654_p8 = por %p2653_p4, %p2652_p13 }
  0x8e   : > { %p2655_p6 = pnand %p2654_p8, %p2648_p0 }
  0x90   : > { %2658 = shalt.err (!%p2655_p6)
}
  0x91   : > { %s2659_s20 = scalar_lea.vmem %s3028_s13, 256  ;;  %s2794_s2 = smov [#allocation2]  }
  0x92   : > { %p2660_p3 = scmp.ne.s32.totalorder %s3028_s13, %s2659_s20  ;;  %s2664_s3 = sshll.u32 %s2794_s2, 4  ;;  %s2665_s3 = int_to_ptr.vmem [resolvable:$false] %s2664_s3 }
  0x93   : > { %s2666_s26 = scalar_lea.vmem %s2665_s3, 512  ;;  %p2667_p12 = scmp.lt.s32.totalorder %s3028_s13, %s2665_s3 }
  0x94   : > { %p2662_p5 = pnand %p2660_p3, %p2646_p9  ;;  %p2668_p1 = scmp.lt.s32.totalorder %s2666_s26, %s2659_s20 }
  0x96   : > { %p2663_p7 = pneg %p2662_p5  ;;  %p2669_p2 = por %p2668_p1, %p2667_p12 }
  0x98   : > { %p2670_p13 = pnand %p2669_p2, %p2663_p7 }
  0x9a   : > { %2673 = shalt.err (!%p2670_p13)
}
  0x9b   : > { %s3419_s11 = smov 8   ;;  %s3420_s10 = smov 128  }
  0x9c   : > { %2317 = dma.hbm_to_vmem [thread:$0]  (!%p3030_p11), %s3026_s12, 256, %s3028_s13, %s3041_s9, %s3420_s10, %s3420_s10, %s3419_s11  }
  0x9d   : > { %s276_s16 = sand.u32 1, %s2786_s24   ;;  %s2674_s15 = scalar_lea.hbm %s3037_s7, 256 }
  0x9e   : > { %s3076_s8 = scalar_lea.sflag [#allocation6], %s276_s16  ;;  %p2675_p0 = scmp.ne.s32.totalorder %s3037_s7, %s2674_s15 }
  0x9f   : > { %s2679_s3 = scalar_lea.hbm %s3392_s1, 512  ;;  %p2680_p6 = scmp.lt.u32.totalorder %s3037_s7, %s3392_s1 }
  0xa0   : > { %p2677_p4 = pnand %p2675_p0, %p2646_p9  ;;  %p2681_p3 = scmp.lt.u32.totalorder %s2679_s3, %s2674_s15 }
  0xa1   : > { %p2683_p7 = scmp.lt.u32.totalorder %s2674_s15, %s3037_s7 }
  0xa2   : > { %p2678_p8 = pneg %p2677_p4  ;;  %p2682_p5 = por %p2681_p3, %p2680_p6 }
  0xa4   : > { %p2684_p12 = por %p2683_p7, %p2682_p5 }
  0xa6   : > { %p2685_p1 = pnand %p2684_p12, %p2678_p8 }
  0xa8   : > { %2688 = shalt.err (!%p2685_p1)
}
  0xa9   : > { %s2689_s9 = scalar_lea.vmem %s3073_s30, 256  ;;  %s2795_s12 = smov [#allocation5]  }
  0xaa   : > { %p2690_p2 = scmp.ne.s32.totalorder %s3073_s30, %s2689_s9  ;;  %s2694_s13 = sshll.u32 %s2795_s12, 4  ;;  %s2695_s13 = int_to_ptr.vmem [resolvable:$false] %s2694_s13 }
  0xab   : > { %s2696_s0 = scalar_lea.vmem %s2695_s13, 512  ;;  %p2697_p4 = scmp.lt.s32.totalorder %s3073_s30, %s2695_s13 }
  0xac   : > { %p2692_p13 = pnand %p2690_p2, %p2646_p9  ;;  %p2698_p6 = scmp.lt.s32.totalorder %s2696_s0, %s2689_s9 }
  0xae   : > { %p2693_p0 = pneg %p2692_p13  ;;  %p2699_p3 = por %p2698_p6, %p2697_p4 }
  0xb0   : > { %p2700_p5 = pnand %p2699_p3, %p2693_p0 }
  0xb2   : > { %2703 = shalt.err (!%p2700_p5)
}
  0xb3   : > { %2320 = dma.hbm_to_vmem [thread:$0]  (!%p3030_p11), %s3037_s7, 256, %s3073_s30, %s3076_s8, %s3420_s10, %s3420_s10, %s3419_s11  }
  0xb4   : > { %p3421_p9 = scmp.ne.s32.totalorder %s3410_s29, 0 }
  0xb5   : > { %s3108_s16 = sand.u32 (!%p3421_p9), 1, %s2778_s22   ;;  %p3422_p8 = scmp.ne.s32.totalorder (!%p3421_p9), %s3408_s27, 0 }
  0xb6   : > { %299 = sbr.rel (%p3421_p9) target bundleno = 3386 (0xd3a), region = 44  ;;  %s1890_s15 = sshll.u32 (!%p3421_p9), %s3108_s16, 4 }
  0xb7   : > { %s302_s20 = scalar_lea.sflag (!%p3421_p9), [#allocation3], %s3108_s16  ;;  %s305_s2 = scalar_lea.vmem (!%p3421_p9), [#allocation2], %s1890_s15 }
  0xbd   : > { %2749 = dma.done.wait (%p3422_p8), %s302_s20, 256  }
  0xbe   : > { %2751 = vsyncadd (%p3422_p8), %s302_s20, 4294967040  ;;  %s310_s30 = sand.u32 1, %s2868_s25   ;;  %s314_s29 = scalar_lea.vmem [#allocation5], %s1890_s15 }
  0xbf   : > { %s311_s14 = scalar_lea.sflag [#allocation6], %s310_s30 }
  0xc0   : > { %2753 = dma.done.wait (%p3422_p8), %s311_s14, 256  }
  0xc1   : > { %2755 = vsyncadd (%p3422_p8), %s311_s14, 4294967040  ;;  %p3423_p11 = scmp.eq.s32.totalorder %s2868_s25, 0 }
  0xc3   : > { %2757 = dma.done.wait (%p3423_p11), [#allocation6], 512   ;;  %p3424_p7 = pmov %p3423_p11 }
  0xc5   : > { %2759 = vsyncadd (%p3424_p7), [#allocation6], 4294966784  ;;  %p3425_p12 = pmov %p3424_p7 }
  0xc6   : > { %p3426_p1 = pmov %p3424_p7 }
  0xc7   : > { %2761 = dma.done.wait (%p3425_p12), [#allocation9], 528  }
  0xc8   : > { %2763 = vsyncadd (%p3426_p1), [#allocation9], 4294966768  ;;  %p3427_p2 = pmov %p3426_p1 }
  0xc9   : > { %p3428_p13 = pmov %p3426_p1 }
  0xca   : > { %2765 = dma.done.wait (%p3427_p2), [#allocation12], 16  }
  0xcb   : > { %2767 = vsyncadd (%p3428_p13), [#allocation12], 4294967280  ;;  %vm379_vm0 = vcmask 261120   ;;  %v368_v0 = vld [vmem:[#allocation7] sm:$0xff]  ;;  %v369_v1 = vld [vmem:[#allocation7 + $0x8] sm:$0xff]  ;;  %vm489_vm1 = vcmask 64512  }
  0xcc   : > { %v370_v2 = vld [vmem:[#allocation7 + $0x10] sm:$0xff]  ;;  %v2183_v3 = vpack.c.bf16 %v369_v1, %v368_v0  ;;  %v371_v4 = vld [vmem:[#allocation7 + $0x18] sm:$0xff]  ;;  %v1897_v10 = vld [vmem:[#allocation8] ss:$0 sm:$0xff]  ;;  %s2796_s27 = smov 96   ;;  %s2797_s7 = smov 64  }
  0xcd   : > { %v364_v5 = vld [vmem:[%s305_s2] sm:$0xff]  ;;  %v2187_v6 = vpack.c.bf16 %v371_v4, %v370_v2  ;;  %v365_v7 = vld [vmem:[%s305_s2 + $0x8] sm:$0xff]  ;;  %vm3159_vm2 = vmpackc.low %vm489_vm1, %vm489_vm1  ;;  %s2798_s11 = smov 88   ;;  %s2799_s10 = smov 120   ;;  %vm1606_vm3 = vcmask 130048   ;;  %vm1611_vm4 = vcmask 195584  }
  0xce   : > { %2051 = vmatprep.mubr.msk.f32.mxu0 %vm379_vm0, %v364_v5  ;;  %2184 = vmatprep.subr.bf16.mxu0 %v2183_v3  ;;  %v366_v8 = vld [vmem:[%s314_s29] sm:$0xff]  ;;  %v367_v9 = vld [vmem:[%s314_s29 + $0x8] sm:$0xff]  ;;  %s2800_s8 = smov 56   ;;  %s2801_s3 = smov 80  }
  0xcf   : > { %2186 = vmatpush3.bf16.msra.mxu0 %v2183_v3  ;;  %s2802_s26 = smov 112   ;;  %s2803_s9 = smov 48  }
  0xd0   : > { %2188 = vmatprep.subr.bf16.mxu0 %v2187_v6  ;;  %s2804_s12 = smov 72   ;;  %s2805_s13 = smov 104  }
  0xd1   : > { %s2806_s0 = smov 40   ;;  %s2807_s15 = smov 8  }
  0xd2   : > { %s2808_s20 = smov 16   ;;  %s2809_s2 = smov 24  }
  0xd3   : > { %2190 = vmatpush3.bf16.msra.mxu0 %v2187_v6  ;;  %s1896_s30 = sshll.u32 %s3108_s16, 5 }
  0xd4   : > { %s363_s14 = scalar_lea.vmem [#allocation13], %s1896_s30 }
  0xd5   : > { %s1742_s29 = sshll.u32 %s363_s14, 4  ;;  %s3339_s29 = int_to_ptr.vmem [resolvable:$true] %s1742_s29 }
  0xd6   : > { %2052 = vmatmul.mubr.msk.f32.vlgmr.msra.gmra.mrb[0].mxu0 %vm379_vm0, %v365_v7 }
  0xd7   : > { %2054 = vmatprep.mubr.msk.f32.mxu0 %vm379_vm0, %v366_v8 }
  0xda   : > { %2055 = vmatmul.mubr.msk.f32.gmra.mrb[2].mxu0 %vm379_vm0, %v367_v9 }
 0x1a9   : > { %v2053_v11 = vpop.f32.mrb[0].mxu0 }
 0x1aa   : > { %v3137_v12 = vadd.f32 %v2053_v11, %v1897_v10  ;;  %v458_v13 = vpop.f32.mrb[1].mxu0 }
 0x1ab   : > { %v3139_v14 = vadd.f32 %v1897_v10, %v458_v13 }
 0x1ad   : > { %2065 = vmatprep.mubr.msk.f32.mxu1 %vm489_vm1, %v3139_v14  ;;  %v3145_v15 = vpack.i.bf16 %v3137_v12, %v3139_v14  ;;  %v2056_v16 = vpop.f32.mrb[2].mxu0 }
 0x1ae   : > { %v3147_v17 = vadd.f32 %v2056_v16, %v1897_v10  ;;  %v468_v18 = vpop.f32.mrb[3].mxu0 }
 0x1af   : > { %2389 = vrot.lane.b32.xlu0 %v3145_v15, %s2796_s27  ;;  %v3150_v19 = vadd.f32 %v1897_v10, %v468_v18 }
 0x1b1   : > { %v3154_v20 = vpack.i.bf16 %v3147_v17, %v3150_v19 }
 0x1b3   : > { %2394 = vrot.lane.b32.xlu0 %v3154_v20, %s2796_s27  ;;  %s1962_s27 = sshll.u32 %s2868_s25, 9  ;;  %s1729_s25 = scalar_lea.sflag [#allocation4], %s3108_s16 }
 0x221   : > { %v2390_v21 = vpop.permute.xlu0 %2389 }
 0x222   : > { %v2392_v22 = vunpack.i.h.bf16 %v2390_v21  ;;  %v2391_v23 = vunpack.i.l.bf16 %v2390_v21 }
 0x224   : > { %v2191_v25 = vpack.c.bf16 %v2392_v22, %v2391_v23 }
 0x225   : > { %v2395_v26 = vpop.permute.xlu0 %2394 }
 0x226   : > { %2193 = vmatprep.subr.msk.bf16.mxu1 %vm3159_vm2, %v2191_v25  ;;  %v2397_v27 = vunpack.i.h.bf16 %v2395_v26  ;;  %v2396_v28 = vunpack.i.l.bf16 %v2395_v26 }
 0x227   : > { %2196 = vmatpush3.bf16.xpose.msk.msra.mxu1 %vm3159_vm2, %v2191_v25 }
 0x228   : > { %v2197_v29 = vpack.c.bf16 %v2397_v27, %v2396_v28 }
 0x22a   : > { %2199 = vmatprep.subr.msk.bf16.mxu1 %vm3159_vm2, %v2197_v29 }
 0x22f   : > { %2202 = vmatpush3.bf16.xpose.msk.msra.mxu1 %vm3159_vm2, %v2197_v29 }
 0x236   : > { %2066 = vmatmul.mubr.msk.f32.vlgmr.msra.gmra.mrb[0].mxu1 %vm489_vm1, %v3137_v12 }
 0x237   : > { %2068 = vmatprep.mubr.msk.f32.mxu1 %vm489_vm1, %v3150_v19 }
 0x23a   : > { %2069 = vmatmul.mubr.msk.f32.gmra.mrb[2].mxu1 %vm489_vm1, %v3147_v17 }
 0x309   : > { %v2067_v30 = vpop.f32.mrb[0].mxu1 }
 0x30a   : > { %v572_v31 = vpop.f32.mrb[1].mxu1  ;;  %v594_v35 = vsel %vm379_vm0, %v2067_v30, -inf }
 0x30b   : > { %v591_v32 = vsel %vm379_vm0, %v572_v31, -inf }
 0x30c   : > { %592 = vmax.xlane.f32.xlu1 %v591_v32 }
 0x30d   : > { %v2070_v33 = vpop.f32.mrb[2].mxu1 }
 0x30e   : > { %v582_v34 = vpop.f32.mrb[3].mxu1  ;;  %v600_v37 = vsel %vm379_vm0, %v2070_v33, -inf }
 0x30f   : > { %v597_v36 = vsel %vm379_vm0, %v582_v34, -inf }
 0x310   : > { %595 = vmax.xlane.f32.xlu1 %v594_v35  ;;  %598 = vmax.xlane.f32.xlu0 %v597_v36 }
 0x314   : > { %601 = vmax.xlane.f32.xlu1 %v600_v37 }
 0x325   : > { %2399 = vrot.lane.b32.xlu1 %v3145_v15, %s2797_s7 }
 0x326   : > { %2404 = vrot.lane.b32.xlu0 %v3154_v20, %s2797_s7 }
 0x329   : > { %2409 = vrot.lane.b32.xlu1 %v3145_v15, %s2798_s11 }
 0x32a   : > { %748 = vrot.lane.b32.xlu0 %v3150_v19, %s2799_s10 }
 0x32d   : > { %2414 = vrot.lane.b32.xlu1 %v3154_v20, %s2798_s11 }
 0x331   : > { %744 = vrot.lane.b32.xlu1 %v3139_v14, %s2799_s10 }
 0x399   : > { %v593_v38 = vpop.xlane.xlu1 %592 }
 0x39a   : > { %v603_v39 = vsub.f32 %v572_v31, %v593_v38 }
 0x39c   : > { %v607_v43 = vmul.f32 1.442695, %v603_v39 }
 0x39d   : > { %v596_v40 = vpop.xlane.xlu1 %595  ;;  %v599_v41 = vpop.xlane.xlu0 %598 }
 0x39e   : > { %v604_v42 = vsub.f32 %v2067_v30, %v596_v40  ;;  %v605_v48 = vsub.f32 %v582_v34, %v599_v41 }
 0x3a0   : > { %v609_v44 = vmul.f32 1.442695, %v604_v42  ;;  %v611_v55 = vmul.f32 1.442695, %v605_v48 }
 0x3a1   : > { %v602_v45 = vpop.xlane.xlu1 %601  ;;  %v2405_v47 = vpop.permute.xlu0 %2404 }
 0x3a2   : > { %2468 = vpow2.f32 %v609_v44  ;;  %v606_v46 = vsub.f32 %v2070_v33, %v602_v45  ;;  %v2407_v51 = vunpack.i.h.bf16 %v2405_v47  ;;  %v2406_v52 = vunpack.i.l.bf16 %v2405_v47 }
 0x3a3   : > { %2470 = vpow2.f32 %v607_v43 }
 0x3a4   : > { %v613_v49 = vmul.f32 1.442695, %v606_v46  ;;  %v2207_v58 = vpack.c.bf16 %v2407_v51, %v2406_v52 }
 0x3a5   : > { %v2400_v50 = vpop.permute.xlu1 %2399  ;;  %v749_v31 = vpop.permute.xlu0 %748 }
 0x3a6   : > { %v2402_v53 = vunpack.i.h.bf16 %v2400_v50  ;;  %v2401_v54 = vunpack.i.l.bf16 %v2400_v50  ;;  %2472 = vpow2.f32 %v613_v49 }
 0x3a7   : > { %2474 = vpow2.f32 %v611_v55 }
 0x3a8   : > { %v2203_v56 = vpack.c.bf16 %v2402_v53, %v2401_v54 }
 0x3a9   : > { %v2410_v57 = vpop.permute.xlu1 %2409 }
 0x3aa   : > { %v2412_v59 = vunpack.i.h.bf16 %v2410_v57  ;;  %v2411_v60 = vunpack.i.l.bf16 %v2410_v57  ;;  %2204 = vmatprep.subr.bf16.mxu0 %v2203_v56 }
 0x3ab   : > { %2206 = vmatpush3.bf16.msra.mxu0 %v2203_v56 }
 0x3ac   : > { %v2469_v61 = vpop.eup %2468  ;;  %2208 = vmatprep.subr.bf16.mxu0 %v2207_v58  ;;  %v2211_v0 = vpack.c.bf16 %v2412_v59, %v2411_v60 }
 0x3ad   : > { %v618_v62 = vsel %vm379_vm0, %v2469_v61, 0.0  ;;  %v2471_v63 = vpop.eup %2470  ;;  %v2415_v6 = vpop.permute.xlu1 %2414 }
 0x3ae   : > { %619 = vadd.xlane.f32.xlu1 %v618_v62  ;;  %v615_v1 = vsel %vm379_vm0, %v2471_v63, 0.0  ;;  %v2417_v18 = vunpack.i.h.bf16 %v2415_v6  ;;  %v2416_v21 = vunpack.i.l.bf16 %v2415_v6 }
 0x3af   : > { %2210 = vmatpush3.bf16.msra.mxu0 %v2207_v58 }
 0x3b0   : > { %2213 = vmatprep.subr.msk.bf16.mxu0 %vm3159_vm2, %v2211_v0  ;;  %v2473_v2 = vpop.eup %2472  ;;  %v2217_v25 = vpack.c.bf16 %v2417_v18, %v2416_v21 }
 0x3b1   : > { %v624_v3 = vsel %vm379_vm0, %v2473_v2, 0.0  ;;  %v2475_v4 = vpop.eup %2474  ;;  %v745_v7 = vpop.permute.xlu1 %744 }
 0x3b2   : > { %616 = vadd.xlane.f32.xlu1 %v615_v1  ;;  %v621_v5 = vsel %vm379_vm0, %v2475_v4, 0.0 }
 0x3b6   : > { %625 = vadd.xlane.f32.xlu1 %v624_v3 }
 0x3ba   : > { %622 = vadd.xlane.f32.xlu1 %v621_v5 }
 0x3cb   : > { %746 = vrot.lane.b32.xlu1 %v3137_v12, %s2799_s10 }
 0x3cf   : > { %750 = vrot.lane.b32.xlu1 %v3147_v17, %s2799_s10  ;;  %s3344_s10 = scalar_lea.hbm %s3397_s6, %s1962_s27 }
 0x43b   : > { %v620_v8 = vpop.xlane.xlu1 %619 }
 0x43c   : > { %2476 = vrcp.f32 %v620_v8 }
 0x43f   : > { %v617_v9 = vpop.xlane.xlu1 %616 }
 0x440   : > { %2478 = vrcp.f32 %v617_v9 }
 0x443   : > { %v626_v10 = vpop.xlane.xlu1 %625 }
 0x444   : > { %2480 = vrcp.f32 %v626_v10 }
 0x446   : > { %v2477_v13 = vpop.eup %2476 }
 0x447   : > { %v623_v11 = vpop.xlane.xlu1 %622  ;;  %v632_v23 = vmul.f32 %v2477_v13, %v2469_v61 }
 0x448   : > { %2482 = vrcp.f32 %v623_v11 }
 0x44a   : > { %v2479_v16 = vpop.eup %2478 }
 0x44b   : > { %v631_v22 = vmul.f32 %v2479_v16, %v2471_v63  ;;  %v747_v30 = vpop.permute.xlu1 %746 }
 0x44d   : > { %2079 = vmatprep.mubr.msk.f32.mxu0 %vm379_vm0, %v631_v22 }
 0x44e   : > { %2080 = vmatmul.mubr.msk.f32.vlgmr.msra.gmra.mrb[4].mxu0 %vm379_vm0, %v632_v23  ;;  %v2481_v26 = vpop.eup %2480 }
 0x44f   : > { %2216 = vmatpush3.bf16.xpose.msk.msra.mxu0 %vm3159_vm2, %v2211_v0  ;;  %v634_v29 = vmul.f32 %v2481_v26, %v2473_v2  ;;  %v751_v32 = vpop.permute.xlu1 %750 }
 0x450   : > { %2219 = vmatprep.subr.msk.bf16.mxu0 %vm3159_vm2, %v2217_v25 }
 0x452   : > { %v2483_v27 = vpop.eup %2482 }
 0x453   : > { %v633_v28 = vmul.f32 %v2483_v27, %v2475_v4 }
 0x455   : > { %2082 = vmatprep.mubr.msk.f32.mxu0 %vm379_vm0, %v633_v28 }
 0x456   : > { %2083 = vmatmul.mubr.msk.f32.gmra.mrb[6].mxu0 %vm379_vm0, %v634_v29 }
 0x457   : > { %2222 = vmatpush3.bf16.xpose.msk.msra.mxu0 %vm3159_vm2, %v2217_v25  ;;  %2093 = vmatprep.mubr.msk.f32.mxu0 %vm489_vm1, %v745_v7 }
 0x45e   : > { %2094 = vmatmul.mubr.msk.f32.vlgmr.msra.gmra.mrb[8].mxu0 %vm489_vm1, %v747_v30 }
 0x45f   : > { %2096 = vmatprep.mubr.msk.f32.mxu0 %vm489_vm1, %v749_v31 }
 0x462   : > { %2097 = vmatmul.mubr.msk.f32.gmra.mrb[10].mxu0 %vm489_vm1, %v751_v32 }
 0x521   : > { %v3213_v33 = vpop.f32.mrb[4].mxu0 }
 0x522   : > { %v3215_v34 = vpop.f32.mrb[5].mxu0 }
 0x529   : > { %v3217_v35 = vpop.f32.mrb[6].mxu0 }
 0x52a   : > { %v3219_v36 = vpop.f32.mrb[7].mxu0 }
 0x531   : > { %v2095_v37 = vpop.f32.mrb[8].mxu0 }
 0x532   : > { %v842_v38 = vpop.f32.mrb[9].mxu0  ;;  %v864_v39 = vsel %vm379_vm0, %v2095_v37, -inf }
 0x533   : > { %865 = vmax.xlane.f32.xlu1 %v864_v39  ;;  %v861_v40 = vsel %vm379_vm0, %v842_v38, -inf }
 0x534   : > { %862 = vmax.xlane.f32.xlu0 %v861_v40 }
 0x535   : > { %v2098_v41 = vpop.f32.mrb[10].mxu0 }
 0x536   : > { %v852_v42 = vpop.f32.mrb[11].mxu0  ;;  %v870_v44 = vsel %vm379_vm0, %v2098_v41, -inf }
 0x537   : > { %v867_v43 = vsel %vm379_vm0, %v852_v42, -inf }
 0x538   : > { %868 = vmax.xlane.f32.xlu0 %v867_v43 }
 0x53c   : > { %871 = vmax.xlane.f32.xlu0 %v870_v44 }
 0x544   : > { %2419 = vrot.lane.b32.xlu1 %v3145_v15, %s2800_s8 }
 0x548   : > { %2429 = vrot.lane.b32.xlu1 %v3145_v15, %s2801_s3 }
 0x5c0   : > { %v866_v45 = vpop.xlane.xlu1 %865 }
 0x5c1   : > { %v874_v46 = vsub.f32 %v2095_v37, %v866_v45  ;;  %v863_v47 = vpop.xlane.xlu0 %862 }
 0x5c2   : > { %v873_v48 = vsub.f32 %v842_v38, %v863_v47 }
 0x5c3   : > { %v879_v49 = vmul.f32 1.442695, %v874_v46 }
 0x5c4   : > { %v877_v50 = vmul.f32 1.442695, %v873_v48  ;;  %v2420_v51 = vpop.permute.xlu1 %2419 }
 0x5c5   : > { %2484 = vpow2.f32 %v879_v49  ;;  %v2422_v52 = vunpack.i.h.bf16 %v2420_v51  ;;  %v2421_v53 = vunpack.i.l.bf16 %v2420_v51  ;;  %v869_v59 = vpop.xlane.xlu0 %868 }
 0x5c6   : > { %2486 = vpow2.f32 %v877_v50  ;;  %v875_v62 = vsub.f32 %v852_v42, %v869_v59 }
 0x5c7   : > { %v2223_v54 = vpack.c.bf16 %v2422_v52, %v2421_v53 }
 0x5c8   : > { %v881_v0 = vmul.f32 1.442695, %v875_v62  ;;  %v2430_v5 = vpop.permute.xlu1 %2429 }
 0x5c9   : > { %2224 = vmatprep.subr.bf16.mxu1 %v2223_v54  ;;  %v872_v60 = vpop.xlane.xlu0 %871  ;;  %v2432_v9 = vunpack.i.h.bf16 %v2430_v5  ;;  %v2431_v10 = vunpack.i.l.bf16 %v2430_v5 }
 0x5ca   : > { %2226 = vmatpush3.bf16.msra.mxu1 %v2223_v54  ;;  %v876_v61 = vsub.f32 %v2098_v41, %v872_v60 }
 0x5cb   : > { %v2231_v18 = vpack.c.bf16 %v2432_v9, %v2431_v10 }
 0x5cc   : > { %v883_v63 = vmul.f32 1.442695, %v876_v61 }
 0x5ce   : > { %2488 = vpow2.f32 %v883_v63 }
 0x5cf   : > { %v2485_v55 = vpop.eup %2484  ;;  %2490 = vpow2.f32 %v881_v0 }
 0x5d0   : > { %v2487_v56 = vpop.eup %2486  ;;  %v888_v57 = vsel %vm379_vm0, %v2485_v55, 0.0 }
 0x5d1   : > { %889 = vadd.xlane.f32.xlu0 %v888_v57  ;;  %v885_v58 = vsel %vm379_vm0, %v2487_v56, 0.0 }
 0x5d2   : > { %886 = vadd.xlane.f32.xlu1 %v885_v58 }
 0x5d8   : > { %v2489_v1 = vpop.eup %2488 }
 0x5d9   : > { %v2491_v2 = vpop.eup %2490  ;;  %v894_v3 = vsel %vm379_vm0, %v2489_v1, 0.0 }
 0x5da   : > { %v891_v4 = vsel %vm379_vm0, %v2491_v2, 0.0 }
 0x5e3   : > { %2434 = vrot.lane.b32.xlu1 %v3154_v20, %s2801_s3  ;;  %s2810_s3 = smov [#allocation13]  }
 0x5e7   : > { %2424 = vrot.lane.b32.xlu0 %v3154_v20, %s2800_s8  ;;  %s2704_s8 = scalar_lea.vmem %s3339_s29, 512 }
 0x5e8   : > { %p2705_p0 = scmp.ne.s32.totalorder %s3339_s29, %s2704_s8 }
 0x5ea   : > { %p2706_p4 = pnand %p2705_p0, %p3013_p10 }
 0x5ec   : > { %p2707_p6 = pneg %p2706_p4 }
 0x606   : > { %895 = vadd.xlane.f32.xlu0 %v894_v3 }
 0x607   : > { %892 = vadd.xlane.f32.xlu1 %v891_v4 }
 0x618   : > { %1016 = vrot.lane.b32.xlu1 %v3137_v12, %s2802_s26 }
 0x61c   : > { %1020 = vrot.lane.b32.xlu1 %v3147_v17, %s2802_s26  ;;  %1014 = vrot.lane.b32.xlu0 %v3139_v14, %s2802_s26 }
 0x620   : > { %1018 = vrot.lane.b32.xlu0 %v3150_v19, %s2802_s26  ;;  %s2708_s26 = sshll.u32 %s2810_s3, 4  ;;  %s2709_s26 = int_to_ptr.vmem [resolvable:$false] %s2708_s26 }
 0x621   : > { %p2711_p3 = scmp.lt.s32.totalorder %s3339_s29, %s2709_s26 }
 0x65e   : > { %v890_v6 = vpop.xlane.xlu0 %889 }
 0x65f   : > { %2492 = vrcp.f32 %v890_v6  ;;  %v887_v7 = vpop.xlane.xlu1 %886 }
 0x660   : > { %2494 = vrcp.f32 %v887_v7 }
 0x662   : > { %v2425_v8 = vpop.permute.xlu0 %2424 }
 0x663   : > { %v2427_v11 = vunpack.i.h.bf16 %v2425_v8  ;;  %v2426_v13 = vunpack.i.l.bf16 %v2425_v8  ;;  %v2435_v22 = vpop.permute.xlu1 %2434 }
 0x664   : > { %v2437_v27 = vunpack.i.h.bf16 %v2435_v22  ;;  %v2436_v28 = vunpack.i.l.bf16 %v2435_v22 }
 0x665   : > { %v2227_v16 = vpack.c.bf16 %v2427_v11, %v2426_v13 }
 0x666   : > { %v2237_v29 = vpack.c.bf16 %v2437_v27, %v2436_v28 }
 0x667   : > { %2228 = vmatprep.subr.bf16.mxu1 %v2227_v16 }
 0x668   : > { %2230 = vmatpush3.bf16.msra.mxu1 %v2227_v16 }
 0x669   : > { %v2493_v21 = vpop.eup %2492  ;;  %2233 = vmatprep.subr.msk.bf16.mxu1 %vm3159_vm2, %v2231_v18 }
 0x66a   : > { %v2495_v23 = vpop.eup %2494  ;;  %v902_v26 = vmul.f32 %v2493_v21, %v2485_v55 }
 0x66b   : > { %v901_v25 = vmul.f32 %v2495_v23, %v2487_v56 }
 0x66d   : > { %2107 = vmatprep.mubr.msk.f32.mxu1 %vm379_vm0, %v901_v25 }
 0x66e   : > { %2108 = vmatmul.mubr.msk.f32.vlgmr.msra.gmra.mrb[4].mxu1 %vm379_vm0, %v902_v26 }
 0x671   : > { %2236 = vmatpush3.bf16.xpose.msk.msra.mxu1 %vm3159_vm2, %v2231_v18 }
 0x672   : > { %2239 = vmatprep.subr.msk.bf16.mxu1 %vm3159_vm2, %v2237_v29 }
 0x679   : > { %2242 = vmatpush3.bf16.xpose.msk.msra.mxu1 %vm3159_vm2, %v2237_v29 }
 0x693   : > { %v896_v30 = vpop.xlane.xlu0 %895 }
 0x694   : > { %2496 = vrcp.f32 %v896_v30  ;;  %v893_v31 = vpop.xlane.xlu1 %892 }
 0x695   : > { %2498 = vrcp.f32 %v893_v31 }
 0x697   : > { %v1015_v39 = vpop.permute.xlu0 %1014 }
 0x698   : > { %v1017_v41 = vpop.permute.xlu1 %1016 }
 0x69b   : > { %v1019_v42 = vpop.permute.xlu0 %1018 }
 0x69c   : > { %v1021_v43 = vpop.permute.xlu1 %1020 }
 0x69e   : > { %v2497_v32 = vpop.eup %2496 }
 0x69f   : > { %v2499_v37 = vpop.eup %2498  ;;  %v904_v40 = vmul.f32 %v2497_v32, %v2489_v1 }
 0x6a0   : > { %v903_v38 = vmul.f32 %v2499_v37, %v2491_v2 }
 0x6a2   : > { %2110 = vmatprep.mubr.msk.f32.mxu1 %vm379_vm0, %v903_v38 }
 0x6a3   : > { %2111 = vmatmul.mubr.msk.f32.gmra.mrb[6].mxu1 %vm379_vm0, %v904_v40 }
 0x6a4   : > { %2121 = vmatprep.mubr.msk.f32.mxu1 %vm489_vm1, %v1015_v39 }
 0x6a7   : > { %2122 = vmatmul.mubr.msk.f32.vlgmr.msra.gmra.mrb[8].mxu1 %vm489_vm1, %v1017_v41 }
 0x6a8   : > { %2124 = vmatprep.mubr.msk.f32.mxu1 %vm489_vm1, %v1019_v42 }
 0x6ab   : > { %2125 = vmatmul.mubr.msk.f32.gmra.mrb[10].mxu1 %vm489_vm1, %v1021_v43 }
 0x741   : > { %v3253_v44 = vpop.f32.mrb[4].mxu1 }
 0x742   : > { %v3255_v45 = vpop.f32.mrb[5].mxu1 }
 0x776   : > { %v3257_v46 = vpop.f32.mrb[6].mxu1 }
 0x777   : > { %v3259_v47 = vpop.f32.mrb[7].mxu1 }
 0x77a   : > { %v2123_v48 = vpop.f32.mrb[8].mxu1 }
 0x77b   : > { %v1112_v49 = vpop.f32.mrb[9].mxu1  ;;  %v1134_v50 = vsel %vm379_vm0, %v2123_v48, -inf }
 0x77c   : > { %1135 = vmax.xlane.f32.xlu1 %v1134_v50  ;;  %v1131_v51 = vsel %vm379_vm0, %v1112_v49, -inf }
 0x77d   : > { %1132 = vmax.xlane.f32.xlu0 %v1131_v51 }
 0x77e   : > { %v2126_v52 = vpop.f32.mrb[10].mxu1 }
 0x77f   : > { %v1122_v53 = vpop.f32.mrb[11].mxu1  ;;  %v1140_v55 = vsel %vm379_vm0, %v2126_v52, -inf }
 0x780   : > { %v1137_v54 = vsel %vm379_vm0, %v1122_v53, -inf }
 0x781   : > { %1138 = vmax.xlane.f32.xlu0 %v1137_v54 }
 0x785   : > { %1141 = vmax.xlane.f32.xlu0 %v1140_v55 }
 0x78d   : > { %2439 = vrot.lane.b32.xlu1 %v3145_v15, %s2803_s9 }
 0x791   : > { %2449 = vrot.lane.b32.xlu1 %v3145_v15, %s2804_s12 }
 0x795   : > { %2454 = vrot.lane.b32.xlu1 %v3154_v20, %s2804_s12 }
 0x809   : > { %v1136_v56 = vpop.xlane.xlu1 %1135 }
 0x80a   : > { %v1144_v57 = vsub.f32 %v2123_v48, %v1136_v56  ;;  %v1133_v58 = vpop.xlane.xlu0 %1132 }
 0x80b   : > { %v1143_v59 = vsub.f32 %v1112_v49, %v1133_v58 }
 0x80c   : > { %v1149_v60 = vmul.f32 1.442695, %v1144_v57 }
 0x80d   : > { %v1147_v61 = vmul.f32 1.442695, %v1143_v59  ;;  %v2440_v62 = vpop.permute.xlu1 %2439 }
 0x80e   : > { %2500 = vpow2.f32 %v1149_v60  ;;  %v2442_v63 = vunpack.i.h.bf16 %v2440_v62  ;;  %v2441_v0 = vunpack.i.l.bf16 %v2440_v62  ;;  %v1139_v6 = vpop.xlane.xlu0 %1138 }
 0x80f   : > { %2502 = vpow2.f32 %v1147_v61  ;;  %v1145_v9 = vsub.f32 %v1122_v53, %v1139_v6 }
 0x810   : > { %v2243_v1 = vpack.c.bf16 %v2442_v63, %v2441_v0 }
 0x811   : > { %v1151_v11 = vmul.f32 1.442695, %v1145_v9 }
 0x812   : > { %2244 = vmatprep.subr.bf16.mxu0 %v2243_v1  ;;  %v1142_v7 = vpop.xlane.xlu0 %1141 }
 0x813   : > { %2246 = vmatpush3.bf16.msra.mxu0 %v2243_v1  ;;  %v1146_v8 = vsub.f32 %v2126_v52, %v1142_v7 }
 0x815   : > { %v1153_v10 = vmul.f32 1.442695, %v1146_v8 }
 0x817   : > { %2504 = vpow2.f32 %v1153_v10 }
 0x818   : > { %v2501_v2 = vpop.eup %2500  ;;  %2506 = vpow2.f32 %v1151_v11 }
 0x819   : > { %v2503_v3 = vpop.eup %2502  ;;  %v1158_v4 = vsel %vm379_vm0, %v2501_v2, 0.0 }
 0x81a   : > { %1159 = vadd.xlane.f32.xlu0 %v1158_v4  ;;  %v1155_v5 = vsel %vm379_vm0, %v2503_v3, 0.0 }
 0x81b   : > { %1156 = vadd.xlane.f32.xlu1 %v1155_v5 }
 0x821   : > { %v2505_v13 = vpop.eup %2504 }
 0x822   : > { %v2507_v16 = vpop.eup %2506  ;;  %v1164_v18 = vsel %vm379_vm0, %v2505_v13, 0.0 }
 0x823   : > { %v1161_v21 = vsel %vm379_vm0, %v2507_v16, 0.0 }
 0x82c   : > { %1286 = vrot.lane.b32.xlu1 %v3137_v12, %s2805_s13  ;;  %v2450_v12 = vpop.permute.xlu1 %2449 }
 0x82d   : > { %v2452_v27 = vunpack.i.h.bf16 %v2450_v12  ;;  %v2451_v28 = vunpack.i.l.bf16 %v2450_v12 }
 0x82f   : > { %v2251_v32 = vpack.c.bf16 %v2452_v27, %v2451_v28 }
 0x830   : > { %2444 = vrot.lane.b32.xlu0 %v3154_v20, %s2803_s9  ;;  %v2455_v22 = vpop.permute.xlu1 %2454  ;;  %s2710_s9 = scalar_lea.vmem %s2709_s26, 1024 }
 0x831   : > { %v2457_v37 = vunpack.i.h.bf16 %v2455_v22  ;;  %v2456_v38 = vunpack.i.l.bf16 %v2455_v22  ;;  %p2712_p5 = scmp.lt.s32.totalorder %s2710_s9, %s2704_s8 }
 0x833   : > { %v2257_v40 = vpack.c.bf16 %v2457_v37, %v2456_v38  ;;  %p2713_p9 = por %p2712_p5, %p2711_p3 }
 0x835   : > { %p2714_p8 = pnand %p2713_p9, %p2707_p6 }
 0x84f   : > { %1165 = vadd.xlane.f32.xlu0 %v1164_v18 }
 0x850   : > { %1162 = vadd.xlane.f32.xlu1 %v1161_v21 }
 0x861   : > { %1290 = vrot.lane.b32.xlu1 %v3147_v17, %s2805_s13 }
 0x865   : > { %1284 = vrot.lane.b32.xlu0 %v3139_v14, %s2805_s13 }
 0x869   : > { %1288 = vrot.lane.b32.xlu0 %v3150_v19, %s2805_s13 }
 0x8a7   : > { %v1160_v23 = vpop.xlane.xlu0 %1159 }
 0x8a8   : > { %2508 = vrcp.f32 %v1160_v23  ;;  %v1157_v25 = vpop.xlane.xlu1 %1156 }
 0x8a9   : > { %2510 = vrcp.f32 %v1157_v25 }
 0x8ab   : > { %v2445_v26 = vpop.permute.xlu0 %2444 }
 0x8ac   : > { %v2447_v29 = vunpack.i.h.bf16 %v2445_v26  ;;  %v2446_v30 = vunpack.i.l.bf16 %v2445_v26  ;;  %v1287_v41 = vpop.permute.xlu1 %1286 }
 0x8ae   : > { %v2247_v31 = vpack.c.bf16 %v2447_v29, %v2446_v30 }
 0x8b0   : > { %2248 = vmatprep.subr.bf16.mxu0 %v2247_v31 }
 0x8b1   : > { %2250 = vmatpush3.bf16.msra.mxu0 %v2247_v31 }
 0x8b2   : > { %v2509_v17 = vpop.eup %2508  ;;  %2253 = vmatprep.subr.msk.bf16.mxu0 %vm3159_vm2, %v2251_v32 }
 0x8b3   : > { %v2511_v14 = vpop.eup %2510  ;;  %v1172_v39 = vmul.f32 %v2509_v17, %v2501_v2 }
 0x8b4   : > { %v1171_v19 = vmul.f32 %v2511_v14, %v2503_v3 }
 0x8b6   : > { %2135 = vmatprep.mubr.msk.f32.mxu0 %vm379_vm0, %v1171_v19 }
 0x8b7   : > { %2136 = vmatmul.mubr.msk.f32.vlgmr.msra.gmra.mrb[12].mxu0 %vm379_vm0, %v1172_v39 }
 0x8ba   : > { %2256 = vmatpush3.bf16.xpose.msk.msra.mxu0 %vm3159_vm2, %v2251_v32 }
 0x8bb   : > { %2259 = vmatprep.subr.msk.bf16.mxu0 %vm3159_vm2, %v2257_v40 }
 0x8c2   : > { %2262 = vmatpush3.bf16.xpose.msk.msra.mxu0 %vm3159_vm2, %v2257_v40 }
 0x8dc   : > { %v1166_v42 = vpop.xlane.xlu0 %1165 }
 0x8dd   : > { %2512 = vrcp.f32 %v1166_v42  ;;  %v1163_v43 = vpop.xlane.xlu1 %1162 }
 0x8de   : > { %2514 = vrcp.f32 %v1163_v43  ;;  %v1616_v43 = vld [vmem:[#allocation10] sm:$0xff] }
 0x8e0   : > { %v1285_v51 = vpop.permute.xlu0 %1284 }
 0x8e1   : > { %v1291_v24 = vpop.permute.xlu1 %1290 }
 0x8e4   : > { %v1289_v53 = vpop.permute.xlu0 %1288 }
 0x8e7   : > { %v2513_v48 = vpop.eup %2512 }
 0x8e8   : > { %v2515_v49 = vpop.eup %2514  ;;  %v1174_v52 = vmul.f32 %v2513_v48, %v2505_v13  ;;  %v1617_v48 = vld [vmem:[#allocation10 + $0x8] sm:$0xff] }
 0x8e9   : > { %v1173_v50 = vmul.f32 %v2515_v49, %v2507_v16  ;;  %v1618_v49 = vld [vmem:[#allocation10 + $0x10] sm:$0xff] }
 0x8eb   : > { %2138 = vmatprep.mubr.msk.f32.mxu0 %vm379_vm0, %v1173_v50  ;;  %v2271_v50 = vpack.c.bf16 %v1617_v48, %v1616_v43 }
 0x8ec   : > { %2139 = vmatmul.mubr.msk.f32.gmra.mrb[14].mxu0 %vm379_vm0, %v1174_v52 }
 0x8ed   : > { %2149 = vmatprep.mubr.msk.f32.mxu0 %vm489_vm1, %v1285_v51  ;;  %v1619_v51 = vld [vmem:[#allocation10 + $0x18] sm:$0xff] }
 0x8ee   : > { %v2275_v52 = vpack.c.bf16 %v1619_v51, %v1618_v49 }
 0x8f0   : > { %2150 = vmatmul.mubr.msk.f32.vlgmr.msra.gmra.mrb[16].mxu0 %vm489_vm1, %v1287_v41 }
 0x8f1   : > { %2152 = vmatprep.mubr.msk.f32.mxu0 %vm489_vm1, %v1289_v53 }
 0x8f4   : > { %2153 = vmatmul.mubr.msk.f32.gmra.mrb[18].mxu0 %vm489_vm1, %v1291_v24 }
 0x98a   : > { %v2137_v54 = vpop.f32.mrb[12].mxu0 }
 0x98b   : > { %v1265_v55 = vpop.f32.mrb[13].mxu0 }
 0x9bf   : > { %v2140_v56 = vpop.f32.mrb[14].mxu0 }
 0x9c0   : > { %v1275_v57 = vpop.f32.mrb[15].mxu0 }
 0x9c3   : > { %v2151_v58 = vpop.f32.mrb[16].mxu0 }
 0x9c4   : > { %v1382_v59 = vpop.f32.mrb[17].mxu0  ;;  %v1404_v60 = vsel %vm379_vm0, %v2151_v58, -inf }
 0x9c5   : > { %1405 = vmax.xlane.f32.xlu1 %v1404_v60  ;;  %v1401_v61 = vsel %vm379_vm0, %v1382_v59, -inf }
 0x9c6   : > { %1402 = vmax.xlane.f32.xlu0 %v1401_v61 }
 0x9c7   : > { %v2154_v62 = vpop.f32.mrb[18].mxu0 }
 0x9c8   : > { %v1392_v63 = vpop.f32.mrb[19].mxu0  ;;  %v1410_v1 = vsel %vm379_vm0, %v2154_v62, -inf }
 0x9c9   : > { %v1407_v0 = vsel %vm379_vm0, %v1392_v63, -inf }
 0x9ca   : > { %1408 = vmax.xlane.f32.xlu0 %v1407_v0 }
 0x9ce   : > { %1411 = vmax.xlane.f32.xlu0 %v1410_v1 }
 0xa52   : > { %v1406_v2 = vpop.xlane.xlu1 %1405 }
 0xa53   : > { %v1414_v3 = vsub.f32 %v2151_v58, %v1406_v2  ;;  %v1403_v4 = vpop.xlane.xlu0 %1402 }
 0xa54   : > { %v1413_v5 = vsub.f32 %v1382_v59, %v1403_v4 }
 0xa55   : > { %v1419_v6 = vmul.f32 1.442695, %v1414_v3 }
 0xa56   : > { %v1417_v7 = vmul.f32 1.442695, %v1413_v5 }
 0xa57   : > { %2516 = vpow2.f32 %v1419_v6  ;;  %v1409_v8 = vpop.xlane.xlu0 %1408 }
 0xa58   : > { %2518 = vpow2.f32 %v1417_v7  ;;  %v1415_v9 = vsub.f32 %v1392_v63, %v1409_v8 }
 0xa5a   : > { %v1421_v10 = vmul.f32 1.442695, %v1415_v9 }
 0xa5b   : > { %v1412_v11 = vpop.xlane.xlu0 %1411 }
 0xa5c   : > { %2520 = vpow2.f32 %v1421_v10  ;;  %v1416_v13 = vsub.f32 %v2154_v62, %v1412_v11 }
 0xa5e   : > { %v1423_v16 = vmul.f32 1.442695, %v1416_v13 }
 0xa60   : > { %2522 = vpow2.f32 %v1423_v16 }
 0xa61   : > { %v2517_v18 = vpop.eup %2516 }
 0xa62   : > { %v2519_v21 = vpop.eup %2518  ;;  %v1428_v12 = vsel %vm379_vm0, %v2517_v18, 0.0 }
 0xa63   : > { %1429 = vadd.xlane.f32.xlu0 %v1428_v12  ;;  %v1425_v22 = vsel %vm379_vm0, %v2519_v21, 0.0 }
 0xa64   : > { %1426 = vadd.xlane.f32.xlu1 %v1425_v22 }
 0xa66   : > { %v2521_v23 = vpop.eup %2520 }
 0xa67   : > { %v1431_v25 = vsel %vm379_vm0, %v2521_v23, 0.0 }
 0xa68   : > { %1432 = vadd.xlane.f32.xlu1 %v1431_v25 }
 0xa6a   : > { %v2523_v26 = vpop.eup %2522 }
 0xa6b   : > { %v1434_v27 = vsel %vm379_vm0, %v2523_v26, 0.0 }
 0xa6c   : > { %1435 = vadd.xlane.f32.xlu0 %v1434_v27 }
 0xa79   : > { %2459 = vrot.lane.b32.xlu1 %v3145_v15, %s2806_s0 }
 0xa7d   : > { %1558 = vrot.lane.b32.xlu1 %v3255_v45, %s2807_s15 }
 0xa81   : > { %1560 = vrot.lane.b32.xlu1 %v3253_v44, %s2807_s15 }
 0xa82   : > { %2464 = vrot.lane.b32.xlu0 %v3154_v20, %s2806_s0 }
 0xa85   : > { %1576 = vrot.lane.b32.xlu1 %v2137_v54, %s2808_s20 }
 0xa86   : > { %1574 = vrot.lane.b32.xlu0 %v1265_v55, %s2808_s20 }
 0xa89   : > { %1564 = vrot.lane.b32.xlu1 %v3257_v46, %s2807_s15 }
 0xa8a   : > { %1562 = vrot.lane.b32.xlu0 %v3259_v47, %s2807_s15 }
 0xa8d   : > { %1580 = vrot.lane.b32.xlu1 %v2140_v56, %s2808_s20 }
 0xa8e   : > { %1578 = vrot.lane.b32.xlu0 %v1275_v57, %s2808_s20 }
 0xaf0   : > { %v1430_v28 = vpop.xlane.xlu0 %1429 }
 0xaf1   : > { %v1427_v15 = vpop.xlane.xlu1 %1426 }
 0xaf2   : > { %2524 = vrcp.f32 %v1427_v15 }
 0xaf3   : > { %2526 = vrcp.f32 %v1430_v28 }
 0xaf5   : > { %v1433_v45 = vpop.xlane.xlu1 %1432 }
 0xaf6   : > { %2528 = vrcp.f32 %v1433_v45 }
 0xaf9   : > { %v2460_v44 = vpop.permute.xlu1 %2459  ;;  %v1436_v29 = vpop.xlane.xlu0 %1435 }
 0xafa   : > { %v2462_v20 = vunpack.i.h.bf16 %v2460_v44  ;;  %v2461_v30 = vunpack.i.l.bf16 %v2460_v44  ;;  %2530 = vrcp.f32 %v1436_v29 }
 0xafc   : > { %v2525_v31 = vpop.eup %2524  ;;  %v2263_v32 = vpack.c.bf16 %v2462_v20, %v2461_v30 }
 0xafd   : > { %v2465_v17 = vpop.permute.xlu0 %2464  ;;  %v1441_v46 = vmul.f32 %v2525_v31, %v2519_v21  ;;  %v2527_v37 = vpop.eup %2526 }
 0xafe   : > { %v2467_v14 = vunpack.i.h.bf16 %v2465_v17  ;;  %v2466_v19 = vunpack.i.l.bf16 %v2465_v17  ;;  %2264 = vmatprep.subr.bf16.mxu1 %v2263_v32  ;;  %v1442_v39 = vmul.f32 %v2527_v37, %v2517_v18  ;;  %v1559_v56 = vpop.permute.xlu1 %1558 }
 0xaff   : > { %2266 = vmatpush3.bf16.msra.mxu1 %v2263_v32  ;;  %2163 = vmatprep.mubr.msk.f32.mxu1 %vm379_vm0, %v1441_v46  ;;  %v1602_v0 = vsel %vm489_vm1, %v3215_v34, %v1559_v56 }
 0xb00   : > { %v2267_v47 = vpack.c.bf16 %v2467_v14, %v2466_v19  ;;  %v2529_v38 = vpop.eup %2528 }
 0xb01   : > { %v1443_v41 = vmul.f32 %v2529_v38, %v2521_v23  ;;  %v1575_v59 = vpop.permute.xlu0 %1574 }
 0xb02   : > { %2268 = vmatprep.subr.bf16.mxu1 %v2267_v47  ;;  %v1561_v57 = vpop.permute.xlu1 %1560  ;;  %v1607_v3 = vsel %vm1606_vm3, %v1602_v0, %v1575_v59 }
 0xb03   : > { %2270 = vmatpush3.bf16.msra.mxu1 %v2267_v47  ;;  %v1603_v2 = vsel %vm489_vm1, %v3213_v33, %v1561_v57 }
 0xb04   : > { %v2531_v40 = vpop.eup %2530  ;;  %2272 = vmatprep.subr.bf16.mxu1 %v2271_v50 }
 0xb05   : > { %v1444_v42 = vmul.f32 %v2531_v40, %v2523_v26  ;;  %v1563_v61 = vpop.permute.xlu0 %1562 }
 0xb06   : > { %2164 = vmatmul.mubr.msk.f32.vlgmr.msra.gmra.mrb[12].mxu1 %vm379_vm0, %v1442_v39  ;;  %v1577_v58 = vpop.permute.xlu1 %1576  ;;  %v1604_v8 = vsel %vm489_vm1, %v3219_v36, %v1563_v61  ;;  %v1950_v36 = vld [vmem:[#allocation11] ss:$0 sm:$0xff] }
 0xb07   : > { %2166 = vmatprep.mubr.msk.f32.mxu1 %vm379_vm0, %v1443_v41  ;;  %2274 = vmatpush3.bf16.msra.mxu1 %v2271_v50  ;;  %v1608_v5 = vsel %vm1606_vm3, %v1603_v2, %v1577_v58 }
 0xb08   : > { %2276 = vmatprep.subr.bf16.mxu1 %v2275_v52 }
 0xb09   : > { %v1579_v63 = vpop.permute.xlu0 %1578 }
 0xb0a   : > { %2167 = vmatmul.mubr.msk.f32.gmra.mrb[14].mxu1 %vm379_vm0, %v1444_v42  ;;  %v1565_v60 = vpop.permute.xlu1 %1564  ;;  %v1609_v9 = vsel %vm1606_vm3, %v1604_v8, %v1579_v63 }
 0xb0b   : > { %2278 = vmatpush3.bf16.msra.mxu1 %v2275_v52  ;;  %v1605_v33 = vsel %vm489_vm1, %v3217_v35, %v1565_v60 }
 0xb0e   : > { %v1581_v62 = vpop.permute.xlu1 %1580 }
 0xb0f   : > { %v1610_v11 = vsel %vm1606_vm3, %v1605_v33, %v1581_v62 }
 0xbd9   : > { %v2165_v53 = vpop.f32.mrb[12].mxu1 }
 0xbda   : > { %1592 = vrot.lane.b32.xlu1 %v2165_v53, %s2809_s2  ;;  %v1535_v24 = vpop.f32.mrb[13].mxu1 }
 0xbdb   : > { %1590 = vrot.lane.b32.xlu0 %v1535_v24, %s2809_s2 }
 0xbdd   : > { %v2168_v54 = vpop.f32.mrb[14].mxu1 }
 0xbde   : > { %1596 = vrot.lane.b32.xlu1 %v2168_v54, %s2809_s2  ;;  %v1545_v55 = vpop.f32.mrb[15].mxu1 }
 0xbdf   : > { %1594 = vrot.lane.b32.xlu0 %v1545_v55, %s2809_s2 }
 0xc4c   : > { %v1593_v1 = vpop.permute.xlu1 %1592 }
 0xc4d   : > { %v1591_v4 = vpop.permute.xlu0 %1590  ;;  %v1613_v7 = vsel %vm1611_vm4, %v1608_v5, %v1593_v1 }
 0xc4e   : > { %v1612_v6 = vsel %vm1611_vm4, %v1607_v3, %v1591_v4 }
 0xc4f   : > { %2177 = vmatprep.mubr.msk.f32.mxu1 %vm379_vm0, %v1612_v6 }
 0xc50   : > { %2178 = vmatmul.mubr.msk.f32.vlgmr.msra.gmra.mrb[16].mxu1 %vm379_vm0, %v1613_v7  ;;  %v1597_v34 = vpop.permute.xlu1 %1596 }
 0xc51   : > { %v1595_v10 = vpop.permute.xlu0 %1594  ;;  %v1615_v16 = vsel %vm1611_vm4, %v1610_v11, %v1597_v34 }
 0xc52   : > { %v1614_v13 = vsel %vm1611_vm4, %v1609_v9, %v1595_v10 }
 0xc53   : > { %2180 = vmatprep.mubr.msk.f32.mxu1 %vm379_vm0, %v1614_v13 }
 0xc54   : > { %2181 = vmatmul.mubr.msk.f32.gmra.mrb[18].mxu1 %vm379_vm0, %v1615_v16 }
 0xd23   : > { %v2179_v18 = vpop.f32.mrb[16].mxu1 }
 0xd24   : > { %v1711_v21 = vadd.f32 %v2179_v18, %v1950_v36  ;;  %v1705_v35 = vpop.f32.mrb[17].mxu1 }
 0xd25   : > { %v1706_v12 = vadd.f32 %v1950_v36, %v1705_v35 }
 0xd26   : > { %1725 = vst.msk [vmem:[%s363_s14 + $0x8] sm:$0xff] %vm379_vm0, %v1711_v21 }
 0xd27   : > { %1724 = vst.msk [vmem:[%s363_s14] sm:$0xff] %vm379_vm0, %v1706_v12  ;;  %v2182_v22 = vpop.f32.mrb[18].mxu1 }
 0xd28   : > { %v1721_v23 = vadd.f32 %v2182_v22, %v1950_v36  ;;  %v1715_v25 = vpop.f32.mrb[19].mxu1 }
 0xd29   : > { %v1716_v26 = vadd.f32 %v1950_v36, %v1715_v25 }
 0xd2a   : > { %1727 = vst.msk [vmem:[%s363_s14 + $0x18] sm:$0xff] %vm379_vm0, %v1721_v23 }
 0xd2b   : > { %1726 = vst.msk [vmem:[%s363_s14 + $0x10] sm:$0xff] %vm379_vm0, %v1716_v26 }
 0xd2c   : > { %2717 = shalt.err (!%p2714_p8)
}
 0xd2d   : > { %s2718_s12 = scalar_lea.hbm %s3344_s10, 512  ;;  %s2722_s20 = scalar_lea.hbm %s3397_s6, 1024 }
 0xd2e   : > { %p2719_p11 = scmp.ne.s32.totalorder %s3344_s10, %s2718_s12  ;;  %p2723_p1 = scmp.lt.u32.totalorder %s3344_s10, %s3397_s6 }
 0xd2f   : > { %p2724_p2 = scmp.lt.u32.totalorder %s2722_s20, %s2718_s12  ;;  %p2726_p0 = scmp.lt.u32.totalorder %s2718_s12, %s3344_s10 }
 0xd30   : > { %p2720_p7 = pnand %p2719_p11, %p3013_p10 }
 0xd31   : > { %p2725_p13 = por %p2724_p2, %p2723_p1 }
 0xd32   : > { %p2721_p12 = pneg %p2720_p7 }
 0xd33   : > { %p2727_p4 = por %p2726_p0, %p2725_p13 }
 0xd35   : > { %p2728_p6 = pnand %p2727_p4, %p2721_p12 }
 0xd37   : > { %2731 = shalt.err (!%p2728_p6)
}
 0xd38   : > { %s2811_s14 = smov 128  }
 0xd39   : > { %2299 = dma.vmem_to_hbm [thread:$0]  (%p3013_p10), %s3339_s29, 512, %s3344_s10, %s1729_s25, %s2811_s14, %s2811_s14, %s2807_s15  }
 0xd3a PF: > { %s1757_s27 = sand.u32 1, %s2774_s21   ;;  %p3431_p3 = scmp.ne.s32.totalorder %s3409_s28, 0 }
 0xd3b   : > { %p3432_p5 = scmp.ge.s32.totalorder %s2786_s24, 2  ;;  %s1758_s7 = scalar_lea.sflag [#allocation4], %s1757_s27 }
 0xd3d   : > { %p2322_p9 = pnand %p3432_p5, %p3431_p3 }
 0xd3f   : > { %2769 = dma.done.wait (!%p2322_p9), %s1758_s7, 512  }
 0xd40   : > { %2771 = vsyncadd (!%p2322_p9), %s1758_s7, 4294966784  ;;  %p24_p8 = scmp.ge.s32.totalorder %s3003_s18, 4   ;;  %s3433_s21 = smov %s2778_s22 }
 0xd41   : > { %s3434_s22 = smov %s2782_s23  ;;  %s3435_s23 = smov %s3019_s19 }
 0xd42   : > { %s3436_s24 = smov %s3003_s18  ;;  %26 = sbr.rel (!%p24_p8) target bundleno = 13 (0xd), region = 118 }
 0xd49   :  { %1763 = vsyncpa [#allocation3], 1 }
 0xd4a   :  { %1765 = vsyncpa [#allocation3 + $0x1], 1 }
 0xd4b   :  { %1766 = vsyncpa [#allocation6], 1 }
 0xd4c   :  { %1768 = vsyncpa [#allocation6 + $0x1], 1 }
 0xd4d   :  { %1769 = vsyncpa [#allocation9], 1 }
 0xd4e   :  { %1770 = vsyncpa [#allocation12], 1 }
 0xd4f   :  { %1771 = vsyncpa [#allocation4], 1 }
 0xd50   :  { %1773 = vsyncpa [#allocation4 + $0x1], 1 }

</bundles_post_ra>
